<compile_context>
chip_gen: v6e
topology: v6e:2x2x1
jax: 0.10.0
libtpu: 0.0.40
codegen_flags: <defaults>
</compile_context>

<pallas_src>
import functools
import math

import jax
import jax.numpy as jnp
from jax.experimental import pallas as pl
from jax.experimental.pallas import tpu as pltpu


VMEM_LIMIT = 48 * 1024 * 1024   # <= v7x budget (64 MiB phys), ample on v5e/v6e


# ----------------------------------------------------------------------------
# helpers
# ----------------------------------------------------------------------------
def _round_up(x, m):
    return ((x + m - 1) // m) * m


def _pad2d(a, rows, cols):
    r, c = a.shape
    if r == rows and c == cols:
        return a
    return jnp.pad(a, ((0, rows - r), (0, cols - c)))


# ----------------------------------------------------------------------------
# fused tiled matmul:  y = act( LN(x) @ W + b ) [+ residual]
# ----------------------------------------------------------------------------
def fused_matmul(x, w, bias, *, gamma=None, beta=None, activation=None,
                 residual=None, out_dtype=jnp.bfloat16, eps=1e-6,
                 tm_cap=512, tn_cap=256, tk_cap=1024):
    """Tiled MXU matmul with fused LN prologue / GELU / residual epilogue.

    bf16 operands into the MXU, f32 accumulation in a VMEM scratch tile,
    lane-dense (128-padded) output stores.  Padding / slicing is skipped when
    the shapes are already aligned so chained calls don't churn the slab.
    """
    M, K = x.shape
    Kw, Nn = w.shape
    assert Kw == K
    has_ln = gamma is not None
    has_res = residual is not None
    has_gelu = activation == "gelu"

    tm = min(tm_cap, _round_up(M, 8))
    Mp = _round_up(M, tm)
    tn = min(tn_cap, _round_up(Nn, 128))
    Np = _round_up(Nn, tn)
    if has_ln or K <= tk_cap:
        tk, Kp = K, K                     # LN prologue needs the whole row
    else:
        tk = tk_cap
        Kp = _round_up(K, tk)
    nk = Kp // tk

    xb = _pad2d(x.astype(jnp.bfloat16), Mp, Kp)
    wb = _pad2d(w.astype(jnp.bfloat16), Kp, Np)
    bb = _pad2d(bias.reshape(1, Nn).astype(jnp.float32), 1, Np)

    operands = [xb, wb, bb]
    in_specs = [
        pl.BlockSpec((tm, tk), lambda i, j, kk: (i, kk)),
        pl.BlockSpec((tk, tn), lambda i, j, kk: (kk, j)),
        pl.BlockSpec((1, tn), lambda i, j, kk: (0, j)),
    ]
    if has_ln:
        operands += [gamma.reshape(1, K).astype(jnp.float32),
                     beta.reshape(1, K).astype(jnp.float32)]
        in_specs += [pl.BlockSpec((1, K), lambda i, j, kk: (0, 0)),
                     pl.BlockSpec((1, K), lambda i, j, kk: (0, 0))]
    if has_res:
        operands.append(_pad2d(residual.astype(jnp.bfloat16), Mp, Np))
        in_specs.append(pl.BlockSpec((tm, tn), lambda i, j, kk: (i, j)))

    def kernel(*refs):
        x_ref, w_ref, b_ref = refs[0], refs[1], refs[2]
        idx = 3
        if has_ln:
            g_ref, be_ref = refs[3], refs[4]
            idx = 5
        if has_res:
            r_ref = refs[idx]
            idx += 1
        o_ref, acc_ref = refs[idx], refs[idx + 1]

        @pl.when(pl.program_id(2) == 0)
        def _init():
            acc_ref[...] = jnp.zeros_like(acc_ref)

        xv = x_ref[...]
        if has_ln:
            xf = xv.astype(jnp.float32)
            mu = jnp.mean(xf, axis=-1, keepdims=True)
            var = jnp.mean((xf - mu) ** 2, axis=-1, keepdims=True)
            xf = (xf - mu) * jax.lax.rsqrt(var + eps)
            xv = (xf * g_ref[...] + be_ref[...]).astype(jnp.bfloat16)
        acc_ref[...] += jnp.dot(xv, w_ref[...],
                                preferred_element_type=jnp.float32)

        @pl.when(pl.program_id(2) == pl.num_programs(2) - 1)
        def _finalize():
            y = acc_ref[...] + b_ref[...]
            if has_gelu:
                # TODO(synk): torch nn.GELU default is exact erf; tanh approx
                # keeps the activation on the EUP.
                y = jax.nn.gelu(y, approximate=True)
            if has_res:
                y = y + r_ref[...].astype(jnp.float32)
            o_ref[...] = y.astype(o_ref.dtype)

    out = pl.pallas_call(
        kernel,
        grid=(Mp // tm, Np // tn, nk),
        in_specs=in_specs,
        out_specs=pl.BlockSpec((tm, tn), lambda i, j, kk: (i, j)),
        out_shape=jax.ShapeDtypeStruct((Mp, Np), out_dtype),
        scratch_shapes=[pltpu.VMEM((tm, tn), jnp.float32)],
        compiler_params=pltpu.CompilerParams(
            dimension_semantics=("parallel", "parallel", "arbitrary"),
            vmem_limit_bytes=VMEM_LIMIT,
        ),
    )(*operands)
    if Mp == M and Np == Nn:
        return out
    return out[:M, :Nn]


# ----------------------------------------------------------------------------
# multi-head attention on the packed QKV slab (K/V resident per batch sample)
# ----------------------------------------------------------------------------
def mha_attention(qkv, s_true, num_heads):
    """qkv: (N, S_pad, 3*D) bf16 with columns ordered [q | k | v].

    Grid is (batch, q-tile).  The K/V block covers the whole sequence and its
    index_map depends only on the batch index, so it stays resident across
    q tiles (no K/V HBM re-reads).  All heads are handled in-kernel and the
    result is stored once as a lane-dense (tq, D) slab -- no XLA head
    split/merge transposes in the wrapper.  1/sqrt(dh) is folded into the q
    projection weights by the caller.
    """
    N, S_pad, threeD = qkv.shape
    D = threeD // 3
    dh = D // num_heads

    if S_pad <= 512:
        tq = S_pad
    elif S_pad % 256 == 0:
        tq = 256                      # fills the 256-wide MXU on v6e/v7x
    else:
        tq = 128
    nq = S_pad // tq
    needs_mask = S_pad > s_true

    def kernel(q_ref, kv_ref, o_ref):
        if needs_mask:
            col = jax.lax.broadcasted_iota(jnp.int32, (1, S_pad), 1)
            neg_bias = jnp.where(col < s_true, 0.0, -1e30).astype(jnp.float32)
        outs = []
        for h in range(num_heads):
            qh = q_ref[0, :, h * dh:(h + 1) * dh]
            kh = kv_ref[0, :, D + h * dh:D + (h + 1) * dh]
            vh = kv_ref[0, :, 2 * D + h * dh:2 * D + (h + 1) * dh]
            s = jax.lax.dot_general(qh, kh, (((1,), (1,)), ((), ())),
                                    preferred_element_type=jnp.float32)
            if needs_mask:
                s = s + neg_bias
            m = jnp.max(s, axis=-1, keepdims=True)
            p = jnp.exp(s - m)
            l = jnp.sum(p, axis=-1, keepdims=True)
            oh = jnp.dot(p.astype(jnp.bfloat16), vh,
                         preferred_element_type=jnp.float32)
            outs.append(oh / l)       # exact normalizer (review note)
        o_ref[0] = jnp.concatenate(outs, axis=-1).astype(o_ref.dtype)

    return pl.pallas_call(
        kernel,
        grid=(N, nq),
        in_specs=[
            pl.BlockSpec((1, tq, threeD), lambda b, qi: (b, qi, 0)),
            pl.BlockSpec((1, S_pad, threeD), lambda b, qi: (b, 0, 0)),
        ],
        out_specs=pl.BlockSpec((1, tq, D), lambda b, qi: (b, qi, 0)),
        out_shape=jax.ShapeDtypeStruct((N, S_pad, D), jnp.bfloat16),
        compiler_params=pltpu.CompilerParams(
            dimension_semantics=("parallel", "parallel"),
            vmem_limit_bytes=VMEM_LIMIT,
        ),
    )(qkv, qkv)


# ----------------------------------------------------------------------------
# fused (encoder-final LN) + (decoder LN) over token rows
# ----------------------------------------------------------------------------
def pallas_double_layernorm(x2d, g1, b1, g2, b2, eps1=1e-6, eps2=1e-5):
    M, C = x2d.shape
    tm = min(512, _round_up(M, 8))
    Mp = _round_up(M, tm)
    xb = _pad2d(x2d.astype(jnp.bfloat16), Mp, C)

    def kernel(x_ref, g1_ref, b1_ref, g2_ref, b2_ref, o_ref):
        xv = x_ref[...].astype(jnp.float32)
        for g_ref, b_ref, eps in ((g1_ref, b1_ref, eps1),
                                  (g2_ref, b2_ref, eps2)):
            mu = jnp.mean(xv, axis=-1, keepdims=True)
            var = jnp.mean((xv - mu) ** 2, axis=-1, keepdims=True)
            xv = (xv - mu) * jax.lax.rsqrt(var + eps) * g_ref[...] + b_ref[...]
        o_ref[...] = xv.astype(o_ref.dtype)

    vec = lambda v: v.reshape(1, C).astype(jnp.float32)
    out = pl.pallas_call(
        kernel,
        grid=(Mp // tm,),
        in_specs=[pl.BlockSpec((tm, C), lambda i: (i, 0))] +
                 [pl.BlockSpec((1, C), lambda i: (0, 0))] * 4,
        out_specs=pl.BlockSpec((tm, C), lambda i: (i, 0)),
        out_shape=jax.ShapeDtypeStruct((Mp, C), jnp.bfloat16),
        compiler_params=pltpu.CompilerParams(
            dimension_semantics=("parallel",)),
    )(xb, vec(g1), vec(b1), vec(g2), vec(b2))
    return out[:M]


# ----------------------------------------------------------------------------
# decoder conv (k=1 or 3) + folded BatchNorm(eval) + ReLU
# ----------------------------------------------------------------------------
def conv_bn_relu(x_nhwc, w, scale, shift, k):
    """x: (N,H,W,Cin) bf16, w: (k,k,Cin,Cout).

    The padded image is flattened to (H*Wp, Cin) so each (dy,dx) tap becomes
    a dense 2-D matmul over `tm` flattened output positions at a constant
    flat offset (dy*Wp + dx): one HBM read of the image, big-M MXU matmuls,
    no per-row grid steps and no in-kernel reshapes/halos.
    """
    N, H, W, Cin = x_nhwc.shape
    Cout = w.shape[-1]
    pad = k // 2
    Wp = W + 2 * pad
    if pad:
        xp = jnp.pad(x_nhwc, ((0, 0), (pad, pad), (pad, pad), (0, 0)))
    else:
        xp = x_nhwc
    Hp = H + 2 * pad

    Mout = H * Wp
    tm = min(512, _round_up(Mout, 8))
    Lout = _round_up(Mout, tm)
    Lin = Lout + (k - 1) * (Wp + 1)
    nchunks = Lout // tm

    xf = xp.reshape(N, Hp * Wp, Cin).astype(jnp.bfloat16)
    if Lin > Hp * Wp:
        xf = jnp.pad(xf, ((0, 0), (0, Lin - Hp * Wp), (0, 0)))

    # TODO(synk): for very large decoder feature maps the whole-image block may
    # exceed VMEM; a row-tiled grid with manual halo DMA would be needed then.
    def kernel(x_ref, w_ref, sc_ref, sh_ref, o_ref):
        def chunk(ci):
            c0 = ci * tm
            acc = jnp.zeros((tm, Cout), jnp.float32)
            for dy in range(k):
                for dx in range(k):
                    off = dy * Wp + dx
                    tap = x_ref[0, pl.ds(c0 + off, tm)]        # (tm, Cin)
                    acc = acc + jnp.dot(tap, w_ref[dy, dx],
                                        preferred_element_type=jnp.float32)
            y = jnp.maximum(acc * sc_ref[...] + sh_ref[...], 0.0)
            o_ref[0, pl.ds(c0, tm)] = y.astype(o_ref.dtype)

        if nchunks == 1:
            chunk(0)
        else:
            @pl.loop(0, nchunks)
            def _chunks(ci):
                chunk(ci)

    out = pl.pallas_call(
        kernel,
        grid=(N,),
        in_specs=[
            pl.BlockSpec((1, Lin, Cin), lambda n: (n, 0, 0)),
            # TODO(synk): constant-index weight block is still double-buffered;
            # on v7x a single-buffer request / manual DMA would halve its VMEM.
            pl.BlockSpec((k, k, Cin, Cout), lambda n: (0, 0, 0, 0)),
            pl.BlockSpec((1, Cout), lambda n: (0, 0)),
            pl.BlockSpec((1, Cout), lambda n: (0, 0)),
        ],
        out_specs=pl.BlockSpec((1, Lout, Cout), lambda n: (n, 0, 0)),
        out_shape=jax.ShapeDtypeStruct((N, Lout, Cout), jnp.bfloat16),
        compiler_params=pltpu.CompilerParams(
            dimension_semantics=("parallel",),
            vmem_limit_bytes=VMEM_LIMIT,
        ),
    )(xf, w.astype(jnp.bfloat16),
      scale.reshape(1, Cout).astype(jnp.float32),
      shift.reshape(1, Cout).astype(jnp.float32))

    # drop the chunk padding and the padded-width columns
    return out[:, :Mout].reshape(N, H, Wp, Cout)[:, :, :W, :]


# ----------------------------------------------------------------------------
# bilinear upsample (PyTorch semantics), s output rows per grid step
# ----------------------------------------------------------------------------
def _interp_matrix(out_size, in_size, align_corners):
    if align_corners and out_size > 1:
        src = jnp.arange(out_size, dtype=jnp.float32) * (in_size - 1) / max(out_size - 1, 1)
    else:
        scl = in_size / out_size
        src = (jnp.arange(out_size, dtype=jnp.float32) + 0.5) * scl - 0.5
        src = jnp.clip(src, 0.0, in_size - 1)
    i0 = jnp.clip(jnp.floor(src).astype(jnp.int32), 0, in_size - 1)
    i1 = jnp.minimum(i0 + 1, in_size - 1)
    w1 = src - i0.astype(jnp.float32)
    w0 = 1.0 - w1
    return (jax.nn.one_hot(i0, in_size, dtype=jnp.float32) * w0[:, None]
            + jax.nn.one_hot(i1, in_size, dtype=jnp.float32) * w1[:, None])


def bilinear_upsample(x_nhwc, up_scale, align_corners):
    """One grid step emits the `s` output rows that depend on input rows
    {i-1, i, i+1} (fetched clamped): s x fewer grid steps and <=3 row fetches
    per input row.  H blend = scalar-weighted VPU fma, W interp = bf16 matmul
    against a precomputed (Wo, W) interpolation matrix."""
    N, H, W, C = x_nhwc.shape
    s = int(up_scale)
    Ho, Wo = H * s, W * s
    Aw = _interp_matrix(Wo, W, align_corners).astype(jnp.bfloat16)

    if not align_corners:
        taps = []
        for j in range(s):
            src = (j + 0.5) / s - 0.5
            if src < 0:
                taps.append((-src, 1.0 + src, 0.0))     # (prev, ctr, next)
            else:
                taps.append((0.0, 1.0 - src, src))
    else:
        taps = None
        h_ratio = (H - 1) / max(Ho - 1, 1)

    def kernel(prev_ref, ctr_ref, nxt_ref, aw_ref, o_ref):
        i = pl.program_id(1)
        prev = prev_ref[0, 0].astype(jnp.float32)
        ctr = ctr_ref[0, 0].astype(jnp.float32)
        nxt = nxt_ref[0, 0].astype(jnp.float32)
        aw = aw_ref[...]
        for j in range(s):
            if taps is not None:
                wa, wb, wc = taps[j]
                row = wb * ctr
                if wa:
                    row = row + wa * prev
                if wc:
                    row = row + wc * nxt
            else:
                src = (i * s + j).astype(jnp.float32) * h_ratio
                i0 = jnp.floor(src)
                t = src - i0
                use_prev = i0 < i.astype(jnp.float32)
                wa = jnp.where(use_prev, 1.0 - t, 0.0)
                wb = jnp.where(use_prev, t, 1.0 - t)
                wc = jnp.where(use_prev, 0.0, t)
                row = wa * prev + wb * ctr + wc * nxt
            out_row = jnp.dot(aw, row.astype(jnp.bfloat16),
                              preferred_element_type=jnp.float32)
            o_ref[0, j] = out_row.astype(o_ref.dtype)

    xb = x_nhwc.astype(jnp.bfloat16)
    return pl.pallas_call(
        kernel,
        grid=(N, H),
        in_specs=[
            pl.BlockSpec((1, 1, W, C),
                         lambda n, i: (n, jnp.maximum(i - 1, 0), 0, 0)),
            pl.BlockSpec((1, 1, W, C), lambda n, i: (n, i, 0, 0)),
            pl.BlockSpec((1, 1, W, C),
                         lambda n, i: (n, jnp.minimum(i + 1, H - 1), 0, 0)),
            pl.BlockSpec((Wo, W), lambda n, i: (0, 0)),
        ],
        out_specs=pl.BlockSpec((1, s, Wo, C), lambda n, i: (n, i, 0, 0)),
        out_shape=jax.ShapeDtypeStruct((N, Ho, Wo, C), jnp.bfloat16),
        compiler_params=pltpu.CompilerParams(
            dimension_semantics=("parallel", "arbitrary")),
    )(xb, xb, xb, Aw)


# ----------------------------------------------------------------------------
# parameters (deterministic synthetic init)
# ----------------------------------------------------------------------------
def init_params(key, cfg):
    D, p, mlp = cfg["hidden_dim"], cfg["patch_size"], cfg["mlp_dim"]
    k = cfg["kernel_size"]
    npatch = (cfg["image_size"] // p) ** 2
    keys = iter(jax.random.split(key, 512))

    def nrm(shape, std=0.02):
        return std * jax.random.normal(next(keys), shape, jnp.float32)

    params = dict(
        patch_w=nrm((3 * p * p, D)), patch_b=nrm((D,)),
        cls_token=nrm((1, 1, D)), pos_emb=nrm((1, npatch + 1, D)),
        enc_ln_g=jnp.ones((D,), jnp.float32), enc_ln_b=jnp.zeros((D,), jnp.float32),
        dec_ln_g=1.0 + nrm((D,)), dec_ln_b=nrm((D,)),
    )
    layers = []
    for _ in range(cfg["num_layers"]):
        layers.append(dict(
            ln1_g=1.0 + nrm((D,)), ln1_b=nrm((D,)),
            qkv_w=nrm((D, 3 * D)), qkv_b=nrm((3 * D,)),
            out_w=nrm((D, D)), out_b=nrm((D,)),
            ln2_g=1.0 + nrm((D,)), ln2_b=nrm((D,)),
            mlp_w1=nrm((D, mlp)), mlp_b1=nrm((mlp,)),
            mlp_w2=nrm((mlp, D)), mlp_b2=nrm((D,)),
        ))
    params["layers"] = layers

    convs = []
    cin, ch = D, cfg["decoder_channels"]
    for _ in range(cfg["num_convs"]):
        convs.append(dict(
            w=nrm((k, k, cin, ch)),
            gamma=1.0 + nrm((ch,)), beta=nrm((ch,)),
            mean=nrm((ch,)), var=1.0 + jnp.abs(nrm((ch,))),
        ))
        cin = ch
    params["up_convs"] = convs
    params["cls_w"] = nrm((ch, cfg["num_classes"]))
    params["cls_b"] = nrm((cfg["num_classes"],))
    return params


# ----------------------------------------------------------------------------
# forward pass
# ----------------------------------------------------------------------------
def setr_pup_forward(params, x_nchw, cfg):
    N, C, H, W = x_nchw.shape
    p, D, nh = cfg["patch_size"], cfg["hidden_dim"], cfg["num_heads"]
    dh = D // nh
    nH, nW = H // p, W // p
    npatch = nH * nW
    S_true = npatch + 1
    S_pad = _round_up(S_true, 8) if S_true <= 128 else _round_up(S_true, 128)
    q_scale = 1.0 / math.sqrt(dh)

    # ---------------- encoder: ViT backbone ----------------
    # patch-embedding conv (kernel=p, stride=p) == matmul over flattened patches
    xp = (x_nchw.reshape(N, C, nH, p, nW, p)
          .transpose(0, 2, 4, 1, 3, 5)
          .reshape(N * npatch, C * p * p))
    tok = fused_matmul(xp, params["patch_w"], params["patch_b"]).reshape(N, npatch, D)
    cls = jnp.broadcast_to(params["cls_token"].astype(jnp.bfloat16), (N, 1, D))
    tok = jnp.concatenate([cls, tok], axis=1) + params["pos_emb"].astype(jnp.bfloat16)
    tok = jnp.pad(tok, ((0, 0), (0, S_pad - S_true), (0, 0)))   # sublane-friendly S
    tok2d = tok.reshape(N * S_pad, D)

    for lp in params["layers"]:
        # fold 1/sqrt(dh) into the q columns of the QKV projection (free at run)
        qkv_w = lp["qkv_w"].at[:, :D].multiply(q_scale)
        qkv_b = lp["qkv_b"].at[:D].multiply(q_scale)
        # fused LN1 + QKV projection -> packed (N, S_pad, 3D) slab
        qkv = fused_matmul(tok2d, qkv_w, qkv_b,
                           gamma=lp["ln1_g"], beta=lp["ln1_b"])
        att = mha_attention(qkv.reshape(N, S_pad, 3 * D), S_true, nh)
        # fused out-projection + residual
        tok2d = fused_matmul(att.reshape(N * S_pad, D), lp["out_w"], lp["out_b"],
                             residual=tok2d)
        # fused LN2 + MLP1 + GELU,  then MLP2 + residual
        hmid = fused_matmul(tok2d, lp["mlp_w1"], lp["mlp_b1"],
                            gamma=lp["ln2_g"], beta=lp["ln2_b"],
                            activation="gelu")
        tok2d = fused_matmul(hmid, lp["mlp_w2"], lp["mlp_b2"], residual=tok2d)

    # encoder-final LN + decoder LN fused (cls token dropped, padding dropped)
    patches = tok2d.reshape(N, S_pad, D)[:, 1:S_true, :].reshape(N * npatch, D)
    feat = pallas_double_layernorm(patches,
                                   params["enc_ln_g"], params["enc_ln_b"],
                                   params["dec_ln_g"], params["dec_ln_b"])
    x = feat.reshape(N, nH, nW, D)                      # NHWC feature map

    # ---------------- decoder: _SETRUPHead ----------------
    k = cfg["kernel_size"]
    for cvp in params["up_convs"]:
        scale = cvp["gamma"] / jnp.sqrt(cvp["var"] + 1e-5)   # BN(eval) folded
        shift = cvp["beta"] - cvp["mean"] * scale
        x = conv_bn_relu(x, cvp["w"], scale, shift, k)
        x = bilinear_upsample(x, cfg["up_scale"], cfg["align_corners"])

    # Dropout2d: eval mode -> identity
    Nb, h_, w_, Cc = x.shape
    logits = fused_matmul(x.reshape(Nb * h_ * w_, Cc),
                          params["cls_w"], params["cls_b"],
                          out_dtype=jnp.float32)
    return logits.reshape(Nb, h_, w_, cfg["num_classes"]).transpose(0, 3, 1, 2)


# ----------------------------------------------------------------------------
if __name__ == "__main__":
    cfg = dict(
        image_size=16, patch_size=4, num_layers=2, num_heads=4,
        hidden_dim=32, mlp_dim=64, num_convs=2, num_classes=3,
        decoder_channels=16, up_scale=2, kernel_size=3, align_corners=False,
    )
    x = jax.random.normal(jax.random.PRNGKey(0), (2, 3, 16, 16), jnp.float32)
    params = init_params(jax.random.PRNGKey(42), cfg)

    fwd = jax.jit(functools.partial(setr_pup_forward, cfg=cfg))
    out = jax.block_until_ready(fwd(params, x))
    assert out.shape == (2, cfg["num_classes"], 16, 16), out.shape
    assert bool(jnp.all(jnp.isfinite(out)))
    print("KERNEL_OK")
</pallas_src>

<mosaic_0001>
module attributes {stable_mosaic.version = 11 : i64} {
  func.func @kernel(%arg0: i32, %arg1: i32, %arg2: i32, %arg3: memref<48x32xbf16, #tpu.memory_space<vmem>>, %arg4: memref<32x128xbf16, #tpu.memory_space<vmem>>, %arg5: memref<1x128xf32, #tpu.memory_space<vmem>>, %arg6: memref<1x32xf32, #tpu.memory_space<vmem>>, %arg7: memref<1x32xf32, #tpu.memory_space<vmem>>, %arg8: memref<48x128xbf16, #tpu.memory_space<vmem>>, %arg9: memref<48x128xf32, #tpu.memory_space<vmem>>) attributes {dimension_semantics = [#tpu.dimension_semantics<parallel>, #tpu.dimension_semantics<parallel>, #tpu.dimension_semantics<arbitrary>], iteration_bounds = array<i64: 1, 1, 1>, scalar_prefetch = 0 : i64, scratch_operands = 1 : i64, tpu.core_type = #tpu.core_type<tc>, window_params = [{transform_indices = @transform_0, window_bounds = array<i64: 48, 32>}, {transform_indices = @transform_1, window_bounds = array<i64: 32, 128>}, {transform_indices = @transform_2, window_bounds = array<i64: 1, 128>}, {pipeline_mode = #tpu.pipeline_mode<synchronous>, transform_indices = @transform_3, window_bounds = array<i64: 1, 32>}, {pipeline_mode = #tpu.pipeline_mode<synchronous>, transform_indices = @transform_4, window_bounds = array<i64: 1, 32>}, {transform_indices = @transform_5, window_bounds = array<i64: 48, 128>}]} {
    %c0_i32 = arith.constant 0 : i32
    %0 = arith.cmpi eq, %arg2, %c0_i32 : i32
    %1 = arith.extui %0 : i1 to i32
    %c0_i32_0 = arith.constant 0 : i32
    %2 = arith.cmpi ne, %1, %c0_i32_0 : i32
    scf.if %2 {
      %cst_19 = arith.constant 0.000000e+00 : f32
      %38 = vector.broadcast %cst_19 : f32 to vector<48x128xf32>
      %c0_20 = arith.constant 0 : index
      %c0_21 = arith.constant 0 : index
      %39 = vector.load %arg9[%c0_20, %c0_21] : memref<48x128xf32, #tpu.memory_space<vmem>>, vector<48x128xf32>
      tpu.vector_store %arg9[%c0_20, %c0_21], %38 {strides = array<i32>} : memref<48x128xf32, #tpu.memory_space<vmem>>, vector<48x128xf32>,
    } else {
    }
    %c0 = arith.constant 0 : index
    %c0_1 = arith.constant 0 : index
    %3 = vector.load %arg3[%c0, %c0_1] : memref<48x32xbf16, #tpu.memory_space<vmem>>, vector<48x32xbf16>
    %4 = arith.extf %3 : vector<48x32xbf16> to vector<48x32xf32>
    %cst = arith.constant dense<0.000000e+00> : vector<48xf32>
    %5 = vector.multi_reduction <add>, %4, %cst [1] : vector<48x32xf32> to vector<48xf32>
    %6 = vector.shape_cast %5 : vector<48xf32> to vector<48x1xf32>
    %cst_2 = arith.constant 3.200000e+01 : f32
    %7 = vector.broadcast %cst_2 : f32 to vector<48x1xf32>
    %8 = arith.divf %6, %7 : vector<48x1xf32>
    %9 = vector.broadcast %8 : vector<48x1xf32> to vector<48x32xf32>
    %10 = arith.subf %4, %9 : vector<48x32xf32>
    %11 = arith.mulf %10, %10 : vector<48x32xf32>
    %cst_3 = arith.constant dense<0.000000e+00> : vector<48xf32>
    %12 = vector.multi_reduction <add>, %11, %cst_3 [1] : vector<48x32xf32> to vector<48xf32>
    %13 = vector.shape_cast %12 : vector<48xf32> to vector<48x1xf32>
    %cst_4 = arith.constant 3.200000e+01 : f32
    %14 = vector.broadcast %cst_4 : f32 to vector<48x1xf32>
    %15 = arith.divf %13, %14 : vector<48x1xf32>
    %16 = vector.broadcast %8 : vector<48x1xf32> to vector<48x32xf32>
    %17 = arith.subf %4, %16 : vector<48x32xf32>
    %cst_5 = arith.constant 9.99999997E-7 : f32
    %18 = vector.broadcast %cst_5 : f32 to vector<48x1xf32>
    %19 = arith.addf %15, %18 : vector<48x1xf32>
    %20 = math.rsqrt %19 : vector<48x1xf32>
    %21 = vector.broadcast %20 : vector<48x1xf32> to vector<48x32xf32>
    %22 = arith.mulf %17, %21 : vector<48x32xf32>
    %c0_6 = arith.constant 0 : index
    %c0_7 = arith.constant 0 : index
    %23 = vector.load %arg6[%c0_6, %c0_7] : memref<1x32xf32, #tpu.memory_space<vmem>>, vector<1x32xf32>
    %24 = vector.broadcast %23 : vector<1x32xf32> to vector<48x32xf32>
    %25 = arith.mulf %22, %24 : vector<48x32xf32>
    %c0_8 = arith.constant 0 : index
    %c0_9 = arith.constant 0 : index
    %26 = vector.load %arg7[%c0_8, %c0_9] : memref<1x32xf32, #tpu.memory_space<vmem>>, vector<1x32xf32>
    %27 = vector.broadcast %26 : vector<1x32xf32> to vector<48x32xf32>
    %28 = arith.addf %25, %27 : vector<48x32xf32>
    %29 = arith.truncf %28 : vector<48x32xf32> to vector<48x32xbf16>
    %c0_10 = arith.constant 0 : index
    %c0_11 = arith.constant 0 : index
    %30 = vector.load %arg9[%c0_10, %c0_11] : memref<48x128xf32, #tpu.memory_space<vmem>>, vector<48x128xf32>
    %c0_12 = arith.constant 0 : index
    %c0_13 = arith.constant 0 : index
    %31 = vector.load %arg4[%c0_12, %c0_13] : memref<32x128xbf16, #tpu.memory_space<vmem>>, vector<32x128xbf16>
    %cst_14 = arith.constant dense<0.000000e+00> : vector<48x128xf32>
    %32 = tpu.matmul %29, %31, %cst_14 {dimension_numbers = #tpu.dot_dimension_numbers<[1], [0], [0], [1], [0, 0, 1, 1], [], []>} : vector<48x32xbf16>, vector<32x128xbf16>, vector<48x128xf32> -> vector<48x128xf32>
    %33 = arith.addf %30, %32 : vector<48x128xf32>
    %c0_15 = arith.constant 0 : index
    %c0_16 = arith.constant 0 : index
    %34 = vector.load %arg9[%c0_15, %c0_16] : memref<48x128xf32, #tpu.memory_space<vmem>>, vector<48x128xf32>
    tpu.vector_store %arg9[%c0_15, %c0_16], %33 {strides = array<i32>} : memref<48x128xf32, #tpu.memory_space<vmem>>, vector<48x128xf32>,
    %c0_i32_17 = arith.constant 0 : i32
    %35 = arith.cmpi eq, %arg2, %c0_i32_17 : i32
    %36 = arith.extui %35 : i1 to i32
    %c0_i32_18 = arith.constant 0 : i32
    %37 = arith.cmpi ne, %36, %c0_i32_18 : i32
    scf.if %37 {
      %c0_19 = arith.constant 0 : index
      %c0_20 = arith.constant 0 : index
      %38 = vector.load %arg9[%c0_19, %c0_20] : memref<48x128xf32, #tpu.memory_space<vmem>>, vector<48x128xf32>
      %c0_21 = arith.constant 0 : index
      %c0_22 = arith.constant 0 : index
      %39 = vector.load %arg5[%c0_21, %c0_22] : memref<1x128xf32, #tpu.memory_space<vmem>>, vector<1x128xf32>
      %40 = vector.broadcast %39 : vector<1x128xf32> to vector<48x128xf32>
      %41 = arith.addf %38, %40 : vector<48x128xf32>
      %42 = arith.truncf %41 : vector<48x128xf32> to vector<48x128xbf16>
      %c0_23 = arith.constant 0 : index
      %c0_24 = arith.constant 0 : index
      %43 = vector.load %arg8[%c0_23, %c0_24] : memref<48x128xbf16, #tpu.memory_space<vmem>>, vector<48x128xbf16>
      tpu.vector_store %arg8[%c0_23, %c0_24], %42 {strides = array<i32>} : memref<48x128xbf16, #tpu.memory_space<vmem>>, vector<48x128xbf16>,
    } else {
    }
    return
  }
  func.func @transform_0(%arg0: i32, %arg1: i32, %arg2: i32) -> (i32, i32) {
    %c0_i32 = arith.constant 0 : i32
    return %arg0, %arg2 : i32, i32
  }
  func.func @transform_1(%arg0: i32, %arg1: i32, %arg2: i32) -> (i32, i32) {
    %c0_i32 = arith.constant 0 : i32
    return %arg2, %arg1 : i32, i32
  }
  func.func @transform_2(%arg0: i32, %arg1: i32, %arg2: i32) -> (i32, i32) {
    %c0_i32 = arith.constant 0 : i32
    %c0_i32_0 = arith.constant 0 : i32
    return %c0_i32, %arg1 : i32, i32
  }
  func.func @transform_3(%arg0: i32, %arg1: i32, %arg2: i32) -> (i32, i32) {
    %c0_i32 = arith.constant 0 : i32
    %c0_i32_0 = arith.constant 0 : i32
    %c0_i32_1 = arith.constant 0 : i32
    return %c0_i32, %c0_i32_0 : i32, i32
  }
  func.func @transform_4(%arg0: i32, %arg1: i32, %arg2: i32) -> (i32, i32) {
    %c0_i32 = arith.constant 0 : i32
    %c0_i32_0 = arith.constant 0 : i32
    %c0_i32_1 = arith.constant 0 : i32
    return %c0_i32, %c0_i32_0 : i32, i32
  }
  func.func @transform_5(%arg0: i32, %arg1: i32, %arg2: i32) -> (i32, i32) {
    %c0_i32 = arith.constant 0 : i32
    return %arg0, %arg1 : i32, i32
  }
}

module attributes {stable_mosaic.version = 11 : i64} {
  func.func @kernel(%arg0: i32, %arg1: i32, %arg2: i32, %arg3: memref<32x48xbf16, #tpu.memory_space<vmem>>, %arg4: memref<48x128xbf16, #tpu.memory_space<vmem>>, %arg5: memref<1x128xf32, #tpu.memory_space<vmem>>, %arg6: memref<32x128xbf16, #tpu.memory_space<vmem>>, %arg7: memref<32x128xf32, #tpu.memory_space<vmem>>) attributes {dimension_semantics = [#tpu.dimension_semantics<parallel>, #tpu.dimension_semantics<parallel>, #tpu.dimension_semantics<arbitrary>], iteration_bounds = array<i64: 1, 1, 1>, scalar_prefetch = 0 : i64, scratch_operands = 1 : i64, tpu.core_type = #tpu.core_type<tc>, window_params = [{transform_indices = @transform_0, window_bounds = array<i64: 32, 48>}, {transform_indices = @transform_1, window_bounds = array<i64: 48, 128>}, {transform_indices = @transform_2, window_bounds = array<i64: 1, 128>}, {transform_indices = @transform_3, window_bounds = array<i64: 32, 128>}]} {
    %c0_i32 = arith.constant 0 : i32
    %0 = arith.cmpi eq, %arg2, %c0_i32 : i32
    %1 = arith.extui %0 : i1 to i32
    %c0_i32_0 = arith.constant 0 : i32
    %2 = arith.cmpi ne, %1, %c0_i32_0 : i32
    scf.if %2 {
      %cst_10 = arith.constant 0.000000e+00 : f32
      %12 = vector.broadcast %cst_10 : f32 to vector<32x128xf32>
      %c0_11 = arith.constant 0 : index
      %c0_12 = arith.constant 0 : index
      %13 = vector.load %arg7[%c0_11, %c0_12] : memref<32x128xf32, #tpu.memory_space<vmem>>, vector<32x128xf32>
      tpu.vector_store %arg7[%c0_11, %c0_12], %12 {strides = array<i32>} : memref<32x128xf32, #tpu.memory_space<vmem>>, vector<32x128xf32>,
    } else {
    }
    %c0 = arith.constant 0 : index
    %c0_1 = arith.constant 0 : index
    %3 = vector.load %arg3[%c0, %c0_1] : memref<32x48xbf16, #tpu.memory_space<vmem>>, vector<32x48xbf16>
    %c0_2 = arith.constant 0 : index
    %c0_3 = arith.constant 0 : index
    %4 = vector.load %arg7[%c0_2, %c0_3] : memref<32x128xf32, #tpu.memory_space<vmem>>, vector<32x128xf32>
    %c0_4 = arith.constant 0 : index
    %c0_5 = arith.constant 0 : index
    %5 = vector.load %arg4[%c0_4, %c0_5] : memref<48x128xbf16, #tpu.memory_space<vmem>>, vector<48x128xbf16>
    %cst = arith.constant dense<0.000000e+00> : vector<32x128xf32>
    %6 = tpu.matmul %3, %5, %cst {dimension_numbers = #tpu.dot_dimension_numbers<[1], [0], [0], [1], [0, 0, 1, 1], [], []>} : vector<32x48xbf16>, vector<48x128xbf16>, vector<32x128xf32> -> vector<32x128xf32>
    %7 = arith.addf %4, %6 : vector<32x128xf32>
    %c0_6 = arith.constant 0 : index
    %c0_7 = arith.constant 0 : index
    %8 = vector.load %arg7[%c0_6, %c0_7] : memref<32x128xf32, #tpu.memory_space<vmem>>, vector<32x128xf32>
    tpu.vector_store %arg7[%c0_6, %c0_7], %7 {strides = array<i32>} : memref<32x128xf32, #tpu.memory_space<vmem>>, vector<32x128xf32>,
    %c0_i32_8 = arith.constant 0 : i32
    %9 = arith.cmpi eq, %arg2, %c0_i32_8 : i32
    %10 = arith.extui %9 : i1 to i32
    %c0_i32_9 = arith.constant 0 : i32
    %11 = arith.cmpi ne, %10, %c0_i32_9 : i32
    scf.if %11 {
      %c0_10 = arith.constant 0 : index
      %c0_11 = arith.constant 0 : index
      %12 = vector.load %arg7[%c0_10, %c0_11] : memref<32x128xf32, #tpu.memory_space<vmem>>, vector<32x128xf32>
      %c0_12 = arith.constant 0 : index
      %c0_13 = arith.constant 0 : index
      %13 = vector.load %arg5[%c0_12, %c0_13] : memref<1x128xf32, #tpu.memory_space<vmem>>, vector<1x128xf32>
      %14 = vector.broadcast %13 : vector<1x128xf32> to vector<32x128xf32>
      %15 = arith.addf %12, %14 : vector<32x128xf32>
      %16 = arith.truncf %15 : vector<32x128xf32> to vector<32x128xbf16>
      %c0_14 = arith.constant 0 : index
      %c0_15 = arith.constant 0 : index
      %17 = vector.load %arg6[%c0_14, %c0_15] : memref<32x128xbf16, #tpu.memory_space<vmem>>, vector<32x128xbf16>
      tpu.vector_store %arg6[%c0_14, %c0_15], %16 {strides = array<i32>} : memref<32x128xbf16, #tpu.memory_space<vmem>>, vector<32x128xbf16>,
    } else {
    }
    return
  }
  func.func @transform_0(%arg0: i32, %arg1: i32, %arg2: i32) -> (i32, i32) {
    %c0_i32 = arith.constant 0 : i32
    return %arg0, %arg2 : i32, i32
  }
  func.func @transform_1(%arg0: i32, %arg1: i32, %arg2: i32) -> (i32, i32) {
    %c0_i32 = arith.constant 0 : i32
    return %arg2, %arg1 : i32, i32
  }
  func.func @transform_2(%arg0: i32, %arg1: i32, %arg2: i32) -> (i32, i32) {
    %c0_i32 = arith.constant 0 : i32
    %c0_i32_0 = arith.constant 0 : i32
    return %c0_i32, %arg1 : i32, i32
  }
  func.func @transform_3(%arg0: i32, %arg1: i32, %arg2: i32) -> (i32, i32) {
    %c0_i32 = arith.constant 0 : i32
    return %arg0, %arg1 : i32, i32
  }
}

module attributes {stable_mosaic.version = 11 : i64} {
  func.func @kernel(%arg0: i32, %arg1: i32, %arg2: memref<1x24x96xbf16, #tpu.memory_space<vmem>>, %arg3: memref<1x24x96xbf16, #tpu.memory_space<vmem>>, %arg4: memref<1x24x32xbf16, #tpu.memory_space<vmem>>) attributes {dimension_semantics = [#tpu.dimension_semantics<parallel>, #tpu.dimension_semantics<parallel>], iteration_bounds = array<i64: 2, 1>, scalar_prefetch = 0 : i64, scratch_operands = 0 : i64, tpu.core_type = #tpu.core_type<tc>, window_params = [{transform_indices = @transform_0, window_bounds = array<i64: 1, 24, 96>}, {transform_indices = @transform_1, window_bounds = array<i64: 1, 24, 96>}, {transform_indices = @transform_2, window_bounds = array<i64: 1, 24, 32>}]} {
    %0 = tpu.iota {dimensions = array<i32: 1>} : vector<1x24xi32>
    %c17_i32 = arith.constant 17 : i32
    %1 = vector.broadcast %c17_i32 : i32 to vector<1x24xi32>
    %2 = arith.cmpi slt, %0, %1 : vector<1x24xi32>
    %cst = arith.constant 0.000000e+00 : f32
    %cst_0 = arith.constant -1.000000e+30 : f32
    %3 = vector.broadcast %cst : f32 to vector<1x24xf32>
    %4 = vector.broadcast %cst_0 : f32 to vector<1x24xf32>
    %5 = arith.select %2, %3, %4 : vector<1x24xi1>, vector<1x24xf32>
    %c0 = arith.constant 0 : index
    %c0_1 = arith.constant 0 : index
    %c0_2 = arith.constant 0 : index
    %6 = vector.load %arg2[%c0, %c0_1, %c0_2] : memref<1x24x96xbf16, #tpu.memory_space<vmem>>, vector<1x24x8xbf16>
    %7 = vector.shape_cast %6 : vector<1x24x8xbf16> to vector<24x8xbf16>
    %c0_3 = arith.constant 0 : index
    %c0_4 = arith.constant 0 : index
    %c32 = arith.constant 32 : index
    %8 = vector.load %arg3[%c0_3, %c0_4, %c32] : memref<1x24x96xbf16, #tpu.memory_space<vmem>>, vector<1x24x8xbf16>
    %9 = vector.shape_cast %8 : vector<1x24x8xbf16> to vector<24x8xbf16>
    %c0_5 = arith.constant 0 : index
    %c0_6 = arith.constant 0 : index
    %c64 = arith.constant 64 : index
    %10 = vector.load %arg3[%c0_5, %c0_6, %c64] : memref<1x24x96xbf16, #tpu.memory_space<vmem>>, vector<1x24x8xbf16>
    %11 = vector.shape_cast %10 : vector<1x24x8xbf16> to vector<24x8xbf16>
    %cst_7 = arith.constant dense<0.000000e+00> : vector<24x24xf32>
    %12 = tpu.matmul %7, %9, %cst_7 {dimension_numbers = #tpu.dot_dimension_numbers<[1], [1], [0], [0], [0, 0, 1, 0], [], []>} : vector<24x8xbf16>, vector<24x8xbf16>, vector<24x24xf32> -> vector<24x24xf32>
    %13 = vector.broadcast %5 : vector<1x24xf32> to vector<24x24xf32>
    %14 = arith.addf %12, %13 : vector<24x24xf32>
    %cst_8 = arith.constant dense<0xFF800000> : vector<24xf32>
    %15 = vector.multi_reduction <maximumf>, %14, %cst_8 [1] : vector<24x24xf32> to vector<24xf32>
    %16 = vector.shape_cast %15 : vector<24xf32> to vector<24x1xf32>
    %17 = vector.broadcast %16 : vector<24x1xf32> to vector<24x24xf32>
    %18 = arith.subf %14, %17 : vector<24x24xf32>
    %19 = math.exp %18 : vector<24x24xf32>
    %cst_9 = arith.constant dense<0.000000e+00> : vector<24xf32>
    %20 = vector.multi_reduction <add>, %19, %cst_9 [1] : vector<24x24xf32> to vector<24xf32>
    %21 = vector.shape_cast %20 : vector<24xf32> to vector<24x1xf32>
    %22 = arith.truncf %19 : vector<24x24xf32> to vector<24x24xbf16>
    %cst_10 = arith.constant dense<0.000000e+00> : vector<24x8xf32>
    %23 = tpu.matmul %22, %11, %cst_10 {dimension_numbers = #tpu.dot_dimension_numbers<[1], [0], [0], [1], [0, 0, 1, 1], [], []>} : vector<24x24xbf16>, vector<24x8xbf16>, vector<24x8xf32> -> vector<24x8xf32>
    %24 = vector.broadcast %21 : vector<24x1xf32> to vector<24x8xf32>
    %25 = arith.divf %23, %24 : vector<24x8xf32>
    %c0_11 = arith.constant 0 : index
    %c0_12 = arith.constant 0 : index
    %c8 = arith.constant 8 : index
    %26 = vector.load %arg2[%c0_11, %c0_12, %c8] : memref<1x24x96xbf16, #tpu.memory_space<vmem>>, vector<1x24x8xbf16>
    %27 = vector.shape_cast %26 : vector<1x24x8xbf16> to vector<24x8xbf16>
    %c0_13 = arith.constant 0 : index
    %c0_14 = arith.constant 0 : index
    %c40 = arith.constant 40 : index
    %28 = vector.load %arg3[%c0_13, %c0_14, %c40] : memref<1x24x96xbf16, #tpu.memory_space<vmem>>, vector<1x24x8xbf16>
    %29 = vector.shape_cast %28 : vector<1x24x8xbf16> to vector<24x8xbf16>
    %c0_15 = arith.constant 0 : index
    %c0_16 = arith.constant 0 : index
    %c72 = arith.constant 72 : index
    %30 = vector.load %arg3[%c0_15, %c0_16, %c72] : memref<1x24x96xbf16, #tpu.memory_space<vmem>>, vector<1x24x8xbf16>
    %31 = vector.shape_cast %30 : vector<1x24x8xbf16> to vector<24x8xbf16>
    %cst_17 = arith.constant dense<0.000000e+00> : vector<24x24xf32>
    %32 = tpu.matmul %27, %29, %cst_17 {dimension_numbers = #tpu.dot_dimension_numbers<[1], [1], [0], [0], [0, 0, 1, 0], [], []>} : vector<24x8xbf16>, vector<24x8xbf16>, vector<24x24xf32> -> vector<24x24xf32>
    %33 = vector.broadcast %5 : vector<1x24xf32> to vector<24x24xf32>
    %34 = arith.addf %32, %33 : vector<24x24xf32>
    %cst_18 = arith.constant dense<0xFF800000> : vector<24xf32>
    %35 = vector.multi_reduction <maximumf>, %34, %cst_18 [1] : vector<24x24xf32> to vector<24xf32>
    %36 = vector.shape_cast %35 : vector<24xf32> to vector<24x1xf32>
    %37 = vector.broadcast %36 : vector<24x1xf32> to vector<24x24xf32>
    %38 = arith.subf %34, %37 : vector<24x24xf32>
    %39 = math.exp %38 : vector<24x24xf32>
    %cst_19 = arith.constant dense<0.000000e+00> : vector<24xf32>
    %40 = vector.multi_reduction <add>, %39, %cst_19 [1] : vector<24x24xf32> to vector<24xf32>
    %41 = vector.shape_cast %40 : vector<24xf32> to vector<24x1xf32>
    %42 = arith.truncf %39 : vector<24x24xf32> to vector<24x24xbf16>
    %cst_20 = arith.constant dense<0.000000e+00> : vector<24x8xf32>
    %43 = tpu.matmul %42, %31, %cst_20 {dimension_numbers = #tpu.dot_dimension_numbers<[1], [0], [0], [1], [0, 0, 1, 1], [], []>} : vector<24x24xbf16>, vector<24x8xbf16>, vector<24x8xf32> -> vector<24x8xf32>
    %44 = vector.broadcast %41 : vector<24x1xf32> to vector<24x8xf32>
    %45 = arith.divf %43, %44 : vector<24x8xf32>
    %c0_21 = arith.constant 0 : index
    %c0_22 = arith.constant 0 : index
    %c16 = arith.constant 16 : index
    %46 = vector.load %arg2[%c0_21, %c0_22, %c16] : memref<1x24x96xbf16, #tpu.memory_space<vmem>>, vector<1x24x8xbf16>
    %47 = vector.shape_cast %46 : vector<1x24x8xbf16> to vector<24x8xbf16>
    %c0_23 = arith.constant 0 : index
    %c0_24 = arith.constant 0 : index
    %c48 = arith.constant 48 : index
    %48 = vector.load %arg3[%c0_23, %c0_24, %c48] : memref<1x24x96xbf16, #tpu.memory_space<vmem>>, vector<1x24x8xbf16>
    %49 = vector.shape_cast %48 : vector<1x24x8xbf16> to vector<24x8xbf16>
    %c0_25 = arith.constant 0 : index
    %c0_26 = arith.constant 0 : index
    %c80 = arith.constant 80 : index
    %50 = vector.load %arg3[%c0_25, %c0_26, %c80] : memref<1x24x96xbf16, #tpu.memory_space<vmem>>, vector<1x24x8xbf16>
    %51 = vector.shape_cast %50 : vector<1x24x8xbf16> to vector<24x8xbf16>
    %cst_27 = arith.constant dense<0.000000e+00> : vector<24x24xf32>
    %52 = tpu.matmul %47, %49, %cst_27 {dimension_numbers = #tpu.dot_dimension_numbers<[1], [1], [0], [0], [0, 0, 1, 0], [], []>} : vector<24x8xbf16>, vector<24x8xbf16>, vector<24x24xf32> -> vector<24x24xf32>
    %53 = vector.broadcast %5 : vector<1x24xf32> to vector<24x24xf32>
    %54 = arith.addf %52, %53 : vector<24x24xf32>
    %cst_28 = arith.constant dense<0xFF800000> : vector<24xf32>
    %55 = vector.multi_reduction <maximumf>, %54, %cst_28 [1] : vector<24x24xf32> to vector<24xf32>
    %56 = vector.shape_cast %55 : vector<24xf32> to vector<24x1xf32>
    %57 = vector.broadcast %56 : vector<24x1xf32> to vector<24x24xf32>
    %58 = arith.subf %54, %57 : vector<24x24xf32>
    %59 = math.exp %58 : vector<24x24xf32>
    %cst_29 = arith.constant dense<0.000000e+00> : vector<24xf32>
    %60 = vector.multi_reduction <add>, %59, %cst_29 [1] : vector<24x24xf32> to vector<24xf32>
    %61 = vector.shape_cast %60 : vector<24xf32> to vector<24x1xf32>
    %62 = arith.truncf %59 : vector<24x24xf32> to vector<24x24xbf16>
    %cst_30 = arith.constant dense<0.000000e+00> : vector<24x8xf32>
    %63 = tpu.matmul %62, %51, %cst_30 {dimension_numbers = #tpu.dot_dimension_numbers<[1], [0], [0], [1], [0, 0, 1, 1], [], []>} : vector<24x24xbf16>, vector<24x8xbf16>, vector<24x8xf32> -> vector<24x8xf32>
    %64 = vector.broadcast %61 : vector<24x1xf32> to vector<24x8xf32>
    %65 = arith.divf %63, %64 : vector<24x8xf32>
    %c0_31 = arith.constant 0 : index
    %c0_32 = arith.constant 0 : index
    %c24 = arith.constant 24 : index
    %66 = vector.load %arg2[%c0_31, %c0_32, %c24] : memref<1x24x96xbf16, #tpu.memory_space<vmem>>, vector<1x24x8xbf16>
    %67 = vector.shape_cast %66 : vector<1x24x8xbf16> to vector<24x8xbf16>
    %c0_33 = arith.constant 0 : index
    %c0_34 = arith.constant 0 : index
    %c56 = arith.constant 56 : index
    %68 = vector.load %arg3[%c0_33, %c0_34, %c56] : memref<1x24x96xbf16, #tpu.memory_space<vmem>>, vector<1x24x8xbf16>
    %69 = vector.shape_cast %68 : vector<1x24x8xbf16> to vector<24x8xbf16>
    %c0_35 = arith.constant 0 : index
    %c0_36 = arith.constant 0 : index
    %c88 = arith.constant 88 : index
    %70 = vector.load %arg3[%c0_35, %c0_36, %c88] : memref<1x24x96xbf16, #tpu.memory_space<vmem>>, vector<1x24x8xbf16>
    %71 = vector.shape_cast %70 : vector<1x24x8xbf16> to vector<24x8xbf16>
    %cst_37 = arith.constant dense<0.000000e+00> : vector<24x24xf32>
    %72 = tpu.matmul %67, %69, %cst_37 {dimension_numbers = #tpu.dot_dimension_numbers<[1], [1], [0], [0], [0, 0, 1, 0], [], []>} : vector<24x8xbf16>, vector<24x8xbf16>, vector<24x24xf32> -> vector<24x24xf32>
    %73 = vector.broadcast %5 : vector<1x24xf32> to vector<24x24xf32>
    %74 = arith.addf %72, %73 : vector<24x24xf32>
    %cst_38 = arith.constant dense<0xFF800000> : vector<24xf32>
    %75 = vector.multi_reduction <maximumf>, %74, %cst_38 [1] : vector<24x24xf32> to vector<24xf32>
    %76 = vector.shape_cast %75 : vector<24xf32> to vector<24x1xf32>
    %77 = vector.broadcast %76 : vector<24x1xf32> to vector<24x24xf32>
    %78 = arith.subf %74, %77 : vector<24x24xf32>
    %79 = math.exp %78 : vector<24x24xf32>
    %cst_39 = arith.constant dense<0.000000e+00> : vector<24xf32>
    %80 = vector.multi_reduction <add>, %79, %cst_39 [1] : vector<24x24xf32> to vector<24xf32>
    %81 = vector.shape_cast %80 : vector<24xf32> to vector<24x1xf32>
    %82 = arith.truncf %79 : vector<24x24xf32> to vector<24x24xbf16>
    %cst_40 = arith.constant dense<0.000000e+00> : vector<24x8xf32>
    %83 = tpu.matmul %82, %71, %cst_40 {dimension_numbers = #tpu.dot_dimension_numbers<[1], [0], [0], [1], [0, 0, 1, 1], [], []>} : vector<24x24xbf16>, vector<24x8xbf16>, vector<24x8xf32> -> vector<24x8xf32>
    %84 = vector.broadcast %81 : vector<24x1xf32> to vector<24x8xf32>
    %85 = arith.divf %83, %84 : vector<24x8xf32>
    %86 = tpu.concatenate %25, %45, %65, %85 in 1 : vector<24x8xf32>, vector<24x8xf32>, vector<24x8xf32>, vector<24x8xf32> -> vector<24x32xf32>
    %87 = arith.truncf %86 : vector<24x32xf32> to vector<24x32xbf16>
    %c0_41 = arith.constant 0 : index
    %c0_42 = arith.constant 0 : index
    %c0_43 = arith.constant 0 : index
    %88 = vector.load %arg4[%c0_41, %c0_42, %c0_43] : memref<1x24x32xbf16, #tpu.memory_space<vmem>>, vector<1x24x32xbf16>
    %89 = vector.shape_cast %88 : vector<1x24x32xbf16> to vector<24x32xbf16>
    %90 = vector.shape_cast %87 : vector<24x32xbf16> to vector<1x24x32xbf16>
    tpu.vector_store %arg4[%c0_41, %c0_42, %c0_43], %90 {strides = array<i32>} : memref<1x24x32xbf16, #tpu.memory_space<vmem>>, vector<1x24x32xbf16>,
    return
  }
  func.func @transform_0(%arg0: i32, %arg1: i32) -> (i32, i32, i32) {
    %c0_i32 = arith.constant 0 : i32
    %c0_i32_0 = arith.constant 0 : i32
    return %arg0, %arg1, %c0_i32 : i32, i32, i32
  }
  func.func @transform_1(%arg0: i32, %arg1: i32) -> (i32, i32, i32) {
    %c0_i32 = arith.constant 0 : i32
    %c0_i32_0 = arith.constant 0 : i32
    %c0_i32_1 = arith.constant 0 : i32
    return %arg0, %c0_i32, %c0_i32_0 : i32, i32, i32
  }
  func.func @transform_2(%arg0: i32, %arg1: i32) -> (i32, i32, i32) {
    %c0_i32 = arith.constant 0 : i32
    %c0_i32_0 = arith.constant 0 : i32
    return %arg0, %arg1, %c0_i32 : i32, i32, i32
  }
}

module attributes {stable_mosaic.version = 11 : i64} {
  func.func @kernel(%arg0: i32, %arg1: i32, %arg2: i32, %arg3: memref<48x32xbf16, #tpu.memory_space<vmem>>, %arg4: memref<32x128xbf16, #tpu.memory_space<vmem>>, %arg5: memref<1x128xf32, #tpu.memory_space<vmem>>, %arg6: memref<48x128xbf16, #tpu.memory_space<vmem>>, %arg7: memref<48x128xbf16, #tpu.memory_space<vmem>>, %arg8: memref<48x128xf32, #tpu.memory_space<vmem>>) attributes {dimension_semantics = [#tpu.dimension_semantics<parallel>, #tpu.dimension_semantics<parallel>, #tpu.dimension_semantics<arbitrary>], iteration_bounds = array<i64: 1, 1, 1>, scalar_prefetch = 0 : i64, scratch_operands = 1 : i64, tpu.core_type = #tpu.core_type<tc>, window_params = [{transform_indices = @transform_0, window_bounds = array<i64: 48, 32>}, {transform_indices = @transform_1, window_bounds = array<i64: 32, 128>}, {transform_indices = @transform_2, window_bounds = array<i64: 1, 128>}, {transform_indices = @transform_3, window_bounds = array<i64: 48, 128>}, {transform_indices = @transform_4, window_bounds = array<i64: 48, 128>}]} {
    %c0_i32 = arith.constant 0 : i32
    %0 = arith.cmpi eq, %arg2, %c0_i32 : i32
    %1 = arith.extui %0 : i1 to i32
    %c0_i32_0 = arith.constant 0 : i32
    %2 = arith.cmpi ne, %1, %c0_i32_0 : i32
    scf.if %2 {
      %cst_10 = arith.constant 0.000000e+00 : f32
      %12 = vector.broadcast %cst_10 : f32 to vector<48x128xf32>
      %c0_11 = arith.constant 0 : index
      %c0_12 = arith.constant 0 : index
      %13 = vector.load %arg8[%c0_11, %c0_12] : memref<48x128xf32, #tpu.memory_space<vmem>>, vector<48x128xf32>
      tpu.vector_store %arg8[%c0_11, %c0_12], %12 {strides = array<i32>} : memref<48x128xf32, #tpu.memory_space<vmem>>, vector<48x128xf32>,
    } else {
    }
    %c0 = arith.constant 0 : index
    %c0_1 = arith.constant 0 : index
    %3 = vector.load %arg3[%c0, %c0_1] : memref<48x32xbf16, #tpu.memory_space<vmem>>, vector<48x32xbf16>
    %c0_2 = arith.constant 0 : index
    %c0_3 = arith.constant 0 : index
    %4 = vector.load %arg8[%c0_2, %c0_3] : memref<48x128xf32, #tpu.memory_space<vmem>>, vector<48x128xf32>
    %c0_4 = arith.constant 0 : index
    %c0_5 = arith.constant 0 : index
    %5 = vector.load %arg4[%c0_4, %c0_5] : memref<32x128xbf16, #tpu.memory_space<vmem>>, vector<32x128xbf16>
    %cst = arith.constant dense<0.000000e+00> : vector<48x128xf32>
    %6 = tpu.matmul %3, %5, %cst {dimension_numbers = #tpu.dot_dimension_numbers<[1], [0], [0], [1], [0, 0, 1, 1], [], []>} : vector<48x32xbf16>, vector<32x128xbf16>, vector<48x128xf32> -> vector<48x128xf32>
    %7 = arith.addf %4, %6 : vector<48x128xf32>
    %c0_6 = arith.constant 0 : index
    %c0_7 = arith.constant 0 : index
    %8 = vector.load %arg8[%c0_6, %c0_7] : memref<48x128xf32, #tpu.memory_space<vmem>>, vector<48x128xf32>
    tpu.vector_store %arg8[%c0_6, %c0_7], %7 {strides = array<i32>} : memref<48x128xf32, #tpu.memory_space<vmem>>, vector<48x128xf32>,
    %c0_i32_8 = arith.constant 0 : i32
    %9 = arith.cmpi eq, %arg2, %c0_i32_8 : i32
    %10 = arith.extui %9 : i1 to i32
    %c0_i32_9 = arith.constant 0 : i32
    %11 = arith.cmpi ne, %10, %c0_i32_9 : i32
    scf.if %11 {
      %c0_10 = arith.constant 0 : index
      %c0_11 = arith.constant 0 : index
      %12 = vector.load %arg8[%c0_10, %c0_11] : memref<48x128xf32, #tpu.memory_space<vmem>>, vector<48x128xf32>
      %c0_12 = arith.constant 0 : index
      %c0_13 = arith.constant 0 : index
      %13 = vector.load %arg5[%c0_12, %c0_13] : memref<1x128xf32, #tpu.memory_space<vmem>>, vector<1x128xf32>
      %14 = vector.broadcast %13 : vector<1x128xf32> to vector<48x128xf32>
      %15 = arith.addf %12, %14 : vector<48x128xf32>
      %c0_14 = arith.constant 0 : index
      %c0_15 = arith.constant 0 : index
      %16 = vector.load %arg6[%c0_14, %c0_15] : memref<48x128xbf16, #tpu.memory_space<vmem>>, vector<48x128xbf16>
      %17 = arith.extf %16 : vector<48x128xbf16> to vector<48x128xf32>
      %18 = arith.addf %15, %17 : vector<48x128xf32>
      %19 = arith.truncf %18 : vector<48x128xf32> to vector<48x128xbf16>
      %c0_16 = arith.constant 0 : index
      %c0_17 = arith.constant 0 : index
      %20 = vector.load %arg7[%c0_16, %c0_17] : memref<48x128xbf16, #tpu.memory_space<vmem>>, vector<48x128xbf16>
      tpu.vector_store %arg7[%c0_16, %c0_17], %19 {strides = array<i32>} : memref<48x128xbf16, #tpu.memory_space<vmem>>, vector<48x128xbf16>,
    } else {
    }
    return
  }
  func.func @transform_0(%arg0: i32, %arg1: i32, %arg2: i32) -> (i32, i32) {
    %c0_i32 = arith.constant 0 : i32
    return %arg0, %arg2 : i32, i32
  }
  func.func @transform_1(%arg0: i32, %arg1: i32, %arg2: i32) -> (i32, i32) {
    %c0_i32 = arith.constant 0 : i32
    return %arg2, %arg1 : i32, i32
  }
  func.func @transform_2(%arg0: i32, %arg1: i32, %arg2: i32) -> (i32, i32) {
    %c0_i32 = arith.constant 0 : i32
    %c0_i32_0 = arith.constant 0 : i32
    return %c0_i32, %arg1 : i32, i32
  }
  func.func @transform_3(%arg0: i32, %arg1: i32, %arg2: i32) -> (i32, i32) {
    %c0_i32 = arith.constant 0 : i32
    return %arg0, %arg1 : i32, i32
  }
  func.func @transform_4(%arg0: i32, %arg1: i32, %arg2: i32) -> (i32, i32) {
    %c0_i32 = arith.constant 0 : i32
    return %arg0, %arg1 : i32, i32
  }
}

module attributes {stable_mosaic.version = 11 : i64} {
  func.func @kernel(%arg0: i32, %arg1: i32, %arg2: i32, %arg3: memref<48x32xbf16, #tpu.memory_space<vmem>>, %arg4: memref<32x128xbf16, #tpu.memory_space<vmem>>, %arg5: memref<1x128xf32, #tpu.memory_space<vmem>>, %arg6: memref<1x32xf32, #tpu.memory_space<vmem>>, %arg7: memref<1x32xf32, #tpu.memory_space<vmem>>, %arg8: memref<48x128xbf16, #tpu.memory_space<vmem>>, %arg9: memref<48x128xf32, #tpu.memory_space<vmem>>) attributes {dimension_semantics = [#tpu.dimension_semantics<parallel>, #tpu.dimension_semantics<parallel>, #tpu.dimension_semantics<arbitrary>], iteration_bounds = array<i64: 1, 1, 1>, scalar_prefetch = 0 : i64, scratch_operands = 1 : i64, tpu.core_type = #tpu.core_type<tc>, window_params = [{transform_indices = @transform_0, window_bounds = array<i64: 48, 32>}, {transform_indices = @transform_1, window_bounds = array<i64: 32, 128>}, {transform_indices = @transform_2, window_bounds = array<i64: 1, 128>}, {pipeline_mode = #tpu.pipeline_mode<synchronous>, transform_indices = @transform_3, window_bounds = array<i64: 1, 32>}, {pipeline_mode = #tpu.pipeline_mode<synchronous>, transform_indices = @transform_4, window_bounds = array<i64: 1, 32>}, {transform_indices = @transform_5, window_bounds = array<i64: 48, 128>}]} {
    %c0_i32 = arith.constant 0 : i32
    %0 = arith.cmpi eq, %arg2, %c0_i32 : i32
    %1 = arith.extui %0 : i1 to i32
    %c0_i32_0 = arith.constant 0 : i32
    %2 = arith.cmpi ne, %1, %c0_i32_0 : i32
    scf.if %2 {
      %cst_19 = arith.constant 0.000000e+00 : f32
      %38 = vector.broadcast %cst_19 : f32 to vector<48x128xf32>
      %c0_20 = arith.constant 0 : index
      %c0_21 = arith.constant 0 : index
      %39 = vector.load %arg9[%c0_20, %c0_21] : memref<48x128xf32, #tpu.memory_space<vmem>>, vector<48x128xf32>
      tpu.vector_store %arg9[%c0_20, %c0_21], %38 {strides = array<i32>} : memref<48x128xf32, #tpu.memory_space<vmem>>, vector<48x128xf32>,
    } else {
    }
    %c0 = arith.constant 0 : index
    %c0_1 = arith.constant 0 : index
    %3 = vector.load %arg3[%c0, %c0_1] : memref<48x32xbf16, #tpu.memory_space<vmem>>, vector<48x32xbf16>
    %4 = arith.extf %3 : vector<48x32xbf16> to vector<48x32xf32>
    %cst = arith.constant dense<0.000000e+00> : vector<48xf32>
    %5 = vector.multi_reduction <add>, %4, %cst [1] : vector<48x32xf32> to vector<48xf32>
    %6 = vector.shape_cast %5 : vector<48xf32> to vector<48x1xf32>
    %cst_2 = arith.constant 3.200000e+01 : f32
    %7 = vector.broadcast %cst_2 : f32 to vector<48x1xf32>
    %8 = arith.divf %6, %7 : vector<48x1xf32>
    %9 = vector.broadcast %8 : vector<48x1xf32> to vector<48x32xf32>
    %10 = arith.subf %4, %9 : vector<48x32xf32>
    %11 = arith.mulf %10, %10 : vector<48x32xf32>
    %cst_3 = arith.constant dense<0.000000e+00> : vector<48xf32>
    %12 = vector.multi_reduction <add>, %11, %cst_3 [1] : vector<48x32xf32> to vector<48xf32>
    %13 = vector.shape_cast %12 : vector<48xf32> to vector<48x1xf32>
    %cst_4 = arith.constant 3.200000e+01 : f32
    %14 = vector.broadcast %cst_4 : f32 to vector<48x1xf32>
    %15 = arith.divf %13, %14 : vector<48x1xf32>
    %16 = vector.broadcast %8 : vector<48x1xf32> to vector<48x32xf32>
    %17 = arith.subf %4, %16 : vector<48x32xf32>
    %cst_5 = arith.constant 9.99999997E-7 : f32
    %18 = vector.broadcast %cst_5 : f32 to vector<48x1xf32>
    %19 = arith.addf %15, %18 : vector<48x1xf32>
    %20 = math.rsqrt %19 : vector<48x1xf32>
    %21 = vector.broadcast %20 : vector<48x1xf32> to vector<48x32xf32>
    %22 = arith.mulf %17, %21 : vector<48x32xf32>
    %c0_6 = arith.constant 0 : index
    %c0_7 = arith.constant 0 : index
    %23 = vector.load %arg6[%c0_6, %c0_7] : memref<1x32xf32, #tpu.memory_space<vmem>>, vector<1x32xf32>
    %24 = vector.broadcast %23 : vector<1x32xf32> to vector<48x32xf32>
    %25 = arith.mulf %22, %24 : vector<48x32xf32>
    %c0_8 = arith.constant 0 : index
    %c0_9 = arith.constant 0 : index
    %26 = vector.load %arg7[%c0_8, %c0_9] : memref<1x32xf32, #tpu.memory_space<vmem>>, vector<1x32xf32>
    %27 = vector.broadcast %26 : vector<1x32xf32> to vector<48x32xf32>
    %28 = arith.addf %25, %27 : vector<48x32xf32>
    %29 = arith.truncf %28 : vector<48x32xf32> to vector<48x32xbf16>
    %c0_10 = arith.constant 0 : index
    %c0_11 = arith.constant 0 : index
    %30 = vector.load %arg9[%c0_10, %c0_11] : memref<48x128xf32, #tpu.memory_space<vmem>>, vector<48x128xf32>
    %c0_12 = arith.constant 0 : index
    %c0_13 = arith.constant 0 : index
    %31 = vector.load %arg4[%c0_12, %c0_13] : memref<32x128xbf16, #tpu.memory_space<vmem>>, vector<32x128xbf16>
    %cst_14 = arith.constant dense<0.000000e+00> : vector<48x128xf32>
    %32 = tpu.matmul %29, %31, %cst_14 {dimension_numbers = #tpu.dot_dimension_numbers<[1], [0], [0], [1], [0, 0, 1, 1], [], []>} : vector<48x32xbf16>, vector<32x128xbf16>, vector<48x128xf32> -> vector<48x128xf32>
    %33 = arith.addf %30, %32 : vector<48x128xf32>
    %c0_15 = arith.constant 0 : index
    %c0_16 = arith.constant 0 : index
    %34 = vector.load %arg9[%c0_15, %c0_16] : memref<48x128xf32, #tpu.memory_space<vmem>>, vector<48x128xf32>
    tpu.vector_store %arg9[%c0_15, %c0_16], %33 {strides = array<i32>} : memref<48x128xf32, #tpu.memory_space<vmem>>, vector<48x128xf32>,
    %c0_i32_17 = arith.constant 0 : i32
    %35 = arith.cmpi eq, %arg2, %c0_i32_17 : i32
    %36 = arith.extui %35 : i1 to i32
    %c0_i32_18 = arith.constant 0 : i32
    %37 = arith.cmpi ne, %36, %c0_i32_18 : i32
    scf.if %37 {
      %c0_19 = arith.constant 0 : index
      %c0_20 = arith.constant 0 : index
      %38 = vector.load %arg9[%c0_19, %c0_20] : memref<48x128xf32, #tpu.memory_space<vmem>>, vector<48x128xf32>
      %c0_21 = arith.constant 0 : index
      %c0_22 = arith.constant 0 : index
      %39 = vector.load %arg5[%c0_21, %c0_22] : memref<1x128xf32, #tpu.memory_space<vmem>>, vector<1x128xf32>
      %40 = vector.broadcast %39 : vector<1x128xf32> to vector<48x128xf32>
      %41 = arith.addf %38, %40 : vector<48x128xf32>
      %42 = arith.mulf %41, %41 : vector<48x128xf32>
      %43 = arith.mulf %41, %42 : vector<48x128xf32>
      %cst_23 = arith.constant 4.471500e-02 : f32
      %44 = vector.broadcast %cst_23 : f32 to vector<48x128xf32>
      %45 = arith.mulf %44, %43 : vector<48x128xf32>
      %46 = arith.addf %41, %45 : vector<48x128xf32>
      %cst_24 = arith.constant 0.797884583 : f32
      %47 = vector.broadcast %cst_24 : f32 to vector<48x128xf32>
      %48 = arith.mulf %47, %46 : vector<48x128xf32>
      %49 = math.tanh %48 : vector<48x128xf32>
      %cst_25 = arith.constant 1.000000e+00 : f32
      %50 = vector.broadcast %cst_25 : f32 to vector<48x128xf32>
      %51 = arith.addf %50, %49 : vector<48x128xf32>
      %cst_26 = arith.constant 5.000000e-01 : f32
      %52 = vector.broadcast %cst_26 : f32 to vector<48x128xf32>
      %53 = arith.mulf %52, %51 : vector<48x128xf32>
      %54 = arith.mulf %41, %53 : vector<48x128xf32>
      %55 = arith.truncf %54 : vector<48x128xf32> to vector<48x128xbf16>
      %c0_27 = arith.constant 0 : index
      %c0_28 = arith.constant 0 : index
      %56 = vector.load %arg8[%c0_27, %c0_28] : memref<48x128xbf16, #tpu.memory_space<vmem>>, vector<48x128xbf16>
      tpu.vector_store %arg8[%c0_27, %c0_28], %55 {strides = array<i32>} : memref<48x128xbf16, #tpu.memory_space<vmem>>, vector<48x128xbf16>,
    } else {
    }
    return
  }
  func.func @transform_0(%arg0: i32, %arg1: i32, %arg2: i32) -> (i32, i32) {
    %c0_i32 = arith.constant 0 : i32
    return %arg0, %arg2 : i32, i32
  }
  func.func @transform_1(%arg0: i32, %arg1: i32, %arg2: i32) -> (i32, i32) {
    %c0_i32 = arith.constant 0 : i32
    return %arg2, %arg1 : i32, i32
  }
  func.func @transform_2(%arg0: i32, %arg1: i32, %arg2: i32) -> (i32, i32) {
    %c0_i32 = arith.constant 0 : i32
    %c0_i32_0 = arith.constant 0 : i32
    return %c0_i32, %arg1 : i32, i32
  }
  func.func @transform_3(%arg0: i32, %arg1: i32, %arg2: i32) -> (i32, i32) {
    %c0_i32 = arith.constant 0 : i32
    %c0_i32_0 = arith.constant 0 : i32
    %c0_i32_1 = arith.constant 0 : i32
    return %c0_i32, %c0_i32_0 : i32, i32
  }
  func.func @transform_4(%arg0: i32, %arg1: i32, %arg2: i32) -> (i32, i32) {
    %c0_i32 = arith.constant 0 : i32
    %c0_i32_0 = arith.constant 0 : i32
    %c0_i32_1 = arith.constant 0 : i32
    return %c0_i32, %c0_i32_0 : i32, i32
  }
  func.func @transform_5(%arg0: i32, %arg1: i32, %arg2: i32) -> (i32, i32) {
    %c0_i32 = arith.constant 0 : i32
    return %arg0, %arg1 : i32, i32
  }
}

module attributes {stable_mosaic.version = 11 : i64} {
  func.func @kernel(%arg0: i32, %arg1: i32, %arg2: i32, %arg3: memref<48x64xbf16, #tpu.memory_space<vmem>>, %arg4: memref<64x128xbf16, #tpu.memory_space<vmem>>, %arg5: memref<1x128xf32, #tpu.memory_space<vmem>>, %arg6: memref<48x128xbf16, #tpu.memory_space<vmem>>, %arg7: memref<48x128xbf16, #tpu.memory_space<vmem>>, %arg8: memref<48x128xf32, #tpu.memory_space<vmem>>) attributes {dimension_semantics = [#tpu.dimension_semantics<parallel>, #tpu.dimension_semantics<parallel>, #tpu.dimension_semantics<arbitrary>], iteration_bounds = array<i64: 1, 1, 1>, scalar_prefetch = 0 : i64, scratch_operands = 1 : i64, tpu.core_type = #tpu.core_type<tc>, window_params = [{transform_indices = @transform_0, window_bounds = array<i64: 48, 64>}, {transform_indices = @transform_1, window_bounds = array<i64: 64, 128>}, {transform_indices = @transform_2, window_bounds = array<i64: 1, 128>}, {transform_indices = @transform_3, window_bounds = array<i64: 48, 128>}, {transform_indices = @transform_4, window_bounds = array<i64: 48, 128>}]} {
    %c0_i32 = arith.constant 0 : i32
    %0 = arith.cmpi eq, %arg2, %c0_i32 : i32
    %1 = arith.extui %0 : i1 to i32
    %c0_i32_0 = arith.constant 0 : i32
    %2 = arith.cmpi ne, %1, %c0_i32_0 : i32
    scf.if %2 {
      %cst_10 = arith.constant 0.000000e+00 : f32
      %12 = vector.broadcast %cst_10 : f32 to vector<48x128xf32>
      %c0_11 = arith.constant 0 : index
      %c0_12 = arith.constant 0 : index
      %13 = vector.load %arg8[%c0_11, %c0_12] : memref<48x128xf32, #tpu.memory_space<vmem>>, vector<48x128xf32>
      tpu.vector_store %arg8[%c0_11, %c0_12], %12 {strides = array<i32>} : memref<48x128xf32, #tpu.memory_space<vmem>>, vector<48x128xf32>,
    } else {
    }
    %c0 = arith.constant 0 : index
    %c0_1 = arith.constant 0 : index
    %3 = vector.load %arg3[%c0, %c0_1] : memref<48x64xbf16, #tpu.memory_space<vmem>>, vector<48x64xbf16>
    %c0_2 = arith.constant 0 : index
    %c0_3 = arith.constant 0 : index
    %4 = vector.load %arg8[%c0_2, %c0_3] : memref<48x128xf32, #tpu.memory_space<vmem>>, vector<48x128xf32>
    %c0_4 = arith.constant 0 : index
    %c0_5 = arith.constant 0 : index
    %5 = vector.load %arg4[%c0_4, %c0_5] : memref<64x128xbf16, #tpu.memory_space<vmem>>, vector<64x128xbf16>
    %cst = arith.constant dense<0.000000e+00> : vector<48x128xf32>
    %6 = tpu.matmul %3, %5, %cst {dimension_numbers = #tpu.dot_dimension_numbers<[1], [0], [0], [1], [0, 0, 1, 1], [], []>} : vector<48x64xbf16>, vector<64x128xbf16>, vector<48x128xf32> -> vector<48x128xf32>
    %7 = arith.addf %4, %6 : vector<48x128xf32>
    %c0_6 = arith.constant 0 : index
    %c0_7 = arith.constant 0 : index
    %8 = vector.load %arg8[%c0_6, %c0_7] : memref<48x128xf32, #tpu.memory_space<vmem>>, vector<48x128xf32>
    tpu.vector_store %arg8[%c0_6, %c0_7], %7 {strides = array<i32>} : memref<48x128xf32, #tpu.memory_space<vmem>>, vector<48x128xf32>,
    %c0_i32_8 = arith.constant 0 : i32
    %9 = arith.cmpi eq, %arg2, %c0_i32_8 : i32
    %10 = arith.extui %9 : i1 to i32
    %c0_i32_9 = arith.constant 0 : i32
    %11 = arith.cmpi ne, %10, %c0_i32_9 : i32
    scf.if %11 {
      %c0_10 = arith.constant 0 : index
      %c0_11 = arith.constant 0 : index
      %12 = vector.load %arg8[%c0_10, %c0_11] : memref<48x128xf32, #tpu.memory_space<vmem>>, vector<48x128xf32>
      %c0_12 = arith.constant 0 : index
      %c0_13 = arith.constant 0 : index
      %13 = vector.load %arg5[%c0_12, %c0_13] : memref<1x128xf32, #tpu.memory_space<vmem>>, vector<1x128xf32>
      %14 = vector.broadcast %13 : vector<1x128xf32> to vector<48x128xf32>
      %15 = arith.addf %12, %14 : vector<48x128xf32>
      %c0_14 = arith.constant 0 : index
      %c0_15 = arith.constant 0 : index
      %16 = vector.load %arg6[%c0_14, %c0_15] : memref<48x128xbf16, #tpu.memory_space<vmem>>, vector<48x128xbf16>
      %17 = arith.extf %16 : vector<48x128xbf16> to vector<48x128xf32>
      %18 = arith.addf %15, %17 : vector<48x128xf32>
      %19 = arith.truncf %18 : vector<48x128xf32> to vector<48x128xbf16>
      %c0_16 = arith.constant 0 : index
      %c0_17 = arith.constant 0 : index
      %20 = vector.load %arg7[%c0_16, %c0_17] : memref<48x128xbf16, #tpu.memory_space<vmem>>, vector<48x128xbf16>
      tpu.vector_store %arg7[%c0_16, %c0_17], %19 {strides = array<i32>} : memref<48x128xbf16, #tpu.memory_space<vmem>>, vector<48x128xbf16>,
    } else {
    }
    return
  }
  func.func @transform_0(%arg0: i32, %arg1: i32, %arg2: i32) -> (i32, i32) {
    %c0_i32 = arith.constant 0 : i32
    return %arg0, %arg2 : i32, i32
  }
  func.func @transform_1(%arg0: i32, %arg1: i32, %arg2: i32) -> (i32, i32) {
    %c0_i32 = arith.constant 0 : i32
    return %arg2, %arg1 : i32, i32
  }
  func.func @transform_2(%arg0: i32, %arg1: i32, %arg2: i32) -> (i32, i32) {
    %c0_i32 = arith.constant 0 : i32
    %c0_i32_0 = arith.constant 0 : i32
    return %c0_i32, %arg1 : i32, i32
  }
  func.func @transform_3(%arg0: i32, %arg1: i32, %arg2: i32) -> (i32, i32) {
    %c0_i32 = arith.constant 0 : i32
    return %arg0, %arg1 : i32, i32
  }
  func.func @transform_4(%arg0: i32, %arg1: i32, %arg2: i32) -> (i32, i32) {
    %c0_i32 = arith.constant 0 : i32
    return %arg0, %arg1 : i32, i32
  }
}

module attributes {stable_mosaic.version = 11 : i64} {
  func.func @kernel(%arg0: i32, %arg1: memref<32x32xbf16, #tpu.memory_space<vmem>>, %arg2: memref<1x32xf32, #tpu.memory_space<vmem>>, %arg3: memref<1x32xf32, #tpu.memory_space<vmem>>, %arg4: memref<1x32xf32, #tpu.memory_space<vmem>>, %arg5: memref<1x32xf32, #tpu.memory_space<vmem>>, %arg6: memref<32x32xbf16, #tpu.memory_space<vmem>>) attributes {dimension_semantics = [#tpu.dimension_semantics<parallel>], iteration_bounds = array<i64: 1>, scalar_prefetch = 0 : i64, scratch_operands = 0 : i64, tpu.core_type = #tpu.core_type<tc>, window_params = [{transform_indices = @transform_0, window_bounds = array<i64: 32, 32>}, {pipeline_mode = #tpu.pipeline_mode<synchronous>, transform_indices = @transform_1, window_bounds = array<i64: 1, 32>}, {pipeline_mode = #tpu.pipeline_mode<synchronous>, transform_indices = @transform_2, window_bounds = array<i64: 1, 32>}, {pipeline_mode = #tpu.pipeline_mode<synchronous>, transform_indices = @transform_3, window_bounds = array<i64: 1, 32>}, {pipeline_mode = #tpu.pipeline_mode<synchronous>, transform_indices = @transform_4, window_bounds = array<i64: 1, 32>}, {transform_indices = @transform_5, window_bounds = array<i64: 32, 32>}]} {
    %c0 = arith.constant 0 : index
    %c0_0 = arith.constant 0 : index
    %0 = vector.load %arg1[%c0, %c0_0] : memref<32x32xbf16, #tpu.memory_space<vmem>>, vector<32x32xbf16>
    %1 = arith.extf %0 : vector<32x32xbf16> to vector<32x32xf32>
    %cst = arith.constant dense<0.000000e+00> : vector<32xf32>
    %2 = vector.multi_reduction <add>, %1, %cst [1] : vector<32x32xf32> to vector<32xf32>
    %3 = vector.shape_cast %2 : vector<32xf32> to vector<32x1xf32>
    %cst_1 = arith.constant 3.200000e+01 : f32
    %4 = vector.broadcast %cst_1 : f32 to vector<32x1xf32>
    %5 = arith.divf %3, %4 : vector<32x1xf32>
    %6 = vector.broadcast %5 : vector<32x1xf32> to vector<32x32xf32>
    %7 = arith.subf %1, %6 : vector<32x32xf32>
    %8 = arith.mulf %7, %7 : vector<32x32xf32>
    %cst_2 = arith.constant dense<0.000000e+00> : vector<32xf32>
    %9 = vector.multi_reduction <add>, %8, %cst_2 [1] : vector<32x32xf32> to vector<32xf32>
    %10 = vector.shape_cast %9 : vector<32xf32> to vector<32x1xf32>
    %cst_3 = arith.constant 3.200000e+01 : f32
    %11 = vector.broadcast %cst_3 : f32 to vector<32x1xf32>
    %12 = arith.divf %10, %11 : vector<32x1xf32>
    %13 = vector.broadcast %5 : vector<32x1xf32> to vector<32x32xf32>
    %14 = arith.subf %1, %13 : vector<32x32xf32>
    %cst_4 = arith.constant 9.99999997E-7 : f32
    %15 = vector.broadcast %cst_4 : f32 to vector<32x1xf32>
    %16 = arith.addf %12, %15 : vector<32x1xf32>
    %17 = math.rsqrt %16 : vector<32x1xf32>
    %18 = vector.broadcast %17 : vector<32x1xf32> to vector<32x32xf32>
    %19 = arith.mulf %14, %18 : vector<32x32xf32>
    %c0_5 = arith.constant 0 : index
    %c0_6 = arith.constant 0 : index
    %20 = vector.load %arg2[%c0_5, %c0_6] : memref<1x32xf32, #tpu.memory_space<vmem>>, vector<1x32xf32>
    %21 = vector.broadcast %20 : vector<1x32xf32> to vector<32x32xf32>
    %22 = arith.mulf %19, %21 : vector<32x32xf32>
    %c0_7 = arith.constant 0 : index
    %c0_8 = arith.constant 0 : index
    %23 = vector.load %arg3[%c0_7, %c0_8] : memref<1x32xf32, #tpu.memory_space<vmem>>, vector<1x32xf32>
    %24 = vector.broadcast %23 : vector<1x32xf32> to vector<32x32xf32>
    %25 = arith.addf %22, %24 : vector<32x32xf32>
    %cst_9 = arith.constant dense<0.000000e+00> : vector<32xf32>
    %26 = vector.multi_reduction <add>, %25, %cst_9 [1] : vector<32x32xf32> to vector<32xf32>
    %27 = vector.shape_cast %26 : vector<32xf32> to vector<32x1xf32>
    %cst_10 = arith.constant 3.200000e+01 : f32
    %28 = vector.broadcast %cst_10 : f32 to vector<32x1xf32>
    %29 = arith.divf %27, %28 : vector<32x1xf32>
    %30 = vector.broadcast %29 : vector<32x1xf32> to vector<32x32xf32>
    %31 = arith.subf %25, %30 : vector<32x32xf32>
    %32 = arith.mulf %31, %31 : vector<32x32xf32>
    %cst_11 = arith.constant dense<0.000000e+00> : vector<32xf32>
    %33 = vector.multi_reduction <add>, %32, %cst_11 [1] : vector<32x32xf32> to vector<32xf32>
    %34 = vector.shape_cast %33 : vector<32xf32> to vector<32x1xf32>
    %cst_12 = arith.constant 3.200000e+01 : f32
    %35 = vector.broadcast %cst_12 : f32 to vector<32x1xf32>
    %36 = arith.divf %34, %35 : vector<32x1xf32>
    %37 = vector.broadcast %29 : vector<32x1xf32> to vector<32x32xf32>
    %38 = arith.subf %25, %37 : vector<32x32xf32>
    %cst_13 = arith.constant 9.99999974E-6 : f32
    %39 = vector.broadcast %cst_13 : f32 to vector<32x1xf32>
    %40 = arith.addf %36, %39 : vector<32x1xf32>
    %41 = math.rsqrt %40 : vector<32x1xf32>
    %42 = vector.broadcast %41 : vector<32x1xf32> to vector<32x32xf32>
    %43 = arith.mulf %38, %42 : vector<32x32xf32>
    %c0_14 = arith.constant 0 : index
    %c0_15 = arith.constant 0 : index
    %44 = vector.load %arg4[%c0_14, %c0_15] : memref<1x32xf32, #tpu.memory_space<vmem>>, vector<1x32xf32>
    %45 = vector.broadcast %44 : vector<1x32xf32> to vector<32x32xf32>
    %46 = arith.mulf %43, %45 : vector<32x32xf32>
    %c0_16 = arith.constant 0 : index
    %c0_17 = arith.constant 0 : index
    %47 = vector.load %arg5[%c0_16, %c0_17] : memref<1x32xf32, #tpu.memory_space<vmem>>, vector<1x32xf32>
    %48 = vector.broadcast %47 : vector<1x32xf32> to vector<32x32xf32>
    %49 = arith.addf %46, %48 : vector<32x32xf32>
    %50 = arith.truncf %49 : vector<32x32xf32> to vector<32x32xbf16>
    %c0_18 = arith.constant 0 : index
    %c0_19 = arith.constant 0 : index
    %51 = vector.load %arg6[%c0_18, %c0_19] : memref<32x32xbf16, #tpu.memory_space<vmem>>, vector<32x32xbf16>
    tpu.vector_store %arg6[%c0_18, %c0_19], %50 {strides = array<i32>} : memref<32x32xbf16, #tpu.memory_space<vmem>>, vector<32x32xbf16>,
    return
  }
  func.func @transform_0(%arg0: i32) -> (i32, i32) {
    %c0_i32 = arith.constant 0 : i32
    %c0_i32_0 = arith.constant 0 : i32
    return %arg0, %c0_i32 : i32, i32
  }
  func.func @transform_1(%arg0: i32) -> (i32, i32) {
    %c0_i32 = arith.constant 0 : i32
    %c0_i32_0 = arith.constant 0 : i32
    %c0_i32_1 = arith.constant 0 : i32
    return %c0_i32, %c0_i32_0 : i32, i32
  }
  func.func @transform_2(%arg0: i32) -> (i32, i32) {
    %c0_i32 = arith.constant 0 : i32
    %c0_i32_0 = arith.constant 0 : i32
    %c0_i32_1 = arith.constant 0 : i32
    return %c0_i32, %c0_i32_0 : i32, i32
  }
  func.func @transform_3(%arg0: i32) -> (i32, i32) {
    %c0_i32 = arith.constant 0 : i32
    %c0_i32_0 = arith.constant 0 : i32
    %c0_i32_1 = arith.constant 0 : i32
    return %c0_i32, %c0_i32_0 : i32, i32
  }
  func.func @transform_4(%arg0: i32) -> (i32, i32) {
    %c0_i32 = arith.constant 0 : i32
    %c0_i32_0 = arith.constant 0 : i32
    %c0_i32_1 = arith.constant 0 : i32
    return %c0_i32, %c0_i32_0 : i32, i32
  }
  func.func @transform_5(%arg0: i32) -> (i32, i32) {
    %c0_i32 = arith.constant 0 : i32
    %c0_i32_0 = arith.constant 0 : i32
    return %arg0, %c0_i32 : i32, i32
  }
}

module attributes {stable_mosaic.version = 11 : i64} {
  func.func @kernel(%arg0: i32, %arg1: memref<1x38x32xbf16, #tpu.memory_space<vmem>>, %arg2: memref<3x3x32x16xbf16, #tpu.memory_space<vmem>>, %arg3: memref<1x16xf32, #tpu.memory_space<vmem>>, %arg4: memref<1x16xf32, #tpu.memory_space<vmem>>, %arg5: memref<1x24x16xbf16, #tpu.memory_space<vmem>>) attributes {dimension_semantics = [#tpu.dimension_semantics<parallel>], iteration_bounds = array<i64: 2>, scalar_prefetch = 0 : i64, scratch_operands = 0 : i64, tpu.core_type = #tpu.core_type<tc>, window_params = [{transform_indices = @transform_0, window_bounds = array<i64: 1, 38, 32>}, {pipeline_mode = #tpu.pipeline_mode<synchronous>, transform_indices = @transform_1, window_bounds = array<i64: 3, 3, 32, 16>}, {pipeline_mode = #tpu.pipeline_mode<synchronous>, transform_indices = @transform_2, window_bounds = array<i64: 1, 16>}, {pipeline_mode = #tpu.pipeline_mode<synchronous>, transform_indices = @transform_3, window_bounds = array<i64: 1, 16>}, {transform_indices = @transform_4, window_bounds = array<i64: 1, 24, 16>}]} {
    %cst = arith.constant 0.000000e+00 : f32
    %0 = vector.broadcast %cst : f32 to vector<24x16xf32>
    %c0 = arith.constant 0 : index
    %c0_0 = arith.constant 0 : index
    %c0_1 = arith.constant 0 : index
    %1 = vector.load %arg1[%c0, %c0_0, %c0_1] : memref<1x38x32xbf16, #tpu.memory_space<vmem>>, vector<1x24x32xbf16>
    %2 = vector.shape_cast %1 : vector<1x24x32xbf16> to vector<24x32xbf16>
    %c0_2 = arith.constant 0 : index
    %c0_3 = arith.constant 0 : index
    %c0_4 = arith.constant 0 : index
    %c0_5 = arith.constant 0 : index
    %3 = vector.load %arg2[%c0_2, %c0_3, %c0_4, %c0_5] : memref<3x3x32x16xbf16, #tpu.memory_space<vmem>>, vector<1x1x32x16xbf16>
    %4 = vector.shape_cast %3 : vector<1x1x32x16xbf16> to vector<32x16xbf16>
    %cst_6 = arith.constant dense<0.000000e+00> : vector<24x16xf32>
    %5 = tpu.matmul %2, %4, %cst_6 {dimension_numbers = #tpu.dot_dimension_numbers<[1], [0], [0], [1], [0, 0, 1, 1], [], []>} : vector<24x32xbf16>, vector<32x16xbf16>, vector<24x16xf32> -> vector<24x16xf32>
    %6 = arith.addf %0, %5 : vector<24x16xf32>
    %c0_7 = arith.constant 0 : index
    %c1 = arith.constant 1 : index
    %c0_8 = arith.constant 0 : index
    %7 = vector.load %arg1[%c0_7, %c1, %c0_8] : memref<1x38x32xbf16, #tpu.memory_space<vmem>>, vector<1x24x32xbf16>
    %8 = vector.shape_cast %7 : vector<1x24x32xbf16> to vector<24x32xbf16>
    %c0_9 = arith.constant 0 : index
    %c1_10 = arith.constant 1 : index
    %c0_11 = arith.constant 0 : index
    %c0_12 = arith.constant 0 : index
    %9 = vector.load %arg2[%c0_9, %c1_10, %c0_11, %c0_12] : memref<3x3x32x16xbf16, #tpu.memory_space<vmem>>, vector<1x1x32x16xbf16>
    %10 = vector.shape_cast %9 : vector<1x1x32x16xbf16> to vector<32x16xbf16>
    %cst_13 = arith.constant dense<0.000000e+00> : vector<24x16xf32>
    %11 = tpu.matmul %8, %10, %cst_13 {dimension_numbers = #tpu.dot_dimension_numbers<[1], [0], [0], [1], [0, 0, 1, 1], [], []>} : vector<24x32xbf16>, vector<32x16xbf16>, vector<24x16xf32> -> vector<24x16xf32>
    %12 = arith.addf %6, %11 : vector<24x16xf32>
    %c0_14 = arith.constant 0 : index
    %c2 = arith.constant 2 : index
    %c0_15 = arith.constant 0 : index
    %13 = vector.load %arg1[%c0_14, %c2, %c0_15] : memref<1x38x32xbf16, #tpu.memory_space<vmem>>, vector<1x24x32xbf16>
    %14 = vector.shape_cast %13 : vector<1x24x32xbf16> to vector<24x32xbf16>
    %c0_16 = arith.constant 0 : index
    %c2_17 = arith.constant 2 : index
    %c0_18 = arith.constant 0 : index
    %c0_19 = arith.constant 0 : index
    %15 = vector.load %arg2[%c0_16, %c2_17, %c0_18, %c0_19] : memref<3x3x32x16xbf16, #tpu.memory_space<vmem>>, vector<1x1x32x16xbf16>
    %16 = vector.shape_cast %15 : vector<1x1x32x16xbf16> to vector<32x16xbf16>
    %cst_20 = arith.constant dense<0.000000e+00> : vector<24x16xf32>
    %17 = tpu.matmul %14, %16, %cst_20 {dimension_numbers = #tpu.dot_dimension_numbers<[1], [0], [0], [1], [0, 0, 1, 1], [], []>} : vector<24x32xbf16>, vector<32x16xbf16>, vector<24x16xf32> -> vector<24x16xf32>
    %18 = arith.addf %12, %17 : vector<24x16xf32>
    %c0_21 = arith.constant 0 : index
    %c6 = arith.constant 6 : index
    %c0_22 = arith.constant 0 : index
    %19 = vector.load %arg1[%c0_21, %c6, %c0_22] : memref<1x38x32xbf16, #tpu.memory_space<vmem>>, vector<1x24x32xbf16>
    %20 = vector.shape_cast %19 : vector<1x24x32xbf16> to vector<24x32xbf16>
    %c1_23 = arith.constant 1 : index
    %c0_24 = arith.constant 0 : index
    %c0_25 = arith.constant 0 : index
    %c0_26 = arith.constant 0 : index
    %21 = vector.load %arg2[%c1_23, %c0_24, %c0_25, %c0_26] : memref<3x3x32x16xbf16, #tpu.memory_space<vmem>>, vector<1x1x32x16xbf16>
    %22 = vector.shape_cast %21 : vector<1x1x32x16xbf16> to vector<32x16xbf16>
    %cst_27 = arith.constant dense<0.000000e+00> : vector<24x16xf32>
    %23 = tpu.matmul %20, %22, %cst_27 {dimension_numbers = #tpu.dot_dimension_numbers<[1], [0], [0], [1], [0, 0, 1, 1], [], []>} : vector<24x32xbf16>, vector<32x16xbf16>, vector<24x16xf32> -> vector<24x16xf32>
    %24 = arith.addf %18, %23 : vector<24x16xf32>
    %c0_28 = arith.constant 0 : index
    %c7 = arith.constant 7 : index
    %c0_29 = arith.constant 0 : index
    %25 = vector.load %arg1[%c0_28, %c7, %c0_29] : memref<1x38x32xbf16, #tpu.memory_space<vmem>>, vector<1x24x32xbf16>
    %26 = vector.shape_cast %25 : vector<1x24x32xbf16> to vector<24x32xbf16>
    %c1_30 = arith.constant 1 : index
    %c1_31 = arith.constant 1 : index
    %c0_32 = arith.constant 0 : index
    %c0_33 = arith.constant 0 : index
    %27 = vector.load %arg2[%c1_30, %c1_31, %c0_32, %c0_33] : memref<3x3x32x16xbf16, #tpu.memory_space<vmem>>, vector<1x1x32x16xbf16>
    %28 = vector.shape_cast %27 : vector<1x1x32x16xbf16> to vector<32x16xbf16>
    %cst_34 = arith.constant dense<0.000000e+00> : vector<24x16xf32>
    %29 = tpu.matmul %26, %28, %cst_34 {dimension_numbers = #tpu.dot_dimension_numbers<[1], [0], [0], [1], [0, 0, 1, 1], [], []>} : vector<24x32xbf16>, vector<32x16xbf16>, vector<24x16xf32> -> vector<24x16xf32>
    %30 = arith.addf %24, %29 : vector<24x16xf32>
    %c0_35 = arith.constant 0 : index
    %c8 = arith.constant 8 : index
    %c0_36 = arith.constant 0 : index
    %31 = vector.load %arg1[%c0_35, %c8, %c0_36] : memref<1x38x32xbf16, #tpu.memory_space<vmem>>, vector<1x24x32xbf16>
    %32 = vector.shape_cast %31 : vector<1x24x32xbf16> to vector<24x32xbf16>
    %c1_37 = arith.constant 1 : index
    %c2_38 = arith.constant 2 : index
    %c0_39 = arith.constant 0 : index
    %c0_40 = arith.constant 0 : index
    %33 = vector.load %arg2[%c1_37, %c2_38, %c0_39, %c0_40] : memref<3x3x32x16xbf16, #tpu.memory_space<vmem>>, vector<1x1x32x16xbf16>
    %34 = vector.shape_cast %33 : vector<1x1x32x16xbf16> to vector<32x16xbf16>
    %cst_41 = arith.constant dense<0.000000e+00> : vector<24x16xf32>
    %35 = tpu.matmul %32, %34, %cst_41 {dimension_numbers = #tpu.dot_dimension_numbers<[1], [0], [0], [1], [0, 0, 1, 1], [], []>} : vector<24x32xbf16>, vector<32x16xbf16>, vector<24x16xf32> -> vector<24x16xf32>
    %36 = arith.addf %30, %35 : vector<24x16xf32>
    %c0_42 = arith.constant 0 : index
    %c12 = arith.constant 12 : index
    %c0_43 = arith.constant 0 : index
    %37 = vector.load %arg1[%c0_42, %c12, %c0_43] : memref<1x38x32xbf16, #tpu.memory_space<vmem>>, vector<1x24x32xbf16>
    %38 = vector.shape_cast %37 : vector<1x24x32xbf16> to vector<24x32xbf16>
    %c2_44 = arith.constant 2 : index
    %c0_45 = arith.constant 0 : index
    %c0_46 = arith.constant 0 : index
    %c0_47 = arith.constant 0 : index
    %39 = vector.load %arg2[%c2_44, %c0_45, %c0_46, %c0_47] : memref<3x3x32x16xbf16, #tpu.memory_space<vmem>>, vector<1x1x32x16xbf16>
    %40 = vector.shape_cast %39 : vector<1x1x32x16xbf16> to vector<32x16xbf16>
    %cst_48 = arith.constant dense<0.000000e+00> : vector<24x16xf32>
    %41 = tpu.matmul %38, %40, %cst_48 {dimension_numbers = #tpu.dot_dimension_numbers<[1], [0], [0], [1], [0, 0, 1, 1], [], []>} : vector<24x32xbf16>, vector<32x16xbf16>, vector<24x16xf32> -> vector<24x16xf32>
    %42 = arith.addf %36, %41 : vector<24x16xf32>
    %c0_49 = arith.constant 0 : index
    %c13 = arith.constant 13 : index
    %c0_50 = arith.constant 0 : index
    %43 = vector.load %arg1[%c0_49, %c13, %c0_50] : memref<1x38x32xbf16, #tpu.memory_space<vmem>>, vector<1x24x32xbf16>
    %44 = vector.shape_cast %43 : vector<1x24x32xbf16> to vector<24x32xbf16>
    %c2_51 = arith.constant 2 : index
    %c1_52 = arith.constant 1 : index
    %c0_53 = arith.constant 0 : index
    %c0_54 = arith.constant 0 : index
    %45 = vector.load %arg2[%c2_51, %c1_52, %c0_53, %c0_54] : memref<3x3x32x16xbf16, #tpu.memory_space<vmem>>, vector<1x1x32x16xbf16>
    %46 = vector.shape_cast %45 : vector<1x1x32x16xbf16> to vector<32x16xbf16>
    %cst_55 = arith.constant dense<0.000000e+00> : vector<24x16xf32>
    %47 = tpu.matmul %44, %46, %cst_55 {dimension_numbers = #tpu.dot_dimension_numbers<[1], [0], [0], [1], [0, 0, 1, 1], [], []>} : vector<24x32xbf16>, vector<32x16xbf16>, vector<24x16xf32> -> vector<24x16xf32>
    %48 = arith.addf %42, %47 : vector<24x16xf32>
    %c0_56 = arith.constant 0 : index
    %c14 = arith.constant 14 : index
    %c0_57 = arith.constant 0 : index
    %49 = vector.load %arg1[%c0_56, %c14, %c0_57] : memref<1x38x32xbf16, #tpu.memory_space<vmem>>, vector<1x24x32xbf16>
    %50 = vector.shape_cast %49 : vector<1x24x32xbf16> to vector<24x32xbf16>
    %c2_58 = arith.constant 2 : index
    %c2_59 = arith.constant 2 : index
    %c0_60 = arith.constant 0 : index
    %c0_61 = arith.constant 0 : index
    %51 = vector.load %arg2[%c2_58, %c2_59, %c0_60, %c0_61] : memref<3x3x32x16xbf16, #tpu.memory_space<vmem>>, vector<1x1x32x16xbf16>
    %52 = vector.shape_cast %51 : vector<1x1x32x16xbf16> to vector<32x16xbf16>
    %cst_62 = arith.constant dense<0.000000e+00> : vector<24x16xf32>
    %53 = tpu.matmul %50, %52, %cst_62 {dimension_numbers = #tpu.dot_dimension_numbers<[1], [0], [0], [1], [0, 0, 1, 1], [], []>} : vector<24x32xbf16>, vector<32x16xbf16>, vector<24x16xf32> -> vector<24x16xf32>
    %54 = arith.addf %48, %53 : vector<24x16xf32>
    %c0_63 = arith.constant 0 : index
    %c0_64 = arith.constant 0 : index
    %55 = vector.load %arg3[%c0_63, %c0_64] : memref<1x16xf32, #tpu.memory_space<vmem>>, vector<1x16xf32>
    %56 = vector.broadcast %55 : vector<1x16xf32> to vector<24x16xf32>
    %57 = arith.mulf %54, %56 : vector<24x16xf32>
    %c0_65 = arith.constant 0 : index
    %c0_66 = arith.constant 0 : index
    %58 = vector.load %arg4[%c0_65, %c0_66] : memref<1x16xf32, #tpu.memory_space<vmem>>, vector<1x16xf32>
    %59 = vector.broadcast %58 : vector<1x16xf32> to vector<24x16xf32>
    %60 = arith.addf %57, %59 : vector<24x16xf32>
    %cst_67 = arith.constant 0.000000e+00 : f32
    %61 = vector.broadcast %cst_67 : f32 to vector<24x16xf32>
    %62 = arith.maximumf %60, %61 : vector<24x16xf32>
    %63 = arith.truncf %62 : vector<24x16xf32> to vector<24x16xbf16>
    %c0_68 = arith.constant 0 : index
    %c0_69 = arith.constant 0 : index
    %c0_70 = arith.constant 0 : index
    %64 = vector.load %arg5[%c0_68, %c0_69, %c0_70] : memref<1x24x16xbf16, #tpu.memory_space<vmem>>, vector<1x24x16xbf16>
    %65 = vector.shape_cast %64 : vector<1x24x16xbf16> to vector<24x16xbf16>
    %66 = vector.shape_cast %63 : vector<24x16xbf16> to vector<1x24x16xbf16>
    tpu.vector_store %arg5[%c0_68, %c0_69, %c0_70], %66 {strides = array<i32>} : memref<1x24x16xbf16, #tpu.memory_space<vmem>>, vector<1x24x16xbf16>,
    return
  }
  func.func @transform_0(%arg0: i32) -> (i32, i32, i32) {
    %c0_i32 = arith.constant 0 : i32
    %c0_i32_0 = arith.constant 0 : i32
    %c0_i32_1 = arith.constant 0 : i32
    return %arg0, %c0_i32, %c0_i32_0 : i32, i32, i32
  }
  func.func @transform_1(%arg0: i32) -> (i32, i32, i32, i32) {
    %c0_i32 = arith.constant 0 : i32
    %c0_i32_0 = arith.constant 0 : i32
    %c0_i32_1 = arith.constant 0 : i32
    %c0_i32_2 = arith.constant 0 : i32
    %c0_i32_3 = arith.constant 0 : i32
    return %c0_i32, %c0_i32_0, %c0_i32_1, %c0_i32_2 : i32, i32, i32, i32
  }
  func.func @transform_2(%arg0: i32) -> (i32, i32) {
    %c0_i32 = arith.constant 0 : i32
    %c0_i32_0 = arith.constant 0 : i32
    %c0_i32_1 = arith.constant 0 : i32
    return %c0_i32, %c0_i32_0 : i32, i32
  }
  func.func @transform_3(%arg0: i32) -> (i32, i32) {
    %c0_i32 = arith.constant 0 : i32
    %c0_i32_0 = arith.constant 0 : i32
    %c0_i32_1 = arith.constant 0 : i32
    return %c0_i32, %c0_i32_0 : i32, i32
  }
  func.func @transform_4(%arg0: i32) -> (i32, i32, i32) {
    %c0_i32 = arith.constant 0 : i32
    %c0_i32_0 = arith.constant 0 : i32
    %c0_i32_1 = arith.constant 0 : i32
    return %arg0, %c0_i32, %c0_i32_0 : i32, i32, i32
  }
}

module attributes {stable_mosaic.version = 11 : i64} {
  func.func @kernel(%arg0: i32, %arg1: i32, %arg2: memref<1x1x4x16xbf16, #tpu.memory_space<vmem>>, %arg3: memref<1x1x4x16xbf16, #tpu.memory_space<vmem>>, %arg4: memref<1x1x4x16xbf16, #tpu.memory_space<vmem>>, %arg5: memref<8x4xbf16, #tpu.memory_space<vmem>>, %arg6: memref<1x2x8x16xbf16, #tpu.memory_space<vmem>>) attributes {dimension_semantics = [#tpu.dimension_semantics<parallel>, #tpu.dimension_semantics<arbitrary>], iteration_bounds = array<i64: 2, 4>, scalar_prefetch = 0 : i64, scratch_operands = 0 : i64, tpu.core_type = #tpu.core_type<tc>, window_params = [{transform_indices = @transform_0, window_bounds = array<i64: 1, 1, 4, 16>}, {transform_indices = @transform_1, window_bounds = array<i64: 1, 1, 4, 16>}, {transform_indices = @transform_2, window_bounds = array<i64: 1, 1, 4, 16>}, {pipeline_mode = #tpu.pipeline_mode<synchronous>, transform_indices = @transform_3, window_bounds = array<i64: 8, 4>}, {transform_indices = @transform_4, window_bounds = array<i64: 1, 2, 8, 16>}]} {
    %c0 = arith.constant 0 : index
    %c0_0 = arith.constant 0 : index
    %c0_1 = arith.constant 0 : index
    %c0_2 = arith.constant 0 : index
    %0 = vector.load %arg2[%c0, %c0_0, %c0_1, %c0_2] : memref<1x1x4x16xbf16, #tpu.memory_space<vmem>>, vector<1x1x4x16xbf16>
    %1 = vector.shape_cast %0 : vector<1x1x4x16xbf16> to vector<4x16xbf16>
    %2 = arith.extf %1 : vector<4x16xbf16> to vector<4x16xf32>
    %c0_3 = arith.constant 0 : index
    %c0_4 = arith.constant 0 : index
    %c0_5 = arith.constant 0 : index
    %c0_6 = arith.constant 0 : index
    %3 = vector.load %arg3[%c0_3, %c0_4, %c0_5, %c0_6] : memref<1x1x4x16xbf16, #tpu.memory_space<vmem>>, vector<1x1x4x16xbf16>
    %4 = vector.shape_cast %3 : vector<1x1x4x16xbf16> to vector<4x16xbf16>
    %5 = arith.extf %4 : vector<4x16xbf16> to vector<4x16xf32>
    %c0_7 = arith.constant 0 : index
    %c0_8 = arith.constant 0 : index
    %c0_9 = arith.constant 0 : index
    %c0_10 = arith.constant 0 : index
    %6 = vector.load %arg4[%c0_7, %c0_8, %c0_9, %c0_10] : memref<1x1x4x16xbf16, #tpu.memory_space<vmem>>, vector<1x1x4x16xbf16>
    %7 = vector.shape_cast %6 : vector<1x1x4x16xbf16> to vector<4x16xbf16>
    %8 = arith.extf %7 : vector<4x16xbf16> to vector<4x16xf32>
    %c0_11 = arith.constant 0 : index
    %c0_12 = arith.constant 0 : index
    %9 = vector.load %arg5[%c0_11, %c0_12] : memref<8x4xbf16, #tpu.memory_space<vmem>>, vector<8x4xbf16>
    %cst = arith.constant 7.500000e-01 : f32
    %10 = vector.broadcast %cst : f32 to vector<4x16xf32>
    %11 = arith.mulf %10, %5 : vector<4x16xf32>
    %cst_13 = arith.constant 2.500000e-01 : f32
    %12 = vector.broadcast %cst_13 : f32 to vector<4x16xf32>
    %13 = arith.mulf %12, %2 : vector<4x16xf32>
    %14 = arith.addf %11, %13 : vector<4x16xf32>
    %15 = arith.truncf %14 : vector<4x16xf32> to vector<4x16xbf16>
    %cst_14 = arith.constant dense<0.000000e+00> : vector<8x16xf32>
    %16 = tpu.matmul %9, %15, %cst_14 {dimension_numbers = #tpu.dot_dimension_numbers<[1], [0], [0], [1], [0, 0, 1, 1], [], []>} : vector<8x4xbf16>, vector<4x16xbf16>, vector<8x16xf32> -> vector<8x16xf32>
    %17 = arith.truncf %16 : vector<8x16xf32> to vector<8x16xbf16>
    %c0_15 = arith.constant 0 : index
    %c0_16 = arith.constant 0 : index
    %c0_17 = arith.constant 0 : index
    %c0_18 = arith.constant 0 : index
    %18 = vector.load %arg6[%c0_15, %c0_16, %c0_17, %c0_18] : memref<1x2x8x16xbf16, #tpu.memory_space<vmem>>, vector<1x1x8x16xbf16>
    %19 = vector.shape_cast %18 : vector<1x1x8x16xbf16> to vector<8x16xbf16>
    %20 = vector.shape_cast %17 : vector<8x16xbf16> to vector<1x1x8x16xbf16>
    tpu.vector_store %arg6[%c0_15, %c0_16, %c0_17, %c0_18], %20 {strides = array<i32>} : memref<1x2x8x16xbf16, #tpu.memory_space<vmem>>, vector<1x1x8x16xbf16>,
    %cst_19 = arith.constant 7.500000e-01 : f32
    %21 = vector.broadcast %cst_19 : f32 to vector<4x16xf32>
    %22 = arith.mulf %21, %5 : vector<4x16xf32>
    %cst_20 = arith.constant 2.500000e-01 : f32
    %23 = vector.broadcast %cst_20 : f32 to vector<4x16xf32>
    %24 = arith.mulf %23, %8 : vector<4x16xf32>
    %25 = arith.addf %22, %24 : vector<4x16xf32>
    %26 = arith.truncf %25 : vector<4x16xf32> to vector<4x16xbf16>
    %cst_21 = arith.constant dense<0.000000e+00> : vector<8x16xf32>
    %27 = tpu.matmul %9, %26, %cst_21 {dimension_numbers = #tpu.dot_dimension_numbers<[1], [0], [0], [1], [0, 0, 1, 1], [], []>} : vector<8x4xbf16>, vector<4x16xbf16>, vector<8x16xf32> -> vector<8x16xf32>
    %28 = arith.truncf %27 : vector<8x16xf32> to vector<8x16xbf16>
    %c0_22 = arith.constant 0 : index
    %c1 = arith.constant 1 : index
    %c0_23 = arith.constant 0 : index
    %c0_24 = arith.constant 0 : index
    %29 = vector.load %arg6[%c0_22, %c1, %c0_23, %c0_24] : memref<1x2x8x16xbf16, #tpu.memory_space<vmem>>, vector<1x1x8x16xbf16>
    %30 = vector.shape_cast %29 : vector<1x1x8x16xbf16> to vector<8x16xbf16>
    %31 = vector.shape_cast %28 : vector<8x16xbf16> to vector<1x1x8x16xbf16>
    tpu.vector_store %arg6[%c0_22, %c1, %c0_23, %c0_24], %31 {strides = array<i32>} : memref<1x2x8x16xbf16, #tpu.memory_space<vmem>>, vector<1x1x8x16xbf16>,
    return
  }
  func.func @transform_0(%arg0: i32, %arg1: i32) -> (i32, i32, i32, i32) {
    %c1_i32 = arith.constant 1 : i32
    %0 = arith.subi %arg1, %c1_i32 : i32
    %c0_i32 = arith.constant 0 : i32
    %1 = arith.maxsi %0, %c0_i32 : i32
    %c0_i32_0 = arith.constant 0 : i32
    %c0_i32_1 = arith.constant 0 : i32
    %c0_i32_2 = arith.constant 0 : i32
    return %arg0, %1, %c0_i32_0, %c0_i32_1 : i32, i32, i32, i32
  }
  func.func @transform_1(%arg0: i32, %arg1: i32) -> (i32, i32, i32, i32) {
    %c0_i32 = arith.constant 0 : i32
    %c0_i32_0 = arith.constant 0 : i32
    %c0_i32_1 = arith.constant 0 : i32
    return %arg0, %arg1, %c0_i32, %c0_i32_0 : i32, i32, i32, i32
  }
  func.func @transform_2(%arg0: i32, %arg1: i32) -> (i32, i32, i32, i32) {
    %c1_i32 = arith.constant 1 : i32
    %0 = arith.addi %arg1, %c1_i32 : i32
    %c3_i32 = arith.constant 3 : i32
    %1 = arith.minsi %0, %c3_i32 : i32
    %c0_i32 = arith.constant 0 : i32
    %c0_i32_0 = arith.constant 0 : i32
    %c0_i32_1 = arith.constant 0 : i32
    return %arg0, %1, %c0_i32, %c0_i32_0 : i32, i32, i32, i32
  }
  func.func @transform_3(%arg0: i32, %arg1: i32) -> (i32, i32) {
    %c0_i32 = arith.constant 0 : i32
    %c0_i32_0 = arith.constant 0 : i32
    %c0_i32_1 = arith.constant 0 : i32
    return %c0_i32, %c0_i32_0 : i32, i32
  }
  func.func @transform_4(%arg0: i32, %arg1: i32) -> (i32, i32, i32, i32) {
    %c0_i32 = arith.constant 0 : i32
    %c0_i32_0 = arith.constant 0 : i32
    %c0_i32_1 = arith.constant 0 : i32
    return %arg0, %arg1, %c0_i32, %c0_i32_0 : i32, i32, i32, i32
  }
}

module attributes {stable_mosaic.version = 11 : i64} {
  func.func @kernel(%arg0: i32, %arg1: memref<1x102x16xbf16, #tpu.memory_space<vmem>>, %arg2: memref<3x3x16x16xbf16, #tpu.memory_space<vmem>>, %arg3: memref<1x16xf32, #tpu.memory_space<vmem>>, %arg4: memref<1x16xf32, #tpu.memory_space<vmem>>, %arg5: memref<1x80x16xbf16, #tpu.memory_space<vmem>>) attributes {dimension_semantics = [#tpu.dimension_semantics<parallel>], iteration_bounds = array<i64: 2>, scalar_prefetch = 0 : i64, scratch_operands = 0 : i64, tpu.core_type = #tpu.core_type<tc>, window_params = [{transform_indices = @transform_0, window_bounds = array<i64: 1, 102, 16>}, {pipeline_mode = #tpu.pipeline_mode<synchronous>, transform_indices = @transform_1, window_bounds = array<i64: 3, 3, 16, 16>}, {pipeline_mode = #tpu.pipeline_mode<synchronous>, transform_indices = @transform_2, window_bounds = array<i64: 1, 16>}, {pipeline_mode = #tpu.pipeline_mode<synchronous>, transform_indices = @transform_3, window_bounds = array<i64: 1, 16>}, {transform_indices = @transform_4, window_bounds = array<i64: 1, 80, 16>}]} {
    %cst = arith.constant 0.000000e+00 : f32
    %0 = vector.broadcast %cst : f32 to vector<80x16xf32>
    %c0 = arith.constant 0 : index
    %c0_0 = arith.constant 0 : index
    %c0_1 = arith.constant 0 : index
    %1 = vector.load %arg1[%c0, %c0_0, %c0_1] : memref<1x102x16xbf16, #tpu.memory_space<vmem>>, vector<1x80x16xbf16>
    %2 = vector.shape_cast %1 : vector<1x80x16xbf16> to vector<80x16xbf16>
    %c0_2 = arith.constant 0 : index
    %c0_3 = arith.constant 0 : index
    %c0_4 = arith.constant 0 : index
    %c0_5 = arith.constant 0 : index
    %3 = vector.load %arg2[%c0_2, %c0_3, %c0_4, %c0_5] : memref<3x3x16x16xbf16, #tpu.memory_space<vmem>>, vector<1x1x16x16xbf16>
    %4 = vector.shape_cast %3 : vector<1x1x16x16xbf16> to vector<16x16xbf16>
    %cst_6 = arith.constant dense<0.000000e+00> : vector<80x16xf32>
    %5 = tpu.matmul %2, %4, %cst_6 {dimension_numbers = #tpu.dot_dimension_numbers<[1], [0], [0], [1], [0, 0, 1, 1], [], []>} : vector<80x16xbf16>, vector<16x16xbf16>, vector<80x16xf32> -> vector<80x16xf32>
    %6 = arith.addf %0, %5 : vector<80x16xf32>
    %c0_7 = arith.constant 0 : index
    %c1 = arith.constant 1 : index
    %c0_8 = arith.constant 0 : index
    %7 = vector.load %arg1[%c0_7, %c1, %c0_8] : memref<1x102x16xbf16, #tpu.memory_space<vmem>>, vector<1x80x16xbf16>
    %8 = vector.shape_cast %7 : vector<1x80x16xbf16> to vector<80x16xbf16>
    %c0_9 = arith.constant 0 : index
    %c1_10 = arith.constant 1 : index
    %c0_11 = arith.constant 0 : index
    %c0_12 = arith.constant 0 : index
    %9 = vector.load %arg2[%c0_9, %c1_10, %c0_11, %c0_12] : memref<3x3x16x16xbf16, #tpu.memory_space<vmem>>, vector<1x1x16x16xbf16>
    %10 = vector.shape_cast %9 : vector<1x1x16x16xbf16> to vector<16x16xbf16>
    %cst_13 = arith.constant dense<0.000000e+00> : vector<80x16xf32>
    %11 = tpu.matmul %8, %10, %cst_13 {dimension_numbers = #tpu.dot_dimension_numbers<[1], [0], [0], [1], [0, 0, 1, 1], [], []>} : vector<80x16xbf16>, vector<16x16xbf16>, vector<80x16xf32> -> vector<80x16xf32>
    %12 = arith.addf %6, %11 : vector<80x16xf32>
    %c0_14 = arith.constant 0 : index
    %c2 = arith.constant 2 : index
    %c0_15 = arith.constant 0 : index
    %13 = vector.load %arg1[%c0_14, %c2, %c0_15] : memref<1x102x16xbf16, #tpu.memory_space<vmem>>, vector<1x80x16xbf16>
    %14 = vector.shape_cast %13 : vector<1x80x16xbf16> to vector<80x16xbf16>
    %c0_16 = arith.constant 0 : index
    %c2_17 = arith.constant 2 : index
    %c0_18 = arith.constant 0 : index
    %c0_19 = arith.constant 0 : index
    %15 = vector.load %arg2[%c0_16, %c2_17, %c0_18, %c0_19] : memref<3x3x16x16xbf16, #tpu.memory_space<vmem>>, vector<1x1x16x16xbf16>
    %16 = vector.shape_cast %15 : vector<1x1x16x16xbf16> to vector<16x16xbf16>
    %cst_20 = arith.constant dense<0.000000e+00> : vector<80x16xf32>
    %17 = tpu.matmul %14, %16, %cst_20 {dimension_numbers = #tpu.dot_dimension_numbers<[1], [0], [0], [1], [0, 0, 1, 1], [], []>} : vector<80x16xbf16>, vector<16x16xbf16>, vector<80x16xf32> -> vector<80x16xf32>
    %18 = arith.addf %12, %17 : vector<80x16xf32>
    %c0_21 = arith.constant 0 : index
    %c10 = arith.constant 10 : index
    %c0_22 = arith.constant 0 : index
    %19 = vector.load %arg1[%c0_21, %c10, %c0_22] : memref<1x102x16xbf16, #tpu.memory_space<vmem>>, vector<1x80x16xbf16>
    %20 = vector.shape_cast %19 : vector<1x80x16xbf16> to vector<80x16xbf16>
    %c1_23 = arith.constant 1 : index
    %c0_24 = arith.constant 0 : index
    %c0_25 = arith.constant 0 : index
    %c0_26 = arith.constant 0 : index
    %21 = vector.load %arg2[%c1_23, %c0_24, %c0_25, %c0_26] : memref<3x3x16x16xbf16, #tpu.memory_space<vmem>>, vector<1x1x16x16xbf16>
    %22 = vector.shape_cast %21 : vector<1x1x16x16xbf16> to vector<16x16xbf16>
    %cst_27 = arith.constant dense<0.000000e+00> : vector<80x16xf32>
    %23 = tpu.matmul %20, %22, %cst_27 {dimension_numbers = #tpu.dot_dimension_numbers<[1], [0], [0], [1], [0, 0, 1, 1], [], []>} : vector<80x16xbf16>, vector<16x16xbf16>, vector<80x16xf32> -> vector<80x16xf32>
    %24 = arith.addf %18, %23 : vector<80x16xf32>
    %c0_28 = arith.constant 0 : index
    %c11 = arith.constant 11 : index
    %c0_29 = arith.constant 0 : index
    %25 = vector.load %arg1[%c0_28, %c11, %c0_29] : memref<1x102x16xbf16, #tpu.memory_space<vmem>>, vector<1x80x16xbf16>
    %26 = vector.shape_cast %25 : vector<1x80x16xbf16> to vector<80x16xbf16>
    %c1_30 = arith.constant 1 : index
    %c1_31 = arith.constant 1 : index
    %c0_32 = arith.constant 0 : index
    %c0_33 = arith.constant 0 : index
    %27 = vector.load %arg2[%c1_30, %c1_31, %c0_32, %c0_33] : memref<3x3x16x16xbf16, #tpu.memory_space<vmem>>, vector<1x1x16x16xbf16>
    %28 = vector.shape_cast %27 : vector<1x1x16x16xbf16> to vector<16x16xbf16>
    %cst_34 = arith.constant dense<0.000000e+00> : vector<80x16xf32>
    %29 = tpu.matmul %26, %28, %cst_34 {dimension_numbers = #tpu.dot_dimension_numbers<[1], [0], [0], [1], [0, 0, 1, 1], [], []>} : vector<80x16xbf16>, vector<16x16xbf16>, vector<80x16xf32> -> vector<80x16xf32>
    %30 = arith.addf %24, %29 : vector<80x16xf32>
    %c0_35 = arith.constant 0 : index
    %c12 = arith.constant 12 : index
    %c0_36 = arith.constant 0 : index
    %31 = vector.load %arg1[%c0_35, %c12, %c0_36] : memref<1x102x16xbf16, #tpu.memory_space<vmem>>, vector<1x80x16xbf16>
    %32 = vector.shape_cast %31 : vector<1x80x16xbf16> to vector<80x16xbf16>
    %c1_37 = arith.constant 1 : index
    %c2_38 = arith.constant 2 : index
    %c0_39 = arith.constant 0 : index
    %c0_40 = arith.constant 0 : index
    %33 = vector.load %arg2[%c1_37, %c2_38, %c0_39, %c0_40] : memref<3x3x16x16xbf16, #tpu.memory_space<vmem>>, vector<1x1x16x16xbf16>
    %34 = vector.shape_cast %33 : vector<1x1x16x16xbf16> to vector<16x16xbf16>
    %cst_41 = arith.constant dense<0.000000e+00> : vector<80x16xf32>
    %35 = tpu.matmul %32, %34, %cst_41 {dimension_numbers = #tpu.dot_dimension_numbers<[1], [0], [0], [1], [0, 0, 1, 1], [], []>} : vector<80x16xbf16>, vector<16x16xbf16>, vector<80x16xf32> -> vector<80x16xf32>
    %36 = arith.addf %30, %35 : vector<80x16xf32>
    %c0_42 = arith.constant 0 : index
    %c20 = arith.constant 20 : index
    %c0_43 = arith.constant 0 : index
    %37 = vector.load %arg1[%c0_42, %c20, %c0_43] : memref<1x102x16xbf16, #tpu.memory_space<vmem>>, vector<1x80x16xbf16>
    %38 = vector.shape_cast %37 : vector<1x80x16xbf16> to vector<80x16xbf16>
    %c2_44 = arith.constant 2 : index
    %c0_45 = arith.constant 0 : index
    %c0_46 = arith.constant 0 : index
    %c0_47 = arith.constant 0 : index
    %39 = vector.load %arg2[%c2_44, %c0_45, %c0_46, %c0_47] : memref<3x3x16x16xbf16, #tpu.memory_space<vmem>>, vector<1x1x16x16xbf16>
    %40 = vector.shape_cast %39 : vector<1x1x16x16xbf16> to vector<16x16xbf16>
    %cst_48 = arith.constant dense<0.000000e+00> : vector<80x16xf32>
    %41 = tpu.matmul %38, %40, %cst_48 {dimension_numbers = #tpu.dot_dimension_numbers<[1], [0], [0], [1], [0, 0, 1, 1], [], []>} : vector<80x16xbf16>, vector<16x16xbf16>, vector<80x16xf32> -> vector<80x16xf32>
    %42 = arith.addf %36, %41 : vector<80x16xf32>
    %c0_49 = arith.constant 0 : index
    %c21 = arith.constant 21 : index
    %c0_50 = arith.constant 0 : index
    %43 = vector.load %arg1[%c0_49, %c21, %c0_50] : memref<1x102x16xbf16, #tpu.memory_space<vmem>>, vector<1x80x16xbf16>
    %44 = vector.shape_cast %43 : vector<1x80x16xbf16> to vector<80x16xbf16>
    %c2_51 = arith.constant 2 : index
    %c1_52 = arith.constant 1 : index
    %c0_53 = arith.constant 0 : index
    %c0_54 = arith.constant 0 : index
    %45 = vector.load %arg2[%c2_51, %c1_52, %c0_53, %c0_54] : memref<3x3x16x16xbf16, #tpu.memory_space<vmem>>, vector<1x1x16x16xbf16>
    %46 = vector.shape_cast %45 : vector<1x1x16x16xbf16> to vector<16x16xbf16>
    %cst_55 = arith.constant dense<0.000000e+00> : vector<80x16xf32>
    %47 = tpu.matmul %44, %46, %cst_55 {dimension_numbers = #tpu.dot_dimension_numbers<[1], [0], [0], [1], [0, 0, 1, 1], [], []>} : vector<80x16xbf16>, vector<16x16xbf16>, vector<80x16xf32> -> vector<80x16xf32>
    %48 = arith.addf %42, %47 : vector<80x16xf32>
    %c0_56 = arith.constant 0 : index
    %c22 = arith.constant 22 : index
    %c0_57 = arith.constant 0 : index
    %49 = vector.load %arg1[%c0_56, %c22, %c0_57] : memref<1x102x16xbf16, #tpu.memory_space<vmem>>, vector<1x80x16xbf16>
    %50 = vector.shape_cast %49 : vector<1x80x16xbf16> to vector<80x16xbf16>
    %c2_58 = arith.constant 2 : index
    %c2_59 = arith.constant 2 : index
    %c0_60 = arith.constant 0 : index
    %c0_61 = arith.constant 0 : index
    %51 = vector.load %arg2[%c2_58, %c2_59, %c0_60, %c0_61] : memref<3x3x16x16xbf16, #tpu.memory_space<vmem>>, vector<1x1x16x16xbf16>
    %52 = vector.shape_cast %51 : vector<1x1x16x16xbf16> to vector<16x16xbf16>
    %cst_62 = arith.constant dense<0.000000e+00> : vector<80x16xf32>
    %53 = tpu.matmul %50, %52, %cst_62 {dimension_numbers = #tpu.dot_dimension_numbers<[1], [0], [0], [1], [0, 0, 1, 1], [], []>} : vector<80x16xbf16>, vector<16x16xbf16>, vector<80x16xf32> -> vector<80x16xf32>
    %54 = arith.addf %48, %53 : vector<80x16xf32>
    %c0_63 = arith.constant 0 : index
    %c0_64 = arith.constant 0 : index
    %55 = vector.load %arg3[%c0_63, %c0_64] : memref<1x16xf32, #tpu.memory_space<vmem>>, vector<1x16xf32>
    %56 = vector.broadcast %55 : vector<1x16xf32> to vector<80x16xf32>
    %57 = arith.mulf %54, %56 : vector<80x16xf32>
    %c0_65 = arith.constant 0 : index
    %c0_66 = arith.constant 0 : index
    %58 = vector.load %arg4[%c0_65, %c0_66] : memref<1x16xf32, #tpu.memory_space<vmem>>, vector<1x16xf32>
    %59 = vector.broadcast %58 : vector<1x16xf32> to vector<80x16xf32>
    %60 = arith.addf %57, %59 : vector<80x16xf32>
    %cst_67 = arith.constant 0.000000e+00 : f32
    %61 = vector.broadcast %cst_67 : f32 to vector<80x16xf32>
    %62 = arith.maximumf %60, %61 : vector<80x16xf32>
    %63 = arith.truncf %62 : vector<80x16xf32> to vector<80x16xbf16>
    %c0_68 = arith.constant 0 : index
    %c0_69 = arith.constant 0 : index
    %c0_70 = arith.constant 0 : index
    %64 = vector.load %arg5[%c0_68, %c0_69, %c0_70] : memref<1x80x16xbf16, #tpu.memory_space<vmem>>, vector<1x80x16xbf16>
    %65 = vector.shape_cast %64 : vector<1x80x16xbf16> to vector<80x16xbf16>
    %66 = vector.shape_cast %63 : vector<80x16xbf16> to vector<1x80x16xbf16>
    tpu.vector_store %arg5[%c0_68, %c0_69, %c0_70], %66 {strides = array<i32>} : memref<1x80x16xbf16, #tpu.memory_space<vmem>>, vector<1x80x16xbf16>,
    return
  }
  func.func @transform_0(%arg0: i32) -> (i32, i32, i32) {
    %c0_i32 = arith.constant 0 : i32
    %c0_i32_0 = arith.constant 0 : i32
    %c0_i32_1 = arith.constant 0 : i32
    return %arg0, %c0_i32, %c0_i32_0 : i32, i32, i32
  }
  func.func @transform_1(%arg0: i32) -> (i32, i32, i32, i32) {
    %c0_i32 = arith.constant 0 : i32
    %c0_i32_0 = arith.constant 0 : i32
    %c0_i32_1 = arith.constant 0 : i32
    %c0_i32_2 = arith.constant 0 : i32
    %c0_i32_3 = arith.constant 0 : i32
    return %c0_i32, %c0_i32_0, %c0_i32_1, %c0_i32_2 : i32, i32, i32, i32
  }
  func.func @transform_2(%arg0: i32) -> (i32, i32) {
    %c0_i32 = arith.constant 0 : i32
    %c0_i32_0 = arith.constant 0 : i32
    %c0_i32_1 = arith.constant 0 : i32
    return %c0_i32, %c0_i32_0 : i32, i32
  }
  func.func @transform_3(%arg0: i32) -> (i32, i32) {
    %c0_i32 = arith.constant 0 : i32
    %c0_i32_0 = arith.constant 0 : i32
    %c0_i32_1 = arith.constant 0 : i32
    return %c0_i32, %c0_i32_0 : i32, i32
  }
  func.func @transform_4(%arg0: i32) -> (i32, i32, i32) {
    %c0_i32 = arith.constant 0 : i32
    %c0_i32_0 = arith.constant 0 : i32
    %c0_i32_1 = arith.constant 0 : i32
    return %arg0, %c0_i32, %c0_i32_0 : i32, i32, i32
  }
}

module attributes {stable_mosaic.version = 11 : i64} {
  func.func @kernel(%arg0: i32, %arg1: i32, %arg2: i32, %arg3: memref<512x16xbf16, #tpu.memory_space<vmem>>, %arg4: memref<16x128xbf16, #tpu.memory_space<vmem>>, %arg5: memref<1x128xf32, #tpu.memory_space<vmem>>, %arg6: memref<512x128xf32, #tpu.memory_space<vmem>>, %arg7: memref<512x128xf32, #tpu.memory_space<vmem>>) attributes {dimension_semantics = [#tpu.dimension_semantics<parallel>, #tpu.dimension_semantics<parallel>, #tpu.dimension_semantics<arbitrary>], iteration_bounds = array<i64: 1, 1, 1>, scalar_prefetch = 0 : i64, scratch_operands = 1 : i64, tpu.core_type = #tpu.core_type<tc>, window_params = [{transform_indices = @transform_0, window_bounds = array<i64: 512, 16>}, {transform_indices = @transform_1, window_bounds = array<i64: 16, 128>}, {transform_indices = @transform_2, window_bounds = array<i64: 1, 128>}, {transform_indices = @transform_3, window_bounds = array<i64: 512, 128>}]} {
    %c0_i32 = arith.constant 0 : i32
    %0 = arith.cmpi eq, %arg2, %c0_i32 : i32
    %1 = arith.extui %0 : i1 to i32
    %c0_i32_0 = arith.constant 0 : i32
    %2 = arith.cmpi ne, %1, %c0_i32_0 : i32
    scf.if %2 {
      %cst_10 = arith.constant 0.000000e+00 : f32
      %12 = vector.broadcast %cst_10 : f32 to vector<512x128xf32>
      %c0_11 = arith.constant 0 : index
      %c0_12 = arith.constant 0 : index
      %13 = vector.load %arg7[%c0_11, %c0_12] : memref<512x128xf32, #tpu.memory_space<vmem>>, vector<512x128xf32>
      tpu.vector_store %arg7[%c0_11, %c0_12], %12 {strides = array<i32>} : memref<512x128xf32, #tpu.memory_space<vmem>>, vector<512x128xf32>,
    } else {
    }
    %c0 = arith.constant 0 : index
    %c0_1 = arith.constant 0 : index
    %3 = vector.load %arg3[%c0, %c0_1] : memref<512x16xbf16, #tpu.memory_space<vmem>>, vector<512x16xbf16>
    %c0_2 = arith.constant 0 : index
    %c0_3 = arith.constant 0 : index
    %4 = vector.load %arg7[%c0_2, %c0_3] : memref<512x128xf32, #tpu.memory_space<vmem>>, vector<512x128xf32>
    %c0_4 = arith.constant 0 : index
    %c0_5 = arith.constant 0 : index
    %5 = vector.load %arg4[%c0_4, %c0_5] : memref<16x128xbf16, #tpu.memory_space<vmem>>, vector<16x128xbf16>
    %cst = arith.constant dense<0.000000e+00> : vector<512x128xf32>
    %6 = tpu.matmul %3, %5, %cst {dimension_numbers = #tpu.dot_dimension_numbers<[1], [0], [0], [1], [0, 0, 1, 1], [], []>} : vector<512x16xbf16>, vector<16x128xbf16>, vector<512x128xf32> -> vector<512x128xf32>
    %7 = arith.addf %4, %6 : vector<512x128xf32>
    %c0_6 = arith.constant 0 : index
    %c0_7 = arith.constant 0 : index
    %8 = vector.load %arg7[%c0_6, %c0_7] : memref<512x128xf32, #tpu.memory_space<vmem>>, vector<512x128xf32>
    tpu.vector_store %arg7[%c0_6, %c0_7], %7 {strides = array<i32>} : memref<512x128xf32, #tpu.memory_space<vmem>>, vector<512x128xf32>,
    %c0_i32_8 = arith.constant 0 : i32
    %9 = arith.cmpi eq, %arg2, %c0_i32_8 : i32
    %10 = arith.extui %9 : i1 to i32
    %c0_i32_9 = arith.constant 0 : i32
    %11 = arith.cmpi ne, %10, %c0_i32_9 : i32
    scf.if %11 {
      %c0_10 = arith.constant 0 : index
      %c0_11 = arith.constant 0 : index
      %12 = vector.load %arg7[%c0_10, %c0_11] : memref<512x128xf32, #tpu.memory_space<vmem>>, vector<512x128xf32>
      %c0_12 = arith.constant 0 : index
      %c0_13 = arith.constant 0 : index
      %13 = vector.load %arg5[%c0_12, %c0_13] : memref<1x128xf32, #tpu.memory_space<vmem>>, vector<1x128xf32>
      %14 = vector.broadcast %13 : vector<1x128xf32> to vector<512x128xf32>
      %15 = arith.addf %12, %14 : vector<512x128xf32>
      %c0_14 = arith.constant 0 : index
      %c0_15 = arith.constant 0 : index
      %16 = vector.load %arg6[%c0_14, %c0_15] : memref<512x128xf32, #tpu.memory_space<vmem>>, vector<512x128xf32>
      tpu.vector_store %arg6[%c0_14, %c0_15], %15 {strides = array<i32>} : memref<512x128xf32, #tpu.memory_space<vmem>>, vector<512x128xf32>,
    } else {
    }
    return
  }
  func.func @transform_0(%arg0: i32, %arg1: i32, %arg2: i32) -> (i32, i32) {
    %c0_i32 = arith.constant 0 : i32
    return %arg0, %arg2 : i32, i32
  }
  func.func @transform_1(%arg0: i32, %arg1: i32, %arg2: i32) -> (i32, i32) {
    %c0_i32 = arith.constant 0 : i32
    return %arg2, %arg1 : i32, i32
  }
  func.func @transform_2(%arg0: i32, %arg1: i32, %arg2: i32) -> (i32, i32) {
    %c0_i32 = arith.constant 0 : i32
    %c0_i32_0 = arith.constant 0 : i32
    return %c0_i32, %arg1 : i32, i32
  }
  func.func @transform_3(%arg0: i32, %arg1: i32, %arg2: i32) -> (i32, i32) {
    %c0_i32 = arith.constant 0 : i32
    return %arg0, %arg1 : i32, i32
  }
}

module attributes {stable_mosaic.version = 11 : i64} {
  func.func @kernel(%arg0: i32, %arg1: i32, %arg2: memref<1x1x8x16xbf16, #tpu.memory_space<vmem>>, %arg3: memref<1x1x8x16xbf16, #tpu.memory_space<vmem>>, %arg4: memref<1x1x8x16xbf16, #tpu.memory_space<vmem>>, %arg5: memref<16x8xbf16, #tpu.memory_space<vmem>>, %arg6: memref<1x2x16x16xbf16, #tpu.memory_space<vmem>>) attributes {dimension_semantics = [#tpu.dimension_semantics<parallel>, #tpu.dimension_semantics<arbitrary>], iteration_bounds = array<i64: 2, 8>, scalar_prefetch = 0 : i64, scratch_operands = 0 : i64, tpu.core_type = #tpu.core_type<tc>, window_params = [{transform_indices = @transform_0, window_bounds = array<i64: 1, 1, 8, 16>}, {transform_indices = @transform_1, window_bounds = array<i64: 1, 1, 8, 16>}, {transform_indices = @transform_2, window_bounds = array<i64: 1, 1, 8, 16>}, {pipeline_mode = #tpu.pipeline_mode<synchronous>, transform_indices = @transform_3, window_bounds = array<i64: 16, 8>}, {transform_indices = @transform_4, window_bounds = array<i64: 1, 2, 16, 16>}]} {
    %c0 = arith.constant 0 : index
    %c0_0 = arith.constant 0 : index
    %c0_1 = arith.constant 0 : index
    %c0_2 = arith.constant 0 : index
    %0 = vector.load %arg2[%c0, %c0_0, %c0_1, %c0_2] : memref<1x1x8x16xbf16, #tpu.memory_space<vmem>>, vector<1x1x8x16xbf16>
    %1 = vector.shape_cast %0 : vector<1x1x8x16xbf16> to vector<8x16xbf16>
    %2 = arith.extf %1 : vector<8x16xbf16> to vector<8x16xf32>
    %c0_3 = arith.constant 0 : index
    %c0_4 = arith.constant 0 : index
    %c0_5 = arith.constant 0 : index
    %c0_6 = arith.constant 0 : index
    %3 = vector.load %arg3[%c0_3, %c0_4, %c0_5, %c0_6] : memref<1x1x8x16xbf16, #tpu.memory_space<vmem>>, vector<1x1x8x16xbf16>
    %4 = vector.shape_cast %3 : vector<1x1x8x16xbf16> to vector<8x16xbf16>
    %5 = arith.extf %4 : vector<8x16xbf16> to vector<8x16xf32>
    %c0_7 = arith.constant 0 : index
    %c0_8 = arith.constant 0 : index
    %c0_9 = arith.constant 0 : index
    %c0_10 = arith.constant 0 : index
    %6 = vector.load %arg4[%c0_7, %c0_8, %c0_9, %c0_10] : memref<1x1x8x16xbf16, #tpu.memory_space<vmem>>, vector<1x1x8x16xbf16>
    %7 = vector.shape_cast %6 : vector<1x1x8x16xbf16> to vector<8x16xbf16>
    %8 = arith.extf %7 : vector<8x16xbf16> to vector<8x16xf32>
    %c0_11 = arith.constant 0 : index
    %c0_12 = arith.constant 0 : index
    %9 = vector.load %arg5[%c0_11, %c0_12] : memref<16x8xbf16, #tpu.memory_space<vmem>>, vector<16x8xbf16>
    %cst = arith.constant 7.500000e-01 : f32
    %10 = vector.broadcast %cst : f32 to vector<8x16xf32>
    %11 = arith.mulf %10, %5 : vector<8x16xf32>
    %cst_13 = arith.constant 2.500000e-01 : f32
    %12 = vector.broadcast %cst_13 : f32 to vector<8x16xf32>
    %13 = arith.mulf %12, %2 : vector<8x16xf32>
    %14 = arith.addf %11, %13 : vector<8x16xf32>
    %15 = arith.truncf %14 : vector<8x16xf32> to vector<8x16xbf16>
    %cst_14 = arith.constant dense<0.000000e+00> : vector<16x16xf32>
    %16 = tpu.matmul %9, %15, %cst_14 {dimension_numbers = #tpu.dot_dimension_numbers<[1], [0], [0], [1], [0, 0, 1, 1], [], []>} : vector<16x8xbf16>, vector<8x16xbf16>, vector<16x16xf32> -> vector<16x16xf32>
    %17 = arith.truncf %16 : vector<16x16xf32> to vector<16x16xbf16>
    %c0_15 = arith.constant 0 : index
    %c0_16 = arith.constant 0 : index
    %c0_17 = arith.constant 0 : index
    %c0_18 = arith.constant 0 : index
    %18 = vector.load %arg6[%c0_15, %c0_16, %c0_17, %c0_18] : memref<1x2x16x16xbf16, #tpu.memory_space<vmem>>, vector<1x1x16x16xbf16>
    %19 = vector.shape_cast %18 : vector<1x1x16x16xbf16> to vector<16x16xbf16>
    %20 = vector.shape_cast %17 : vector<16x16xbf16> to vector<1x1x16x16xbf16>
    tpu.vector_store %arg6[%c0_15, %c0_16, %c0_17, %c0_18], %20 {strides = array<i32>} : memref<1x2x16x16xbf16, #tpu.memory_space<vmem>>, vector<1x1x16x16xbf16>,
    %cst_19 = arith.constant 7.500000e-01 : f32
    %21 = vector.broadcast %cst_19 : f32 to vector<8x16xf32>
    %22 = arith.mulf %21, %5 : vector<8x16xf32>
    %cst_20 = arith.constant 2.500000e-01 : f32
    %23 = vector.broadcast %cst_20 : f32 to vector<8x16xf32>
    %24 = arith.mulf %23, %8 : vector<8x16xf32>
    %25 = arith.addf %22, %24 : vector<8x16xf32>
    %26 = arith.truncf %25 : vector<8x16xf32> to vector<8x16xbf16>
    %cst_21 = arith.constant dense<0.000000e+00> : vector<16x16xf32>
    %27 = tpu.matmul %9, %26, %cst_21 {dimension_numbers = #tpu.dot_dimension_numbers<[1], [0], [0], [1], [0, 0, 1, 1], [], []>} : vector<16x8xbf16>, vector<8x16xbf16>, vector<16x16xf32> -> vector<16x16xf32>
    %28 = arith.truncf %27 : vector<16x16xf32> to vector<16x16xbf16>
    %c0_22 = arith.constant 0 : index
    %c1 = arith.constant 1 : index
    %c0_23 = arith.constant 0 : index
    %c0_24 = arith.constant 0 : index
    %29 = vector.load %arg6[%c0_22, %c1, %c0_23, %c0_24] : memref<1x2x16x16xbf16, #tpu.memory_space<vmem>>, vector<1x1x16x16xbf16>
    %30 = vector.shape_cast %29 : vector<1x1x16x16xbf16> to vector<16x16xbf16>
    %31 = vector.shape_cast %28 : vector<16x16xbf16> to vector<1x1x16x16xbf16>
    tpu.vector_store %arg6[%c0_22, %c1, %c0_23, %c0_24], %31 {strides = array<i32>} : memref<1x2x16x16xbf16, #tpu.memory_space<vmem>>, vector<1x1x16x16xbf16>,
    return
  }
  func.func @transform_0(%arg0: i32, %arg1: i32) -> (i32, i32, i32, i32) {
    %c1_i32 = arith.constant 1 : i32
    %0 = arith.subi %arg1, %c1_i32 : i32
    %c0_i32 = arith.constant 0 : i32
    %1 = arith.maxsi %0, %c0_i32 : i32
    %c0_i32_0 = arith.constant 0 : i32
    %c0_i32_1 = arith.constant 0 : i32
    %c0_i32_2 = arith.constant 0 : i32
    return %arg0, %1, %c0_i32_0, %c0_i32_1 : i32, i32, i32, i32
  }
  func.func @transform_1(%arg0: i32, %arg1: i32) -> (i32, i32, i32, i32) {
    %c0_i32 = arith.constant 0 : i32
    %c0_i32_0 = arith.constant 0 : i32
    %c0_i32_1 = arith.constant 0 : i32
    return %arg0, %arg1, %c0_i32, %c0_i32_0 : i32, i32, i32, i32
  }
  func.func @transform_2(%arg0: i32, %arg1: i32) -> (i32, i32, i32, i32) {
    %c1_i32 = arith.constant 1 : i32
    %0 = arith.addi %arg1, %c1_i32 : i32
    %c7_i32 = arith.constant 7 : i32
    %1 = arith.minsi %0, %c7_i32 : i32
    %c0_i32 = arith.constant 0 : i32
    %c0_i32_0 = arith.constant 0 : i32
    %c0_i32_1 = arith.constant 0 : i32
    return %arg0, %1, %c0_i32, %c0_i32_0 : i32, i32, i32, i32
  }
  func.func @transform_3(%arg0: i32, %arg1: i32) -> (i32, i32) {
    %c0_i32 = arith.constant 0 : i32
    %c0_i32_0 = arith.constant 0 : i32
    %c0_i32_1 = arith.constant 0 : i32
    return %c0_i32, %c0_i32_0 : i32, i32
  }
  func.func @transform_4(%arg0: i32, %arg1: i32) -> (i32, i32, i32, i32) {
    %c0_i32 = arith.constant 0 : i32
    %c0_i32_0 = arith.constant 0 : i32
    %c0_i32_1 = arith.constant 0 : i32
    return %arg0, %arg1, %c0_i32, %c0_i32_0 : i32, i32, i32, i32
  }
}

</mosaic_0001>

<bundles_post_ra>
// kernel: setr_pup_forward.17
= control target key start
LH: loop header
LB: loop body
LE: loop exit
PB: predicated region body
PF: predicated region fallthrough
CT: control target
= control target key end

     0   :  { %vm65_vm0 = vcmask 392192   ;;  %s262_s1 = inlined_call_operand.vmem [shape: bf16[48,128], index: 1, kind: input, shape index: {}]   ;;  %s263_s0 = inlined_call_operand.vmem [shape: bf16[32,48], index: 0, kind: input, shape index: {}]   ;;  %s264_s2 = inlined_call_operand.vmem [shape: f32[1,128], index: 2, kind: input, shape index: {}]   ;;  %s265_s3 = inlined_call_operand.vmem [shape: bf16[32,128], index: 3, kind: output, shape index: {}]  }
   0x1   :  { %v213_v0 = vld [vmem:[%s262_s1 + $0x10] sm:$0xff]   ;;  %v214_v1 = vld [vmem:[%s262_s1 + $0x8] sm:$0xff]   ;;  %v216_v2 = vld [vmem:[%s263_s0] sm:$0xff]  }
   0x2   :  { %203 = vmatprep.subr.bf16.mxu0 %v213_v0  ;;  %v215_v3 = vld [vmem:[%s262_s1] sm:$0xff]   ;;  %209 = vmatprep.mubr.msk.bf16.mxu0 %vm65_vm0, %v216_v2  ;;  %v217_v4 = vld [vmem:[%s263_s0 + $0x8] sm:$0xff]  }
   0x3   :  { %204 = vmatpush3.bf16.msra.mxu0 %v213_v0  ;;  %v178_v6 = vld [vmem:[%s264_s2] ss:$0 sm:$0xff] }
   0x4   :  { %205 = vmatprep.subr.bf16.mxu0 %v214_v1 }
   0x7   :  { %206 = vmatpush3.bf16.msra.mxu0 %v214_v1 }
   0x8   :  { %207 = vmatprep.subr.bf16.mxu0 %v215_v3 }
   0xb   :  { %208 = vmatpush3.bf16.msra.mxu0 %v215_v3 }
   0xe   :  { %210 = vmatmul.mubr.msk.bf16.vlgmr.msra.gmra.mxu0 %vm65_vm0, %v217_v4 }
  0xce   :  { %v211_v5 = vpop.f32.mrf.mxu0 }
  0xcf   :  { %v145_v9 = vadd.f32 %v211_v5, %v178_v6 }
  0xd0   :  { %v106_v7 = vpop.f32.mrf.mxu0 }
  0xd1   :  { %v143_v12 = vadd.f32 %v178_v6, %v106_v7 }
  0xd2   :  { %v212_v8 = vpop.f32.mrf.mxu0 }
  0xd3   :  { %v146_v10 = vadd.f32 %v212_v8, %v178_v6 }
  0xd4   :  { %v109_v11 = vpop.f32.mrf.mxu0 }
  0xd5   :  { %v195_v13 = vpack.c.bf16 %v146_v10, %v145_v9  ;;  %v144_v14 = vadd.f32 %v178_v6, %v109_v11 }
  0xd7   :  { %197 = vst [vmem:[%s265_s3 + $0x8] sm:$0xff] %v195_v13   ;;  %v190_v15 = vpack.c.bf16 %v144_v14, %v143_v12 }
  0xd9   :  { %191 = vst [vmem:[%s265_s3] sm:$0xff] %v190_v15  }

// kernel: setr_pup_forward.18
= control target key start
LH: loop header
LB: loop body
LE: loop exit
PB: predicated region body
PF: predicated region fallthrough
CT: control target
= control target key end

     0   :  { %vm43_vm0 = vcmask 261120   ;;  %v400_v45 = vmov 0.0   ;;  %vm401_vm1 = vmmov 0   ;;  %s520_s0 = inlined_call_operand.vmem [shape: bf16[48,32], index: 0, kind: input, shape index: {}]   ;;  %s521_s1 = inlined_call_operand.vmem [shape: bf16[32,128], index: 1, kind: input, shape index: {}]   ;;  %s522_s3 = inlined_call_operand.vmem [shape: f32[1,32], index: 3, kind: input, shape index: {}]   ;;  %s523_s4 = inlined_call_operand.vmem [shape: f32[1,32], index: 4, kind: input, shape index: {}]   ;;  %s524_s2 = inlined_call_operand.vmem [shape: f32[1,128], index: 2, kind: input, shape index: {}]   ;;  %s525_s5 = inlined_call_operand.vmem [shape: bf16[48,128], index: 5, kind: output, shape index: {}]  }
   0x1   :  { %v355_v0 = vld [vmem:[%s520_s0 + $0x8] sm:$0xff]   ;;  %v329_v1 = vld [vmem:[%s520_s0] sm:$0xff]   ;;  %v356_v5 = vld [vmem:[%s520_s0 + $0x10] sm:$0xff]   ;;  %380 = vmatprep.subr.bf16.mxu1 %v400_v45  ;;  %364 = vmatprep.subr.bf16.mxu0 %v400_v45 }
   0x2   :  { %v334_v2 = vunpack.c.l.bf16 %v355_v0  ;;  %v335_v3 = vunpack.c.h.bf16 %v355_v0  ;;  %v330_v4 = vunpack.c.l.bf16 %v329_v1  ;;  %v331_v6 = vunpack.c.h.bf16 %v329_v1  ;;  %v386_v46 = vld [vmem:[%s521_s1 + $0x8] sm:$0xff]   ;;  %372 = vmatprep.mubr.msk.bf16.mxu1 %vm401_vm1, %v400_v45  ;;  %368 = vmatprep.mubr.msk.bf16.mxu0 %vm401_vm1, %v400_v45  ;;  %v387_v47 = vld [vmem:[%s521_s1] sm:$0xff]  }
   0x3   :  { %v338_v10 = vunpack.c.l.bf16 %v356_v5  ;;  %v339_v12 = vunpack.c.h.bf16 %v356_v5  ;;  %382 = vmatpush3.bf16.msra.mxu1 %v386_v46  ;;  %365 = vmatpush3.bf16.msra.mxu0 %v386_v46 }
   0x4   :  { %v50_v7 = vsel %vm43_vm0, %v334_v2, 0.0  ;;  %v44_v8 = vsel %vm43_vm0, %v330_v4, 0.0  ;;  %v53_v9 = vsel %vm43_vm0, %v335_v3, 0.0  ;;  %v47_v11 = vsel %vm43_vm0, %v331_v6, 0.0  ;;  %381 = vmatprep.subr.bf16.mxu1 %v400_v45  ;;  %366 = vmatprep.subr.bf16.mxu0 %v400_v45 }
   0x5   :  { %51 = vadd.xlane.f32.xlu0 %v50_v7  ;;  %45 = vadd.xlane.f32.xlu1 %v44_v8  ;;  %v56_v13 = vsel %vm43_vm0, %v338_v10, 0.0  ;;  %v59_v14 = vsel %vm43_vm0, %v339_v12, 0.0 }
   0x7   :  { %383 = vmatpush3.bf16.msra.mxu1 %v387_v47  ;;  %367 = vmatpush3.bf16.msra.mxu0 %v387_v47 }
   0x9   :  { %54 = vadd.xlane.f32.xlu0 %v53_v9  ;;  %48 = vadd.xlane.f32.xlu1 %v47_v11 }
   0xd   :  { %57 = vadd.xlane.f32.xlu0 %v56_v13  ;;  %60 = vadd.xlane.f32.xlu1 %v59_v14 }
  0x8e   :  { %v52_v15 = vpop.xlane.xlu0 %51  ;;  %v46_v16 = vpop.xlane.xlu1 %45 }
  0x8f   :  { %v65_v17 = vmul.f32 0.03125, %v52_v15  ;;  %v63_v18 = vmul.f32 0.03125, %v46_v16 }
  0x91   :  { %v447_v19 = vsub.f32 %v334_v2, %v65_v17  ;;  %v449_v20 = vsub.f32 %v330_v4, %v63_v18  ;;  %v308_v4 = vld [vmem:[%s522_s3] ss:$0 sm:$0xff] }
  0x92   :  { %v55_v21 = vpop.xlane.xlu0 %54  ;;  %v49_v22 = vpop.xlane.xlu1 %48 }
  0x93   :  { %v66_v23 = vmul.f32 0.03125, %v55_v21  ;;  %v77_v24 = vmul.f32 %v447_v19, %v447_v19  ;;  %v64_v25 = vmul.f32 0.03125, %v49_v22  ;;  %v75_v26 = vmul.f32 %v449_v20, %v449_v20 }
  0x95   :  { %v455_v27 = vsub.f32 %v335_v3, %v66_v23  ;;  %v87_v28 = vsel %vm43_vm0, %v77_v24, 0.0  ;;  %v458_v29 = vsub.f32 %v331_v6, %v64_v25  ;;  %v81_v31 = vsel %vm43_vm0, %v75_v26, 0.0 }
  0x96   :  { %88 = vadd.xlane.f32.xlu0 %v87_v28  ;;  %v58_v30 = vpop.xlane.xlu0 %57  ;;  %v61_v32 = vpop.xlane.xlu1 %60 }
  0x97   :  { %v67_v33 = vmul.f32 0.03125, %v58_v30  ;;  %v78_v34 = vmul.f32 %v455_v27, %v455_v27  ;;  %v68_v35 = vmul.f32 0.03125, %v61_v32  ;;  %v76_v36 = vmul.f32 %v458_v29, %v458_v29  ;;  %v315_v32 = vld [vmem:[%s524_s2] ss:$0 sm:$0xff] }
  0x99   :  { %v465_v37 = vsub.f32 %v338_v10, %v67_v33  ;;  %v90_v38 = vsel %vm43_vm0, %v78_v34, 0.0  ;;  %v468_v39 = vsub.f32 %v339_v12, %v68_v35  ;;  %v84_v41 = vsel %vm43_vm0, %v76_v36, 0.0  ;;  %v309_v10 = vld [vmem:[%s523_s4] ss:$0 sm:$0xff] }
  0x9a   :  { %91 = vadd.xlane.f32.xlu1 %v90_v38  ;;  %82 = vadd.xlane.f32.xlu0 %v81_v31 }
  0x9b   :  { %v79_v40 = vmul.f32 %v465_v37, %v465_v37  ;;  %v80_v42 = vmul.f32 %v468_v39, %v468_v39 }
  0x9d   :  { %v93_v43 = vsel %vm43_vm0, %v79_v40, 0.0  ;;  %v96_v44 = vsel %vm43_vm0, %v80_v42, 0.0 }
  0x9e   :  { %94 = vadd.xlane.f32.xlu0 %v93_v43  ;;  %85 = vadd.xlane.f32.xlu1 %v84_v41 }
  0xa2   :  { %97 = vadd.xlane.f32.xlu1 %v96_v44 }
 0x11f   :  { %v89_v48 = vpop.xlane.xlu0 %88 }
 0x120   :  { %v101_v49 = vmul.f32 0.03125, %v89_v48 }
 0x122   :  { %v107_v50 = vadd.f32 1e-06, %v101_v49 }
 0x123   :  { %v83_v51 = vpop.xlane.xlu0 %82  ;;  %v92_v52 = vpop.xlane.xlu1 %91 }
 0x124   :  { %388 = vrsqrt.f32 %v107_v50  ;;  %v99_v53 = vmul.f32 0.03125, %v83_v51  ;;  %v102_v54 = vmul.f32 0.03125, %v92_v52 }
 0x126   :  { %v105_v55 = vadd.f32 1e-06, %v99_v53  ;;  %v108_v56 = vadd.f32 1e-06, %v102_v54 }
 0x127   :  { %v95_v57 = vpop.xlane.xlu0 %94  ;;  %v86_v58 = vpop.xlane.xlu1 %85 }
 0x128   :  { %390 = vrsqrt.f32 %v105_v55  ;;  %v103_v59 = vmul.f32 0.03125, %v95_v57  ;;  %v100_v60 = vmul.f32 0.03125, %v86_v58 }
 0x129   :  { %392 = vrsqrt.f32 %v108_v56 }
 0x12a   :  { %v109_v61 = vadd.f32 1e-06, %v103_v59  ;;  %v106_v62 = vadd.f32 1e-06, %v100_v60 }
 0x12b   :  { %v98_v63 = vpop.xlane.xlu1 %97 }
 0x12c   :  { %394 = vrsqrt.f32 %v109_v61  ;;  %v104_v0 = vmul.f32 0.03125, %v98_v63 }
 0x12d   :  { %396 = vrsqrt.f32 %v106_v62 }
 0x12e   :  { %v110_v1 = vadd.f32 1e-06, %v104_v0 }
 0x130   :  { %398 = vrsqrt.f32 %v110_v1 }
 0x131   :  { %v389_v2 = vpop.eup %388 }
 0x132   :  { %v119_v3 = vmul.f32 %v389_v2, %v447_v19 }
 0x134   :  { %v132_v8 = vmul.f32 %v308_v4, %v119_v3 }
 0x135   :  { %v391_v5 = vpop.eup %390 }
 0x136   :  { %v393_v6 = vpop.eup %392  ;;  %v117_v9 = vmul.f32 %v391_v5, %v449_v20  ;;  %v145_v15 = vadd.f32 %v309_v10, %v132_v8 }
 0x137   :  { %v120_v7 = vmul.f32 %v393_v6, %v455_v27 }
 0x138   :  { %v130_v18 = vmul.f32 %v308_v4, %v117_v9 }
 0x139   :  { %v395_v11 = vpop.eup %394  ;;  %v133_v12 = vmul.f32 %v308_v4, %v120_v7 }
 0x13a   :  { %v397_v13 = vpop.eup %396  ;;  %v121_v14 = vmul.f32 %v395_v11, %v465_v37  ;;  %v143_v24 = vadd.f32 %v309_v10, %v130_v18 }
 0x13b   :  { %v146_v16 = vadd.f32 %v309_v10, %v133_v12  ;;  %v118_v17 = vmul.f32 %v397_v13, %v458_v29 }
 0x13c   :  { %v134_v20 = vmul.f32 %v308_v4, %v121_v14 }
 0x13d   :  { %v399_v19 = vpop.eup %398  ;;  %v150_v21 = vpack.c.bf16 %v146_v16, %v145_v15  ;;  %v131_v22 = vmul.f32 %v308_v4, %v118_v17 }
 0x13e   :  { %v122_v23 = vmul.f32 %v399_v19, %v468_v39  ;;  %v147_v28 = vadd.f32 %v309_v10, %v134_v20 }
 0x13f   :  { %373 = vmatmul.mubr.msk.bf16.vlgmr.msra.gmra.mxu1 %vm43_vm0, %v150_v21  ;;  %v144_v25 = vadd.f32 %v309_v10, %v131_v22 }
 0x140   :  { %376 = vmatprep.mubr.msk.bf16.mxu1 %vm401_vm1, %v400_v45  ;;  %v135_v26 = vmul.f32 %v308_v4, %v122_v23 }
 0x141   :  { %v149_v27 = vpack.c.bf16 %v144_v25, %v143_v24 }
 0x142   :  { %v148_v30 = vadd.f32 %v309_v10, %v135_v26 }
 0x143   :  { %369 = vmatmul.mubr.msk.bf16.vlgmr.msra.gmra.mxu0 %vm43_vm0, %v149_v27 }
 0x144   :  { %v151_v29 = vpack.c.bf16 %v148_v30, %v147_v28 }
 0x147   :  { %377 = vmatmul.mubr.msk.bf16.gmra.mxu1 %vm43_vm0, %v151_v29 }
 0x1ff   :  { %v225_v31 = vpop.f32.mrf.mxu1 }
 0x200   :  { %v270_v36 = vadd.f32 %v315_v32, %v225_v31 }
 0x201   :  { %v374_v33 = vpop.f32.mrf.mxu1 }
 0x203   :  { %v217_v34 = vpop.f32.mrf.mxu0  ;;  %v228_v35 = vpop.f32.mrf.mxu1 }
 0x204   :  { %v271_v37 = vadd.f32 %v315_v32, %v228_v35  ;;  %v268_v43 = vadd.f32 %v315_v32, %v217_v34 }
 0x205   :  { %v370_v38 = vpop.f32.mrf.mxu0  ;;  %v375_v39 = vpop.f32.mrf.mxu1 }
 0x206   :  { %v348_v40 = vpack.c.bf16 %v271_v37, %v270_v36 }
 0x207   :  { %v220_v41 = vpop.f32.mrf.mxu0  ;;  %v233_v42 = vpop.f32.mrf.mxu1 }
 0x208   :  { %357 = vst [vmem:[%s525_s5 + $0x8] sm:$0xff] %v348_v40   ;;  %v269_v44 = vadd.f32 %v315_v32, %v220_v41  ;;  %v272_v49 = vadd.f32 %v315_v32, %v233_v42 }
 0x209   :  { %v371_v45 = vpop.f32.mrf.mxu0  ;;  %v378_v46 = vpop.f32.mrf.mxu1 }
 0x20a   :  { %v343_v47 = vpack.c.bf16 %v269_v44, %v268_v43 }
 0x20b   :  { %v236_v48 = vpop.f32.mrf.mxu1 }
 0x20c   :  { %344 = vst [vmem:[%s525_s5] sm:$0xff] %v343_v47   ;;  %v273_v50 = vadd.f32 %v315_v32, %v236_v48 }
 0x20d   :  { %v379_v51 = vpop.f32.mrf.mxu1 }
 0x20e   :  { %v353_v52 = vpack.c.bf16 %v273_v50, %v272_v49 }
 0x210   :  { %358 = vst [vmem:[%s525_s5 + $0x10] sm:$0xff] %v353_v52  }

// kernel: setr_pup_forward.20
= control target key start
LH: loop header
LB: loop body
LE: loop exit
PB: predicated region body
PF: predicated region fallthrough
CT: control target
= control target key end

     0   :  { %v308_v0 = vmov 0.0   ;;  %vm309_vm0 = vmmov 0   ;;  %vm71_vm1 = vcmask 261120   ;;  %s374_s1 = inlined_call_operand.vmem [shape: bf16[32,128], index: 1, kind: input, shape index: {}]   ;;  %s375_s0 = inlined_call_operand.vmem [shape: bf16[48,32], index: 0, kind: input, shape index: {}]   ;;  %s376_s2 = inlined_call_operand.vmem [shape: f32[1,128], index: 2, kind: input, shape index: {}]   ;;  %s377_s3 = inlined_call_operand.vmem [shape: bf16[48,128], index: 3, kind: input, shape index: {}]   ;;  %s378_s4 = inlined_call_operand.vmem [shape: bf16[48,128], index: 4, kind: output, shape index: {}]  }
   0x1   :  { %297 = vmatprep.subr.bf16.mxu1 %v308_v0  ;;  %v303_v1 = vld [vmem:[%s374_s1 + $0x8] sm:$0xff]   ;;  %281 = vmatprep.subr.bf16.mxu0 %v308_v0  ;;  %v304_v2 = vld [vmem:[%s374_s1] sm:$0xff]   ;;  %v307_v5 = vld [vmem:[%s375_s0 + $0x10] sm:$0xff]  }
   0x2   :  { %289 = vmatprep.mubr.msk.bf16.mxu1 %vm309_vm0, %v308_v0  ;;  %285 = vmatprep.mubr.msk.bf16.mxu0 %vm309_vm0, %v308_v0  ;;  %v305_v3 = vld [vmem:[%s375_s0 + $0x8] sm:$0xff]   ;;  %v306_v4 = vld [vmem:[%s375_s0] sm:$0xff]   ;;  %v273_v30 = vld [vmem:[%s377_s3 + $0x10] sm:$0xff]  }
   0x3   :  { %299 = vmatpush3.bf16.msra.mxu1 %v303_v1  ;;  %282 = vmatpush3.bf16.msra.mxu0 %v303_v1  ;;  %v246_v6 = vld [vmem:[%s377_s3] sm:$0xff]   ;;  %v272_v9 = vld [vmem:[%s377_s3 + $0x8] sm:$0xff]   ;;  %v255_v35 = vunpack.c.l.bf16 %v273_v30  ;;  %v256_v36 = vunpack.c.h.bf16 %v273_v30 }
   0x4   :  { %298 = vmatprep.subr.bf16.mxu1 %v308_v0  ;;  %283 = vmatprep.subr.bf16.mxu0 %v308_v0  ;;  %v232_v8 = vld [vmem:[%s376_s2] ss:$0 sm:$0xff]  ;;  %v247_v12 = vunpack.c.l.bf16 %v246_v6  ;;  %v251_v16 = vunpack.c.l.bf16 %v272_v9  ;;  %v252_v17 = vunpack.c.h.bf16 %v272_v9  ;;  %v248_v18 = vunpack.c.h.bf16 %v246_v6 }
   0x7   :  { %300 = vmatpush3.bf16.msra.mxu1 %v304_v2  ;;  %284 = vmatpush3.bf16.msra.mxu0 %v304_v2 }
   0xa   :  { %290 = vmatmul.mubr.msk.bf16.vlgmr.msra.gmra.mxu1 %vm71_vm1, %v305_v3  ;;  %286 = vmatmul.mubr.msk.bf16.vlgmr.msra.gmra.mxu0 %vm71_vm1, %v306_v4 }
   0xb   :  { %293 = vmatprep.mubr.msk.bf16.mxu1 %vm309_vm0, %v308_v0 }
  0x12   :  { %294 = vmatmul.mubr.msk.bf16.gmra.mxu1 %vm71_vm1, %v307_v5 }
  0xca   :  { %v123_v7 = vpop.f32.mrf.mxu1  ;;  %v115_v10 = vpop.f32.mrf.mxu0 }
  0xcb   :  { %v166_v11 = vadd.f32 %v232_v8, %v115_v10  ;;  %v168_v15 = vadd.f32 %v232_v8, %v123_v7 }
  0xcc   :  { %v291_v13 = vpop.f32.mrf.mxu1  ;;  %v287_v14 = vpop.f32.mrf.mxu0 }
  0xcd   :  { %v184_v21 = vadd.f32 %v247_v12, %v166_v11  ;;  %v186_v26 = vadd.f32 %v251_v16, %v168_v15 }
  0xce   :  { %v126_v19 = vpop.f32.mrf.mxu1  ;;  %v118_v20 = vpop.f32.mrf.mxu0 }
  0xcf   :  { %v169_v22 = vadd.f32 %v232_v8, %v126_v19  ;;  %v167_v23 = vadd.f32 %v232_v8, %v118_v20 }
  0xd0   :  { %v292_v24 = vpop.f32.mrf.mxu1  ;;  %v288_v25 = vpop.f32.mrf.mxu0 }
  0xd1   :  { %v187_v27 = vadd.f32 %v252_v17, %v169_v22  ;;  %v185_v28 = vadd.f32 %v248_v18, %v167_v23 }
  0xd2   :  { %v131_v29 = vpop.f32.mrf.mxu1 }
  0xd3   :  { %v265_v31 = vpack.c.bf16 %v187_v27, %v186_v26  ;;  %v260_v32 = vpack.c.bf16 %v185_v28, %v184_v21  ;;  %v170_v34 = vadd.f32 %v232_v8, %v131_v29 }
  0xd4   :  { %v295_v33 = vpop.f32.mrf.mxu1 }
  0xd5   :  { %274 = vst [vmem:[%s378_s4 + $0x8] sm:$0xff] %v265_v31   ;;  %261 = vst [vmem:[%s378_s4] sm:$0xff] %v260_v32   ;;  %v188_v40 = vadd.f32 %v255_v35, %v170_v34 }
  0xd6   :  { %v134_v37 = vpop.f32.mrf.mxu1 }
  0xd7   :  { %v171_v38 = vadd.f32 %v232_v8, %v134_v37 }
  0xd8   :  { %v296_v39 = vpop.f32.mrf.mxu1 }
  0xd9   :  { %v189_v41 = vadd.f32 %v256_v36, %v171_v38 }
  0xdb   :  { %v270_v42 = vpack.c.bf16 %v189_v41, %v188_v40 }
  0xdd   :  { %275 = vst [vmem:[%s378_s4 + $0x10] sm:$0xff] %v270_v42  }

// kernel: setr_pup_forward.19
= control target key start
LH: loop header
LB: loop body
LE: loop exit
PB: predicated region body
PF: predicated region fallthrough
CT: control target
= control target key end

     0   :  { %s1356_s9 = smov 0   ;;  %s1358_s10 = smov 0   ;;  %s1576_s0 = inlined_call_operand.vmem [shape: bf16[2,24,96], index: 0, kind: input, shape index: {}, may-alias: {0,1}]   ;;  %s1577_s1 = inlined_call_operand.vmem [shape: bf16[2,24,96], index: 1, kind: input, shape index: {}, may-alias: {0,1}]   ;;  %s1578_s2 = inlined_call_operand.vmem [shape: bf16[2,24,32], index: 2, kind: output, shape index: {}]  }
   0x1   :  { %s1360_s11 = smov 0  }
   0x2 LB: > { %s24_s12 = sadd.s32 1, %s1320_s10  ;;  %p1055_p0 = scmp.ge.s32.totalorder %s1324_s11, 1  ;;  %s1324_s11 = sphi %s1360_s11, %s12_s11   ;;  %s1320_s10 = sphi %s1358_s10, %s1580_s10   ;;  %s1316_s9 = sphi %s1356_s9, %s1579_s9  }
   0x3   : > { %p26_p1 = scmp.ge.s32.totalorder %s24_s12, 2  ;;  %p143_p2 = scmp.lt.s32.totalorder %s1324_s11, 3 }
   0x5   : > { %s1582_s12 = smov (%p26_p1, %s24_s12), 0  ;;  %p144_p3 = pnand %p1055_p0, %p143_p2 }
   0x6   : > { %p179_p4 = scmp.lt.s32.totalorder (!%p144_p3), %s1316_s9, 1  ;;  %s1326_s20 = smov (!%p144_p3), 96  }
   0x7   : > { %147 = sbr.rel (%p144_p3) target bundleno = 1964 (0x7ac), region = 28  ;;  %s1327_s21 = smov (!%p144_p3), 64  }
   0x8   : > { %s1329_s22 = smov (!%p144_p3), 120   ;;  %s1330_s23 = smov (!%p144_p3), 88  }
   0x9   : > { %s1331_s24 = smov (!%p144_p3), 56   ;;  %s1332_s25 = smov (!%p144_p3), 80  }
   0xa   : > { %s1333_s26 = smov (!%p144_p3), 112   ;;  %s1334_s27 = smov (!%p144_p3), 48  }
   0xb   : > { %s1335_s28 = smov (!%p144_p3), 72   ;;  %s1336_s29 = smov (!%p144_p3), 104  }
   0xc   : > { %s1584_s9 = smov (!%p179_p4, %s1316_s9), 1  ;;  %vm234_vm0 = vcmask 64512   ;;  %vm336_vm1 = vcmask 1043456   ;;  %v204_v11 = vlaneseq  ;;  %v1328_v13 = vmov -1e+30   ;;  %s1337_s30 = smov 40  }
   0xd   : > { %s1374_s13 = smul.u32 12, %s1584_s9  ;;  %vm295_vm3 = vcmask 195584   ;;  %s1338_s3 = smov 8   ;;  %vm928_vm4 = vcmask 130048   ;;  %vm948_vm5 = vcmask 257024  }
   0xe   : > { %v205_v12 = vand.u32 127, %v204_v11  ;;  %s1339_s4 = smov 16   ;;  %s1340_s5 = smov 24  }
   0xf   : > { %s192_s16 = scalar_lea.vmem %s1577_s1, %s1374_s13  ;;  %s186_s19 = scalar_lea.vmem %s1576_s0, %s1374_s13 }
  0x10   : > { %v1384_v0 = vld [vmem:[%s192_s16 + $0x8] ss:$0 sps:$4 sm:$0xff]   ;;  %v1386_v1 = vld [vmem:[%s192_s16] sm:$0xff]   ;;  %vm206_vm2 = vcmp.lt.s32.totalorder %v205_v12, 17  ;;  %s201_s8 = scalar_lea.vmem %s1578_s2, %s1374_s13 }
  0x11   : > { %232 = vrot.lane.b32.xlu0 %v1384_v0, %s1326_s20  ;;  %v1389_v2 = vld [vmem:[%s186_s19] sm:$0xff]   ;;  %327 = vrot.lane.b32.xlu1 %v1384_v0, %s1327_s21  ;;  %v1400_v7 = vld [vmem:[%s186_s19 + $0x8] ss:$0 sps:$4 sm:$0xff]   ;;  %v1406_v14 = vsel %vm206_vm2, 0.0, %v1328_v13 }
  0x12   : > { %1123 = vmatprep.mubr.msk.bf16.mxu0 %vm234_vm0, %v1389_v2 }
  0x15   : > { %230 = vrot.lane.b32.xlu0 %v1386_v1, %s1326_s20  ;;  %325 = vrot.lane.b32.xlu1 %v1386_v1, %s1327_s21 }
  0x83   : > { %v233_v3 = vpop.permute.xlu0 %232  ;;  %v328_v8 = vpop.permute.xlu1 %327 }
  0x84   : > { %1183 = vmatprep.subr.msk.bf16.mxu0 %vm234_vm0, %v233_v3  ;;  %v245_v4 = vsel %vm234_vm0, %v233_v3, 0  ;;  %1185 = vmatprep.subr.msk.bf16.mxu1 %vm336_vm1, %v328_v8  ;;  %v338_v9 = vsel %vm336_vm1, %v328_v8, 0 }
  0x85   : > { %1120 = vmatpush3.bf16.xpose.msra.mxu0 %v245_v4  ;;  %1128 = vmatpush3.bf16.msra.mxu1 %v338_v9 }
  0x87   : > { %v231_v5 = vpop.permute.xlu0 %230  ;;  %v326_v10 = vpop.permute.xlu1 %325 }
  0x88   : > { %1184 = vmatprep.subr.msk.bf16.mxu0 %vm234_vm0, %v231_v5  ;;  %v242_v6 = vsel %vm234_vm0, %v231_v5, 0  ;;  %1129 = vmatprep.subr.bf16.mxu1 %v326_v10 }
  0x89   : > { %1130 = vmatpush3.bf16.msra.mxu1 %v326_v10 }
  0x8d   : > { %1122 = vmatpush3.bf16.xpose.msra.mxu0 %v242_v6 }
  0x94   : > { %1124 = vmatmul.mubr.msk.bf16.vlgmr.msra.gmra.mxu0 %vm234_vm0, %v1400_v7 }
 0x154   : > { %v1125_v15 = vpop.f32.mrf.mxu0 }
 0x155   : > { %v290_v16 = vadd.f32 %v1125_v15, %v1406_v14 }
 0x156   : > { %v281_v17 = vpop.f32.mrf.mxu0 }
 0x157   : > { %v282_v18 = vadd.f32 %v281_v17, %v1406_v14  ;;  %v302_v19 = vsel %vm295_vm3, %v290_v16, -inf }
 0x158   : > { %303 = vmax.xlane.f32.xlu0 %v302_v19  ;;  %v1126_v20 = vpop.f32.mrf.mxu0 }
 0x159   : > { %v296_v21 = vsel %vm295_vm3, %v282_v18, -inf }
 0x15a   : > { %v284_v22 = vpop.f32.mrf.mxu0  ;;  %297 = vmax.xlane.f32.xlu1 %v296_v21 }
 0x15b   : > { %v285_v23 = vadd.f32 %v284_v22, %v1406_v14 }
 0x15d   : > { %v299_v24 = vsel %vm295_vm3, %v285_v23, -inf }
 0x15e   : > { %300 = vmax.xlane.f32.xlu1 %v299_v24 }
 0x16e   : > { %396 = vrot.lane.b32.xlu0 %v1400_v7, %s1329_s22 }
 0x16f   : > { %400 = vrot.lane.b32.xlu1 %v1384_v0, %s1330_s23 }
 0x173   : > { %398 = vrot.lane.b32.xlu1 %v1386_v1, %s1330_s23 }
 0x177   : > { %394 = vrot.lane.b32.xlu1 %v1389_v2, %s1329_s22 }
 0x17b   : > { %493 = vrot.lane.b32.xlu1 %v1384_v0, %s1331_s24 }
 0x1e1   : > { %v304_v25 = vpop.xlane.xlu0 %303 }
 0x1e2   : > { %v307_v26 = vsub.f32 %v290_v16, %v304_v25 }
 0x1e3   : > { %v298_v27 = vpop.xlane.xlu1 %297 }
 0x1e4   : > { %v305_v28 = vsub.f32 %v282_v18, %v298_v27  ;;  %v312_v29 = vmul.f32 1.442695, %v307_v26 }
 0x1e5   : > { %v397_v44 = vpop.permute.xlu0 %396 }
 0x1e6   : > { %v308_v30 = vmul.f32 1.442695, %v305_v28  ;;  %1254 = vpow2.f32 %v312_v29 }
 0x1e7   : > { %v301_v31 = vpop.xlane.xlu1 %300 }
 0x1e8   : > { %v306_v32 = vsub.f32 %v285_v23, %v301_v31  ;;  %1256 = vpow2.f32 %v308_v30 }
 0x1ea   : > { %v310_v33 = vmul.f32 1.442695, %v306_v32 }
 0x1eb   : > { %v401_v34 = vpop.permute.xlu1 %400 }
 0x1ec   : > { %1258 = vpow2.f32 %v310_v33  ;;  %1186 = vmatprep.subr.msk.bf16.mxu1 %vm234_vm0, %v401_v34  ;;  %v412_v40 = vsel %vm234_vm0, %v401_v34, 0 }
 0x1ef   : > { %v399_v36 = vpop.permute.xlu1 %398 }
 0x1f0   : > { %v409_v43 = vsel %vm234_vm0, %v399_v36, 0 }
 0x1f3   : > { %v1421_v35 = vpop.eup %1254  ;;  %v395_v42 = vpop.permute.xlu1 %394 }
 0x1f4   : > { %v324_v41 = vpack.c.bf16 %v1421_v35, %v1421_v35 }
 0x1f5   : > { %v1423_v37 = vpop.eup %1256 }
 0x1f7   : > { %v494_v45 = vpop.permute.xlu1 %493 }
 0x1f8   : > { %v503_v46 = vsel %vm336_vm1, %v494_v45, 0  ;;  %1188 = vmatprep.subr.msk.bf16.mxu0 %vm336_vm1, %v494_v45 }
 0x1f9   : > { %v1425_v38 = vpop.eup %1258  ;;  %1144 = vmatpush3.bf16.msra.mxu0 %v503_v46 }
 0x1fa   : > { %v323_v39 = vpack.c.bf16 %v1425_v38, %v1423_v37 }
 0x1fc   : > { %1131 = vmatprep.mubr.msk.bf16.mxu1 %vm295_vm3, %v323_v39 }
 0x1fd   : > { %1132 = vmatmul.mubr.msk.bf16.vlgmr.msra.gmra.mxu1 %vm295_vm3, %v324_v41 }
 0x1fe   : > { %1136 = vmatpush3.bf16.xpose.msra.mxu1 %v412_v40  ;;  %1139 = vmatprep.mubr.msk.bf16.mxu1 %vm234_vm0, %v395_v42 }
 0x1ff   : > { %1187 = vmatprep.subr.msk.bf16.mxu1 %vm234_vm0, %v399_v36 }
 0x206   : > { %1138 = vmatpush3.bf16.xpose.msra.mxu1 %v409_v43 }
 0x20d   : > { %1140 = vmatmul.mubr.msk.bf16.vlgmr.msra.gmra.mxu1 %vm234_vm0, %v397_v44 }
 0x2bd   : > { %v1440_v47 = vpop.f32.mrf.mxu1 }
 0x2bf   : > { %v1442_v48 = vpop.f32.mrf.mxu1 }
 0x2c1   : > { %v1134_v49 = vpop.f32.mrf.mxu1 }
 0x2c3   : > { %v1444_v50 = vpop.f32.mrf.mxu1 }
 0x2cd   : > { %v1141_v51 = vpop.f32.mrf.mxu1 }
 0x2ce   : > { %v457_v52 = vadd.f32 %v1141_v51, %v1406_v14 }
 0x2cf   : > { %v448_v53 = vpop.f32.mrf.mxu1 }
 0x2d0   : > { %v449_v54 = vadd.f32 %v448_v53, %v1406_v14  ;;  %v468_v55 = vsel %vm295_vm3, %v457_v52, -inf }
 0x2d1   : > { %469 = vmax.xlane.f32.xlu1 %v468_v55  ;;  %v1142_v56 = vpop.f32.mrf.mxu1 }
 0x2d2   : > { %v462_v59 = vsel %vm295_vm3, %v449_v54, -inf }
 0x2d3   : > { %v451_v57 = vpop.f32.mrf.mxu1 }
 0x2d4   : > { %v452_v58 = vadd.f32 %v451_v57, %v1406_v14 }
 0x2d5   : > { %463 = vmax.xlane.f32.xlu1 %v462_v59 }
 0x2d6   : > { %v465_v60 = vsel %vm295_vm3, %v452_v58, -inf }
 0x2d7   : > { %466 = vmax.xlane.f32.xlu0 %v465_v60 }
 0x2e6   : > { %565 = vrot.lane.b32.xlu1 %v1384_v0, %s1332_s25 }
 0x2ea   : > { %563 = vrot.lane.b32.xlu1 %v1386_v1, %s1332_s25 }
 0x2ed   : > { %491 = vrot.lane.b32.xlu0 %v1386_v1, %s1331_s24 }
 0x2ee   : > { %559 = vrot.lane.b32.xlu1 %v1389_v2, %s1333_s26 }
 0x2f2   : > { %561 = vrot.lane.b32.xlu1 %v1400_v7, %s1333_s26 }
 0x2f6   : > { %656 = vrot.lane.b32.xlu1 %v1386_v1, %s1334_s27 }
 0x35a   : > { %v470_v61 = vpop.xlane.xlu1 %469 }
 0x35b   : > { %v473_v62 = vsub.f32 %v457_v52, %v470_v61 }
 0x35d   : > { %v478_v3 = vmul.f32 1.442695, %v473_v62 }
 0x35e   : > { %v464_v63 = vpop.xlane.xlu1 %463 }
 0x35f   : > { %v471_v4 = vsub.f32 %v449_v54, %v464_v63  ;;  %1260 = vpow2.f32 %v478_v3 }
 0x360   : > { %v467_v5 = vpop.xlane.xlu0 %466 }
 0x361   : > { %v474_v6 = vmul.f32 1.442695, %v471_v4  ;;  %v472_v8 = vsub.f32 %v452_v58, %v467_v5 }
 0x362   : > { %v566_v11 = vpop.permute.xlu1 %565 }
 0x363   : > { %v476_v9 = vmul.f32 1.442695, %v472_v8  ;;  %1262 = vpow2.f32 %v474_v6  ;;  %v577_v18 = vsel %vm234_vm0, %v566_v11, 0 }
 0x364   : > { %v492_v10 = vpop.permute.xlu0 %491 }
 0x365   : > { %1264 = vpow2.f32 %v476_v9  ;;  %1145 = vmatprep.subr.bf16.mxu0 %v492_v10 }
 0x366   : > { %1146 = vmatpush3.bf16.msra.mxu0 %v492_v10  ;;  %v564_v12 = vpop.permute.xlu1 %563 }
 0x367   : > { %1189 = vmatprep.subr.msk.bf16.mxu0 %vm234_vm0, %v566_v11  ;;  %v574_v21 = vsel %vm234_vm0, %v564_v12, 0 }
 0x36a   : > { %v560_v20 = vpop.permute.xlu1 %559 }
 0x36c   : > { %v1461_v13 = vpop.eup %1260 }
 0x36d   : > { %v490_v19 = vpack.c.bf16 %v1461_v13, %v1461_v13 }
 0x36e   : > { %v562_v22 = vpop.permute.xlu1 %561 }
 0x370   : > { %v1463_v15 = vpop.eup %1262 }
 0x372   : > { %v1465_v16 = vpop.eup %1264  ;;  %v657_v42 = vpop.permute.xlu1 %656 }
 0x373   : > { %v489_v17 = vpack.c.bf16 %v1465_v16, %v1463_v15 }
 0x375   : > { %1147 = vmatprep.mubr.msk.bf16.mxu0 %vm295_vm3, %v489_v17 }
 0x376   : > { %1148 = vmatmul.mubr.msk.bf16.vlgmr.msra.gmra.mxu0 %vm295_vm3, %v490_v19 }
 0x377   : > { %1152 = vmatpush3.bf16.xpose.msra.mxu0 %v577_v18  ;;  %1155 = vmatprep.mubr.msk.bf16.mxu0 %vm234_vm0, %v560_v20 }
 0x378   : > { %1190 = vmatprep.subr.msk.bf16.mxu0 %vm234_vm0, %v564_v12 }
 0x37f   : > { %1154 = vmatpush3.bf16.xpose.msra.mxu0 %v574_v21 }
 0x386   : > { %1156 = vmatmul.mubr.msk.bf16.vlgmr.msra.gmra.mxu0 %vm234_vm0, %v562_v22  ;;  %v480_v22 = vsel %vm295_vm3, %v1463_v15, 0.0 }
 0x436   : > { %v1478_v23 = vpop.f32.mrf.mxu0 }
 0x438   : > { %v1480_v24 = vpop.f32.mrf.mxu0 }
 0x43a   : > { %v1150_v25 = vpop.f32.mrf.mxu0 }
 0x43b   : > { %v483_v25 = vsel %vm295_vm3, %v1465_v16, 0.0 }
 0x43c   : > { %v1482_v26 = vpop.f32.mrf.mxu0 }
 0x446   : > { %v1157_v27 = vpop.f32.mrf.mxu0 }
 0x447   : > { %v622_v28 = vadd.f32 %v1157_v27, %v1406_v14  ;;  %v486_v27 = vsel %vm295_vm3, %v1461_v13, 0.0 }
 0x448   : > { %v613_v29 = vpop.f32.mrf.mxu0 }
 0x449   : > { %v614_v30 = vadd.f32 %v613_v29, %v1406_v14  ;;  %v633_v31 = vsel %vm295_vm3, %v622_v28, -inf }
 0x44a   : > { %634 = vmax.xlane.f32.xlu0 %v633_v31  ;;  %v1158_v32 = vpop.f32.mrf.mxu0 }
 0x44b   : > { %v627_v36 = vsel %vm295_vm3, %v614_v30, -inf }
 0x44c   : > { %v616_v33 = vpop.f32.mrf.mxu0 }
 0x44d   : > { %v617_v34 = vadd.f32 %v616_v33, %v1406_v14 }
 0x44e   : > { %628 = vmax.xlane.f32.xlu0 %v627_v36 }
 0x44f   : > { %v630_v39 = vsel %vm295_vm3, %v617_v34, -inf }
 0x450   : > { %631 = vmax.xlane.f32.xlu1 %v630_v39 }
 0x461   : > { %730 = vrot.lane.b32.xlu1 %v1384_v0, %s1335_s28 }
 0x464   : > { %658 = vrot.lane.b32.xlu0 %v1384_v0, %s1334_s27 }
 0x465   : > { %724 = vrot.lane.b32.xlu1 %v1389_v2, %s1336_s29 }
 0x468   : > { %728 = vrot.lane.b32.xlu0 %v1386_v1, %s1335_s28 }
 0x46c   : > { %726 = vrot.lane.b32.xlu0 %v1400_v7, %s1336_s29 }
 0x4d3   : > { %v635_v40 = vpop.xlane.xlu0 %634 }
 0x4d4   : > { %v638_v41 = vsub.f32 %v622_v28, %v635_v40 }
 0x4d6   : > { %v643_v44 = vmul.f32 1.442695, %v638_v41 }
 0x4d7   : > { %v629_v43 = vpop.xlane.xlu0 %628 }
 0x4d8   : > { %v636_v45 = vsub.f32 %v614_v30, %v629_v43  ;;  %1266 = vpow2.f32 %v643_v44 }
 0x4d9   : > { %v632_v46 = vpop.xlane.xlu1 %631 }
 0x4da   : > { %v639_v49 = vmul.f32 1.442695, %v636_v45  ;;  %v637_v51 = vsub.f32 %v617_v34, %v632_v46 }
 0x4db   : > { %v659_v52 = vpop.permute.xlu0 %658 }
 0x4dc   : > { %v641_v53 = vmul.f32 1.442695, %v637_v51  ;;  %v668_v54 = vsel %vm336_vm1, %v659_v52, 0  ;;  %1191 = vmatprep.subr.msk.bf16.mxu1 %vm336_vm1, %v659_v52  ;;  %1268 = vpow2.f32 %v639_v49  ;;  %v314_v51 = vsel %vm295_vm3, %v1423_v37, 0.0 }
 0x4dd   : > { %1160 = vmatpush3.bf16.msra.mxu1 %v668_v54  ;;  %v731_v2 = vpop.permute.xlu1 %730  ;;  %v317_v52 = vsel %vm295_vm3, %v1425_v38, 0.0 }
 0x4de   : > { %1270 = vpow2.f32 %v641_v53  ;;  %1161 = vmatprep.subr.bf16.mxu1 %v657_v42  ;;  %v742_v58 = vsel %vm234_vm0, %v731_v2, 0  ;;  %v320_v53 = vsel %vm295_vm3, %v1421_v35, 0.0 }
 0x4df   : > { %v729_v61 = vpop.permute.xlu0 %728 }
 0x4e0   : > { %v739_v62 = vsel %vm234_vm0, %v729_v61, 0 }
 0x4e1   : > { %1162 = vmatpush3.bf16.msra.mxu1 %v657_v42  ;;  %v725_v60 = vpop.permute.xlu1 %724 }
 0x4e2   : > { %1192 = vmatprep.subr.msk.bf16.mxu1 %vm234_vm0, %v731_v2 }
 0x4e3   : > { %v727_v63 = vpop.permute.xlu0 %726 }
 0x4e5   : > { %v1267_v7 = vpop.eup %1266 }
 0x4e6   : > { %v655_v59 = vpack.c.bf16 %v1267_v7, %v1267_v7 }
 0x4e9   : > { %v1269_v55 = vpop.eup %1268 }
 0x4eb   : > { %v1271_v56 = vpop.eup %1270 }
 0x4ec   : > { %v654_v57 = vpack.c.bf16 %v1271_v56, %v1269_v55  ;;  %v648_v28 = vsel %vm295_vm3, %v1271_v56, 0.0 }
 0x4ee   : > { %1163 = vmatprep.mubr.msk.bf16.mxu1 %vm295_vm3, %v654_v57 }
 0x4ef   : > { %1164 = vmatmul.mubr.msk.bf16.vlgmr.msra.gmra.mxu1 %vm295_vm3, %v655_v59 }
 0x4f0   : > { %1168 = vmatpush3.bf16.xpose.msra.mxu1 %v742_v58  ;;  %1171 = vmatprep.mubr.msk.bf16.mxu1 %vm234_vm0, %v725_v60 }
 0x4f1   : > { %1193 = vmatprep.subr.msk.bf16.mxu1 %vm234_vm0, %v729_v61 }
 0x4f8   : > { %1170 = vmatpush3.bf16.xpose.msra.mxu1 %v739_v62 }
 0x4ff   : > { %1172 = vmatmul.mubr.msk.bf16.vlgmr.msra.gmra.mxu1 %vm234_vm0, %v727_v63 }
 0x5af   : > { %v1506_v3 = vpop.f32.mrf.mxu1 }
 0x5b1   : > { %v1508_v4 = vpop.f32.mrf.mxu1 }
 0x5b3   : > { %v1166_v5 = vpop.f32.mrf.mxu1 }
 0x5b5   : > { %v1510_v6 = vpop.f32.mrf.mxu1 }
 0x5bf   : > { %v1173_v8 = vpop.f32.mrf.mxu1 }
 0x5c0   : > { %v787_v9 = vadd.f32 %v1173_v8, %v1406_v14 }
 0x5c1   : > { %v778_v10 = vpop.f32.mrf.mxu1 }
 0x5c2   : > { %v779_v11 = vadd.f32 %v778_v10, %v1406_v14  ;;  %v798_v12 = vsel %vm295_vm3, %v787_v9, -inf }
 0x5c3   : > { %799 = vmax.xlane.f32.xlu0 %v798_v12  ;;  %v1174_v17 = vpop.f32.mrf.mxu1 }
 0x5c4   : > { %v792_v18 = vsel %vm295_vm3, %v779_v11, -inf }
 0x5c5   : > { %v781_v19 = vpop.f32.mrf.mxu1  ;;  %793 = vmax.xlane.f32.xlu1 %v792_v18 }
 0x5c6   : > { %v782_v20 = vadd.f32 %v781_v19, %v1406_v14  ;;  %v645_v14 = vsel %vm295_vm3, %v1269_v55, 0.0 }
 0x5c8   : > { %v795_v21 = vsel %vm295_vm3, %v782_v20, -inf }
 0x5c9   : > { %796 = vmax.xlane.f32.xlu0 %v795_v21 }
 0x5d6   : > { %823 = vrot.lane.b32.xlu1 %v1384_v0, %s1337_s30  ;;  %v651_v0 = vsel %vm295_vm3, %v1267_v7, 0.0 }
 0x5df   : > { %821 = vrot.lane.b32.xlu0 %v1386_v1, %s1337_s30 }
 0x5fa   : > { %481 = vadd.xlane.f32.xlu1 %v480_v22 }
 0x5fe   : > { %484 = vadd.xlane.f32.xlu0 %v483_v25  ;;  %487 = vadd.xlane.f32.xlu1 %v486_v27 }
 0x602   : > { %646 = vadd.xlane.f32.xlu0 %v645_v14  ;;  %649 = vadd.xlane.f32.xlu1 %v648_v28 }
 0x606   : > { %652 = vadd.xlane.f32.xlu0 %v651_v0 }
 0x64c   : > { %v800_v1 = vpop.xlane.xlu0 %799 }
 0x64d   : > { %v803_v15 = vsub.f32 %v787_v9, %v800_v1 }
 0x64e   : > { %v794_v29 = vpop.xlane.xlu1 %793 }
 0x64f   : > { %v801_v30 = vsub.f32 %v779_v11, %v794_v29  ;;  %v808_v31 = vmul.f32 1.442695, %v803_v15 }
 0x651   : > { %v804_v16 = vmul.f32 1.442695, %v801_v30 }
 0x652   : > { %v797_v32 = vpop.xlane.xlu0 %796  ;;  %v824_v33 = vpop.permute.xlu1 %823 }
 0x653   : > { %1272 = vpow2.f32 %v804_v16  ;;  %v802_v13 = vsub.f32 %v782_v20, %v797_v32  ;;  %v833_v34 = vsel %vm336_vm1, %v824_v33, 0  ;;  %1194 = vmatprep.subr.msk.bf16.mxu0 %vm336_vm1, %v824_v33 }
 0x654   : > { %1176 = vmatpush3.bf16.msra.mxu0 %v833_v34  ;;  %1274 = vpow2.f32 %v808_v31 }
 0x655   : > { %v806_v36 = vmul.f32 1.442695, %v802_v13 }
 0x656   : > { %v822_v39 = vpop.permute.xlu0 %821 }
 0x657   : > { %1276 = vpow2.f32 %v806_v36  ;;  %1177 = vmatprep.subr.bf16.mxu0 %v822_v39 }
 0x658   : > { %1178 = vmatpush3.bf16.msra.mxu0 %v822_v39 }
 0x660   : > { %v1273_v40 = vpop.eup %1272 }
 0x661   : > { %v810_v41 = vsel %vm295_vm3, %v1273_v40, 0.0  ;;  %v1275_v42 = vpop.eup %1274 }
 0x662   : > { %811 = vadd.xlane.f32.xlu1 %v810_v41  ;;  %v816_v45 = vsel %vm295_vm3, %v1275_v42, 0.0  ;;  %v820_v49 = vpack.c.bf16 %v1275_v42, %v1275_v42 }
 0x664   : > { %v1277_v43 = vpop.eup %1276 }
 0x665   : > { %v813_v44 = vsel %vm295_vm3, %v1277_v43, 0.0  ;;  %v819_v46 = vpack.c.bf16 %v1277_v43, %v1273_v40 }
 0x666   : > { %814 = vadd.xlane.f32.xlu0 %v813_v44  ;;  %817 = vadd.xlane.f32.xlu1 %v816_v45 }
 0x667   : > { %1179 = vmatprep.mubr.msk.bf16.mxu0 %vm295_vm3, %v819_v46 }
 0x668   : > { %1180 = vmatmul.mubr.msk.bf16.vlgmr.msra.gmra.mxu0 %vm295_vm3, %v820_v49 }
 0x66a   : > { %315 = vadd.xlane.f32.xlu0 %v314_v51  ;;  %318 = vadd.xlane.f32.xlu1 %v317_v52 }
 0x66e   : > { %321 = vadd.xlane.f32.xlu0 %v320_v53 }
 0x683   : > { %v482_v54 = vpop.xlane.xlu1 %481 }
 0x684   : > { %1278 = vrcp.f32 %v482_v54 }
 0x687   : > { %v485_v2 = vpop.xlane.xlu0 %484  ;;  %v488_v7 = vpop.xlane.xlu1 %487 }
 0x688   : > { %1280 = vrcp.f32 %v485_v2 }
 0x689   : > { %1282 = vrcp.f32 %v488_v7 }
 0x68b   : > { %v647_v55 = vpop.xlane.xlu0 %646  ;;  %v650_v56 = vpop.xlane.xlu1 %649 }
 0x68c   : > { %1284 = vrcp.f32 %v647_v55 }
 0x68d   : > { %1286 = vrcp.f32 %v650_v56 }
 0x68f   : > { %v653_v37 = vpop.xlane.xlu0 %652 }
 0x690   : > { %1288 = vrcp.f32 %v653_v37 }
 0x691   : > { %v1279_v57 = vpop.eup %1278 }
 0x692   : > { %v554_v59 = vmul.f32 %v1279_v57, %v1480_v24 }
 0x695   : > { %v1281_v38 = vpop.eup %1280 }
 0x696   : > { %v1283_v58 = vpop.eup %1282  ;;  %v556_v35 = vmul.f32 %v1281_v38, %v1482_v26 }
 0x697   : > { %v558_v60 = vmul.f32 %v1283_v58, %v1478_v23 }
 0x698   : > { %v1235_v61 = vpack.i.bf16 %v556_v35, %v554_v59 }
 0x699   : > { %v1285_v62 = vpop.eup %1284  ;;  %896 = vrot.lane.b32.xlu0 %v558_v60, %s1338_s3 }
 0x69a   : > { %v1287_v63 = vpop.eup %1286  ;;  %1236 = vrot.lane.b32.xlu1 %v1235_v61, %s1338_s3  ;;  %v719_v5 = vmul.f32 %v1285_v62, %v1508_v4 }
 0x69b   : > { %v721_v8 = vmul.f32 %v1287_v63, %v1510_v6 }
 0x69d   : > { %v1240_v9 = vpack.i.bf16 %v721_v8, %v719_v5  ;;  %v1289_v10 = vpop.eup %1288 }
 0x69e   : > { %v723_v24 = vmul.f32 %v1289_v10, %v1506_v3 }
 0x69f   : > { %1241 = vrot.lane.b32.xlu1 %v1240_v9, %s1339_s4 }
 0x6a3   : > { %908 = vrot.lane.b32.xlu1 %v723_v24, %s1339_s4 }
 0x6eb   : > { %v812_v26 = vpop.xlane.xlu1 %811 }
 0x6ef   : > { %v818_v11 = vpop.xlane.xlu1 %817  ;;  %v815_v23 = vpop.xlane.xlu0 %814 }
 0x6f0   : > { %1290 = vrcp.f32 %v818_v11 }
 0x6f1   : > { %1292 = vrcp.f32 %v812_v26 }
 0x6f2   : > { %1294 = vrcp.f32 %v815_v23 }
 0x6f3   : > { %v316_v27 = vpop.xlane.xlu0 %315  ;;  %v319_v28 = vpop.xlane.xlu1 %318 }
 0x6f7   : > { %v322_v14 = vpop.xlane.xlu0 %321 }
 0x6f8   : > { %1296 = vrcp.f32 %v322_v14 }
 0x6f9   : > { %1298 = vrcp.f32 %v316_v27 }
 0x6fa   : > { %1300 = vrcp.f32 %v319_v28 }
 0x6fd   : > { %v1291_v12 = vpop.eup %1290 }
 0x6fe   : > { %v1293_v6 = vpop.eup %1292 }
 0x6ff   : > { %v1295_v20 = vpop.eup %1294 }
 0x705   : > { %v1297_v15 = vpop.eup %1296 }
 0x706   : > { %v393_v31 = vmul.f32 %v1297_v15, %v1440_v47  ;;  %v1299_v36 = vpop.eup %1298 }
 0x707   : > { %v1301_v39 = vpop.eup %1300  ;;  %v389_v43 = vmul.f32 %v1299_v36, %v1442_v48 }
 0x708   : > { %v391_v44 = vmul.f32 %v1301_v39, %v1444_v50 }
 0x70b   : > { %v897_v29 = vpop.permute.xlu0 %896 }
 0x70c   : > { %v1237_v0 = vpop.permute.xlu1 %1236  ;;  %v927_v16 = vsel %vm234_vm0, %v393_v31, %v897_v29 }
 0x70d   : > { %v1239_v40 = vunpack.i.h.bf16 %v1237_v0  ;;  %v1238_v47 = vunpack.i.l.bf16 %v1237_v0 }
 0x70f   : > { %v926_v46 = vsel %vm234_vm0, %v391_v44, %v1239_v40  ;;  %v925_v49 = vsel %vm234_vm0, %v389_v43, %v1238_v47 }
 0x711   : > { %v1242_v1 = vpop.permute.xlu1 %1241 }
 0x712   : > { %v1244_v41 = vunpack.i.h.bf16 %v1242_v1  ;;  %v1243_v42 = vunpack.i.l.bf16 %v1242_v1 }
 0x714   : > { %v929_v53 = vsel %vm928_vm4, %v925_v49, %v1243_v42  ;;  %v930_v54 = vsel %vm928_vm4, %v926_v46, %v1244_v41 }
 0x715   : > { %v909_v30 = vpop.permute.xlu1 %908 }
 0x716   : > { %v931_v32 = vsel %vm928_vm4, %v927_v16, %v909_v30 }
 0x728   : > { %v1181_v17 = vpop.f32.mrf.mxu0 }
 0x729   : > { %v888_v18 = vmul.f32 %v1291_v12, %v1181_v17 }
 0x72a   : > { %v869_v19 = vpop.f32.mrf.mxu0 }
 0x72b   : > { %920 = vrot.lane.b32.xlu1 %v888_v18, %s1340_s5  ;;  %v884_v22 = vmul.f32 %v1293_v6, %v869_v19 }
 0x72c   : > { %v1182_v4 = vpop.f32.mrf.mxu0 }
 0x72e   : > { %v872_v21 = vpop.f32.mrf.mxu0 }
 0x72f   : > { %v886_v25 = vmul.f32 %v1295_v20, %v872_v21 }
 0x731   : > { %v1245_v3 = vpack.i.bf16 %v886_v25, %v884_v22 }
 0x733   : > { %1246 = vrot.lane.b32.xlu0 %v1245_v3, %s1340_s5 }
 0x79d   : > { %v921_v33 = vpop.permute.xlu1 %920 }
 0x79e   : > { %v934_v13 = vsel %vm295_vm3, %v931_v32, %v921_v33 }
 0x79f   : > { %v1086_v34 = vpack.c.bf16 %v934_v13, %v934_v13 }
 0x7a1   : > { %951 = vst.msk [vmem:[%s201_s8 + $0x8] sm:$0xf] %vm948_vm5, %v1086_v34 }
 0x7a5   : > { %v1247_v45 = vpop.permute.xlu0 %1246 }
 0x7a6   : > { %v1249_v51 = vunpack.i.h.bf16 %v1247_v45  ;;  %v1248_v52 = vunpack.i.l.bf16 %v1247_v45 }
 0x7a8   : > { %v932_v2 = vsel %vm295_vm3, %v929_v53, %v1248_v52  ;;  %v933_v7 = vsel %vm295_vm3, %v930_v54, %v1249_v51 }
 0x7a9   : > { %v1084_v55 = vpack.c.bf16 %v932_v2, %v932_v2  ;;  %v1085_v56 = vpack.c.bf16 %v933_v7, %v933_v7 }
 0x7ab   : > { %949 = vst.msk [vmem:[%s201_s8] sm:$0xf] %vm948_vm5, %v1084_v55  ;;  %950 = vst.msk [vmem:[%s201_s8 + $0x4] sm:$0xf] %vm948_vm5, %v1085_v56 }
 0x7ac PF: > { %s12_s11 = sadd.s32 1, %s1324_s11   ;;  %s1579_s9 = smov %s1320_s10 }
 0x7ad   : > { %p9_p5 = scmp.ge.s32.totalorder %s12_s11, 4   ;;  %s1580_s10 = smov %s1582_s12 }
 0x7af   :  { %11 = sbr.rel (!%p9_p5) target bundleno = 2 (0x2), region = 61 }

// kernel: setr_pup_forward.21
= control target key start
LH: loop header
LB: loop body
LE: loop exit
PB: predicated region body
PF: predicated region fallthrough
CT: control target
= control target key end

     0   :  { %vm43_vm0 = vcmask 261120   ;;  %v466_v45 = vmov 0.0   ;;  %vm467_vm1 = vmmov 0   ;;  %s600_s0 = inlined_call_operand.vmem [shape: bf16[48,32], index: 0, kind: input, shape index: {}]   ;;  %s601_s1 = inlined_call_operand.vmem [shape: bf16[32,128], index: 1, kind: input, shape index: {}]   ;;  %s602_s3 = inlined_call_operand.vmem [shape: f32[1,32], index: 3, kind: input, shape index: {}]   ;;  %s603_s4 = inlined_call_operand.vmem [shape: f32[1,32], index: 4, kind: input, shape index: {}]   ;;  %s604_s2 = inlined_call_operand.vmem [shape: f32[1,128], index: 2, kind: input, shape index: {}]   ;;  %s605_s5 = inlined_call_operand.vmem [shape: bf16[48,128], index: 5, kind: output, shape index: {}]  }
   0x1   :  { %v409_v0 = vld [vmem:[%s600_s0 + $0x8] sm:$0xff]   ;;  %v383_v1 = vld [vmem:[%s600_s0] sm:$0xff]   ;;  %v410_v5 = vld [vmem:[%s600_s0 + $0x10] sm:$0xff]   ;;  %434 = vmatprep.subr.bf16.mxu1 %v466_v45  ;;  %418 = vmatprep.subr.bf16.mxu0 %v466_v45 }
   0x2   :  { %v388_v2 = vunpack.c.l.bf16 %v409_v0  ;;  %v389_v3 = vunpack.c.h.bf16 %v409_v0  ;;  %v384_v4 = vunpack.c.l.bf16 %v383_v1  ;;  %v385_v6 = vunpack.c.h.bf16 %v383_v1  ;;  %v440_v46 = vld [vmem:[%s601_s1 + $0x8] sm:$0xff]   ;;  %426 = vmatprep.mubr.msk.bf16.mxu1 %vm467_vm1, %v466_v45  ;;  %422 = vmatprep.mubr.msk.bf16.mxu0 %vm467_vm1, %v466_v45  ;;  %v441_v47 = vld [vmem:[%s601_s1] sm:$0xff]  }
   0x3   :  { %v392_v10 = vunpack.c.l.bf16 %v410_v5  ;;  %v393_v12 = vunpack.c.h.bf16 %v410_v5  ;;  %436 = vmatpush3.bf16.msra.mxu1 %v440_v46  ;;  %419 = vmatpush3.bf16.msra.mxu0 %v440_v46 }
   0x4   :  { %v50_v7 = vsel %vm43_vm0, %v388_v2, 0.0  ;;  %v44_v8 = vsel %vm43_vm0, %v384_v4, 0.0  ;;  %v53_v9 = vsel %vm43_vm0, %v389_v3, 0.0  ;;  %v47_v11 = vsel %vm43_vm0, %v385_v6, 0.0  ;;  %435 = vmatprep.subr.bf16.mxu1 %v466_v45  ;;  %420 = vmatprep.subr.bf16.mxu0 %v466_v45 }
   0x5   :  { %51 = vadd.xlane.f32.xlu0 %v50_v7  ;;  %45 = vadd.xlane.f32.xlu1 %v44_v8  ;;  %v56_v13 = vsel %vm43_vm0, %v392_v10, 0.0  ;;  %v59_v14 = vsel %vm43_vm0, %v393_v12, 0.0 }
   0x7   :  { %437 = vmatpush3.bf16.msra.mxu1 %v441_v47  ;;  %421 = vmatpush3.bf16.msra.mxu0 %v441_v47 }
   0x9   :  { %54 = vadd.xlane.f32.xlu0 %v53_v9  ;;  %48 = vadd.xlane.f32.xlu1 %v47_v11 }
   0xd   :  { %57 = vadd.xlane.f32.xlu0 %v56_v13  ;;  %60 = vadd.xlane.f32.xlu1 %v59_v14 }
  0x8e   :  { %v52_v15 = vpop.xlane.xlu0 %51  ;;  %v46_v16 = vpop.xlane.xlu1 %45 }
  0x8f   :  { %v65_v17 = vmul.f32 0.03125, %v52_v15  ;;  %v63_v18 = vmul.f32 0.03125, %v46_v16 }
  0x91   :  { %v513_v19 = vsub.f32 %v388_v2, %v65_v17  ;;  %v515_v20 = vsub.f32 %v384_v4, %v63_v18  ;;  %v362_v4 = vld [vmem:[%s602_s3] ss:$0 sm:$0xff] }
  0x92   :  { %v55_v21 = vpop.xlane.xlu0 %54  ;;  %v49_v22 = vpop.xlane.xlu1 %48 }
  0x93   :  { %v66_v23 = vmul.f32 0.03125, %v55_v21  ;;  %v77_v24 = vmul.f32 %v513_v19, %v513_v19  ;;  %v64_v25 = vmul.f32 0.03125, %v49_v22  ;;  %v75_v26 = vmul.f32 %v515_v20, %v515_v20 }
  0x95   :  { %v521_v27 = vsub.f32 %v389_v3, %v66_v23  ;;  %v87_v28 = vsel %vm43_vm0, %v77_v24, 0.0  ;;  %v524_v29 = vsub.f32 %v385_v6, %v64_v25  ;;  %v81_v31 = vsel %vm43_vm0, %v75_v26, 0.0 }
  0x96   :  { %88 = vadd.xlane.f32.xlu0 %v87_v28  ;;  %v58_v30 = vpop.xlane.xlu0 %57  ;;  %v61_v32 = vpop.xlane.xlu1 %60 }
  0x97   :  { %v67_v33 = vmul.f32 0.03125, %v58_v30  ;;  %v78_v34 = vmul.f32 %v521_v27, %v521_v27  ;;  %v68_v35 = vmul.f32 0.03125, %v61_v32  ;;  %v76_v36 = vmul.f32 %v524_v29, %v524_v29 }
  0x99   :  { %v531_v37 = vsub.f32 %v392_v10, %v67_v33  ;;  %v90_v38 = vsel %vm43_vm0, %v78_v34, 0.0  ;;  %v534_v39 = vsub.f32 %v393_v12, %v68_v35  ;;  %v84_v41 = vsel %vm43_vm0, %v76_v36, 0.0  ;;  %v363_v10 = vld [vmem:[%s603_s4] ss:$0 sm:$0xff] }
  0x9a   :  { %91 = vadd.xlane.f32.xlu1 %v90_v38  ;;  %82 = vadd.xlane.f32.xlu0 %v81_v31  ;;  %v369_v31 = vld [vmem:[%s604_s2] ss:$0 sm:$0xff] }
  0x9b   :  { %v79_v40 = vmul.f32 %v531_v37, %v531_v37  ;;  %v80_v42 = vmul.f32 %v534_v39, %v534_v39 }
  0x9d   :  { %v93_v43 = vsel %vm43_vm0, %v79_v40, 0.0  ;;  %v96_v44 = vsel %vm43_vm0, %v80_v42, 0.0 }
  0x9e   :  { %94 = vadd.xlane.f32.xlu0 %v93_v43  ;;  %85 = vadd.xlane.f32.xlu1 %v84_v41 }
  0xa2   :  { %97 = vadd.xlane.f32.xlu1 %v96_v44 }
 0x11f   :  { %v89_v48 = vpop.xlane.xlu0 %88 }
 0x120   :  { %v101_v49 = vmul.f32 0.03125, %v89_v48 }
 0x122   :  { %v107_v50 = vadd.f32 1e-06, %v101_v49 }
 0x123   :  { %v83_v51 = vpop.xlane.xlu0 %82  ;;  %v92_v52 = vpop.xlane.xlu1 %91 }
 0x124   :  { %442 = vrsqrt.f32 %v107_v50  ;;  %v99_v53 = vmul.f32 0.03125, %v83_v51  ;;  %v102_v54 = vmul.f32 0.03125, %v92_v52 }
 0x126   :  { %v105_v55 = vadd.f32 1e-06, %v99_v53  ;;  %v108_v56 = vadd.f32 1e-06, %v102_v54 }
 0x127   :  { %v95_v57 = vpop.xlane.xlu0 %94  ;;  %v86_v58 = vpop.xlane.xlu1 %85 }
 0x128   :  { %444 = vrsqrt.f32 %v105_v55  ;;  %v103_v59 = vmul.f32 0.03125, %v95_v57  ;;  %v100_v60 = vmul.f32 0.03125, %v86_v58 }
 0x129   :  { %446 = vrsqrt.f32 %v108_v56 }
 0x12a   :  { %v109_v61 = vadd.f32 1e-06, %v103_v59  ;;  %v106_v62 = vadd.f32 1e-06, %v100_v60 }
 0x12b   :  { %v98_v63 = vpop.xlane.xlu1 %97 }
 0x12c   :  { %448 = vrsqrt.f32 %v109_v61  ;;  %v104_v0 = vmul.f32 0.03125, %v98_v63 }
 0x12d   :  { %450 = vrsqrt.f32 %v106_v62 }
 0x12e   :  { %v110_v1 = vadd.f32 1e-06, %v104_v0 }
 0x130   :  { %452 = vrsqrt.f32 %v110_v1 }
 0x131   :  { %v443_v2 = vpop.eup %442 }
 0x132   :  { %v119_v3 = vmul.f32 %v443_v2, %v513_v19 }
 0x134   :  { %v132_v8 = vmul.f32 %v362_v4, %v119_v3 }
 0x135   :  { %v445_v5 = vpop.eup %444 }
 0x136   :  { %v447_v6 = vpop.eup %446  ;;  %v117_v9 = vmul.f32 %v445_v5, %v515_v20  ;;  %v145_v15 = vadd.f32 %v363_v10, %v132_v8 }
 0x137   :  { %v120_v7 = vmul.f32 %v447_v6, %v521_v27 }
 0x138   :  { %v130_v18 = vmul.f32 %v362_v4, %v117_v9 }
 0x139   :  { %v449_v11 = vpop.eup %448  ;;  %v133_v12 = vmul.f32 %v362_v4, %v120_v7 }
 0x13a   :  { %v451_v13 = vpop.eup %450  ;;  %v121_v14 = vmul.f32 %v449_v11, %v531_v37  ;;  %v143_v24 = vadd.f32 %v363_v10, %v130_v18 }
 0x13b   :  { %v146_v16 = vadd.f32 %v363_v10, %v133_v12  ;;  %v118_v17 = vmul.f32 %v451_v13, %v524_v29 }
 0x13c   :  { %v134_v20 = vmul.f32 %v362_v4, %v121_v14 }
 0x13d   :  { %v453_v19 = vpop.eup %452  ;;  %v150_v21 = vpack.c.bf16 %v146_v16, %v145_v15  ;;  %v131_v22 = vmul.f32 %v362_v4, %v118_v17 }
 0x13e   :  { %v122_v23 = vmul.f32 %v453_v19, %v534_v39  ;;  %v147_v28 = vadd.f32 %v363_v10, %v134_v20 }
 0x13f   :  { %427 = vmatmul.mubr.msk.bf16.vlgmr.msra.gmra.mxu1 %vm43_vm0, %v150_v21  ;;  %v144_v25 = vadd.f32 %v363_v10, %v131_v22 }
 0x140   :  { %430 = vmatprep.mubr.msk.bf16.mxu1 %vm467_vm1, %v466_v45  ;;  %v135_v26 = vmul.f32 %v362_v4, %v122_v23 }
 0x141   :  { %v149_v27 = vpack.c.bf16 %v144_v25, %v143_v24 }
 0x142   :  { %v148_v30 = vadd.f32 %v363_v10, %v135_v26 }
 0x143   :  { %423 = vmatmul.mubr.msk.bf16.vlgmr.msra.gmra.mxu0 %vm43_vm0, %v149_v27 }
 0x144   :  { %v151_v29 = vpack.c.bf16 %v148_v30, %v147_v28 }
 0x147   :  { %431 = vmatmul.mubr.msk.bf16.gmra.mxu1 %vm43_vm0, %v151_v29 }
 0x1ff   :  { %v225_v32 = vpop.f32.mrf.mxu1 }
 0x200   :  { %v577_v33 = vadd.f32 %v369_v31, %v225_v32 }
 0x201   :  { %v428_v34 = vpop.f32.mrf.mxu1 }
 0x202   :  { %v276_v35 = vmul.f32 %v577_v33, %v577_v33 }
 0x203   :  { %v217_v36 = vpop.f32.mrf.mxu0  ;;  %v228_v37 = vpop.f32.mrf.mxu1 }
 0x204   :  { %v282_v38 = vmul.f32 %v276_v35, %v577_v33  ;;  %v582_v39 = vadd.f32 %v369_v31, %v217_v36  ;;  %v271_v40 = vadd.f32 %v369_v31, %v228_v37 }
 0x205   :  { %v424_v41 = vpop.f32.mrf.mxu0  ;;  %v429_v42 = vpop.f32.mrf.mxu1 }
 0x206   :  { %v288_v43 = vmul.f32 0.044715, %v282_v38  ;;  %v274_v44 = vmul.f32 %v582_v39, %v582_v39  ;;  %v277_v45 = vmul.f32 %v271_v40, %v271_v40 }
 0x207   :  { %v220_v46 = vpop.f32.mrf.mxu0  ;;  %v233_v47 = vpop.f32.mrf.mxu1 }
 0x208   :  { %v294_v48 = vadd.f32 %v288_v43, %v577_v33  ;;  %v280_v49 = vmul.f32 %v274_v44, %v582_v39  ;;  %v283_v50 = vmul.f32 %v277_v45, %v271_v40  ;;  %v269_v51 = vadd.f32 %v369_v31, %v220_v46 }
 0x209   :  { %v272_v52 = vadd.f32 %v369_v31, %v233_v47  ;;  %v425_v53 = vpop.f32.mrf.mxu0  ;;  %v432_v54 = vpop.f32.mrf.mxu1 }
 0x20a   :  { %v300_v55 = vmul.f32 0.7978846, %v294_v48  ;;  %v286_v56 = vmul.f32 0.044715, %v280_v49  ;;  %v289_v57 = vmul.f32 0.044715, %v283_v50  ;;  %v275_v58 = vmul.f32 %v269_v51, %v269_v51 }
 0x20b   :  { %v278_v59 = vmul.f32 %v272_v52, %v272_v52  ;;  %v236_v60 = vpop.f32.mrf.mxu1 }
 0x20c   :  { %454 = vtanh.f32 %v300_v55  ;;  %v292_v61 = vadd.f32 %v286_v56, %v582_v39  ;;  %v295_v62 = vadd.f32 %v289_v57, %v271_v40  ;;  %v281_v63 = vmul.f32 %v275_v58, %v269_v51 }
 0x20d   :  { %v284_v0 = vmul.f32 %v278_v59, %v272_v52  ;;  %v273_v1 = vadd.f32 %v369_v31, %v236_v60  ;;  %v433_v2 = vpop.f32.mrf.mxu1 }
 0x20e   :  { %v298_v3 = vmul.f32 0.7978846, %v292_v61  ;;  %v301_v4 = vmul.f32 0.7978846, %v295_v62  ;;  %v287_v5 = vmul.f32 0.044715, %v281_v63 }
 0x20f   :  { %v290_v6 = vmul.f32 0.044715, %v284_v0  ;;  %v279_v7 = vmul.f32 %v273_v1, %v273_v1 }
 0x210   :  { %456 = vtanh.f32 %v298_v3  ;;  %v293_v8 = vadd.f32 %v287_v5, %v269_v51 }
 0x211   :  { %458 = vtanh.f32 %v301_v4  ;;  %v296_v9 = vadd.f32 %v290_v6, %v272_v52  ;;  %v285_v10 = vmul.f32 %v279_v7, %v273_v1 }
 0x212   :  { %v299_v11 = vmul.f32 0.7978846, %v293_v8 }
 0x213   :  { %v302_v12 = vmul.f32 0.7978846, %v296_v9  ;;  %v291_v13 = vmul.f32 0.044715, %v285_v10 }
 0x214   :  { %460 = vtanh.f32 %v299_v11 }
 0x215   :  { %462 = vtanh.f32 %v302_v12  ;;  %v297_v14 = vadd.f32 %v291_v13, %v273_v1 }
 0x217   :  { %v303_v15 = vmul.f32 0.7978846, %v297_v14 }
 0x219   :  { %v455_v16 = vpop.eup %454  ;;  %464 = vtanh.f32 %v303_v15 }
 0x21a   :  { %v312_v17 = vadd.f32 1.0, %v455_v16 }
 0x21c   :  { %v318_v22 = vmul.f32 0.5, %v312_v17 }
 0x21d   :  { %v457_v18 = vpop.eup %456 }
 0x21e   :  { %v459_v19 = vpop.eup %458  ;;  %v310_v21 = vadd.f32 1.0, %v457_v18  ;;  %v324_v28 = vmul.f32 %v318_v22, %v577_v33 }
 0x21f   :  { %v313_v23 = vadd.f32 1.0, %v459_v19 }
 0x220   :  { %v316_v26 = vmul.f32 0.5, %v310_v21 }
 0x221   :  { %v461_v20 = vpop.eup %460  ;;  %v319_v24 = vmul.f32 0.5, %v313_v23 }
 0x222   :  { %v463_v25 = vpop.eup %462  ;;  %v311_v27 = vadd.f32 1.0, %v461_v20  ;;  %v322_v35 = vmul.f32 %v316_v26, %v582_v39 }
 0x223   :  { %v325_v30 = vmul.f32 %v319_v24, %v271_v40  ;;  %v314_v29 = vadd.f32 1.0, %v463_v25 }
 0x224   :  { %v317_v31 = vmul.f32 0.5, %v311_v27 }
 0x225   :  { %v402_v32 = vpack.c.bf16 %v325_v30, %v324_v28  ;;  %v320_v37 = vmul.f32 0.5, %v314_v29 }
 0x226   :  { %v465_v34 = vpop.eup %464  ;;  %v323_v36 = vmul.f32 %v317_v31, %v269_v51 }
 0x227   :  { %411 = vst [vmem:[%s605_s5 + $0x8] sm:$0xff] %v402_v32   ;;  %v315_v38 = vadd.f32 1.0, %v465_v34  ;;  %v326_v33 = vmul.f32 %v320_v37, %v272_v52 }
 0x228   :  { %v397_v41 = vpack.c.bf16 %v323_v36, %v322_v35 }
 0x229   :  { %v321_v42 = vmul.f32 0.5, %v315_v38 }
 0x22a   :  { %398 = vst [vmem:[%s605_s5] sm:$0xff] %v397_v41  }
 0x22b   :  { %v327_v40 = vmul.f32 %v321_v42, %v273_v1 }
 0x22d   :  { %v407_v43 = vpack.c.bf16 %v327_v40, %v326_v33 }
 0x22f   :  { %412 = vst [vmem:[%s605_s5 + $0x10] sm:$0xff] %v407_v43  }

// kernel: setr_pup_forward.22
= control target key start
LH: loop header
LB: loop body
LE: loop exit
PB: predicated region body
PF: predicated region fallthrough
CT: control target
= control target key end

     0   :  { %v338_v0 = vmov 0.0   ;;  %vm339_vm0 = vmmov 0   ;;  %vm87_vm1 = vcmask 523264   ;;  %s410_s1 = inlined_call_operand.vmem [shape: bf16[64,128], index: 1, kind: input, shape index: {}]   ;;  %s411_s0 = inlined_call_operand.vmem [shape: bf16[48,64], index: 0, kind: input, shape index: {}]   ;;  %s412_s2 = inlined_call_operand.vmem [shape: f32[1,128], index: 2, kind: input, shape index: {}]   ;;  %s413_s3 = inlined_call_operand.vmem [shape: bf16[48,128], index: 3, kind: input, shape index: {}]   ;;  %s414_s4 = inlined_call_operand.vmem [shape: bf16[48,128], index: 4, kind: output, shape index: {}]  }
   0x1   :  { %321 = vmatprep.subr.bf16.mxu1 %v338_v0  ;;  %v331_v1 = vld [vmem:[%s410_s1 + $0x18] sm:$0xff]   ;;  %301 = vmatprep.subr.bf16.mxu0 %v338_v0  ;;  %v332_v2 = vld [vmem:[%s410_s1 + $0x10] sm:$0xff]   ;;  %v333_v3 = vld [vmem:[%s410_s1 + $0x8] sm:$0xff]  }
   0x2   :  { %313 = vmatprep.mubr.msk.bf16.mxu1 %vm339_vm0, %v338_v0  ;;  %309 = vmatprep.mubr.msk.bf16.mxu0 %vm339_vm0, %v338_v0  ;;  %v334_v4 = vld [vmem:[%s410_s1] sm:$0xff]   ;;  %v335_v5 = vld [vmem:[%s411_s0 + $0x8] sm:$0xff]   ;;  %v337_v7 = vld [vmem:[%s411_s0 + $0x10] sm:$0xff]  }
   0x3   :  { %325 = vmatpush3.bf16.msra.mxu1 %v331_v1  ;;  %302 = vmatpush3.bf16.msra.mxu0 %v331_v1  ;;  %v336_v6 = vld [vmem:[%s411_s0] sm:$0xff]   ;;  %v290_v11 = vld [vmem:[%s413_s3 + $0x8] sm:$0xff]   ;;  %v291_v32 = vld [vmem:[%s413_s3 + $0x10] sm:$0xff]  }
   0x4   :  { %322 = vmatprep.subr.bf16.mxu1 %v338_v0  ;;  %303 = vmatprep.subr.bf16.mxu0 %v338_v0  ;;  %v264_v8 = vld [vmem:[%s413_s3] sm:$0xff]   ;;  %v269_v18 = vunpack.c.l.bf16 %v290_v11  ;;  %v270_v19 = vunpack.c.h.bf16 %v290_v11  ;;  %v273_v37 = vunpack.c.l.bf16 %v291_v32  ;;  %v274_v38 = vunpack.c.h.bf16 %v291_v32 }
   0x5   :  { %v250_v10 = vld [vmem:[%s412_s2] ss:$0 sm:$0xff]  ;;  %v265_v14 = vunpack.c.l.bf16 %v264_v8  ;;  %v266_v20 = vunpack.c.h.bf16 %v264_v8 }
   0x7   :  { %326 = vmatpush3.bf16.msra.mxu1 %v332_v2  ;;  %304 = vmatpush3.bf16.msra.mxu0 %v332_v2 }
   0x8   :  { %323 = vmatprep.subr.bf16.mxu1 %v338_v0  ;;  %305 = vmatprep.subr.bf16.mxu0 %v338_v0 }
   0xb   :  { %327 = vmatpush3.bf16.msra.mxu1 %v333_v3  ;;  %306 = vmatpush3.bf16.msra.mxu0 %v333_v3 }
   0xc   :  { %324 = vmatprep.subr.bf16.mxu1 %v338_v0  ;;  %307 = vmatprep.subr.bf16.mxu0 %v338_v0 }
   0xf   :  { %328 = vmatpush3.bf16.msra.mxu1 %v334_v4  ;;  %308 = vmatpush3.bf16.msra.mxu0 %v334_v4 }
  0x12   :  { %314 = vmatmul.mubr.msk.bf16.vlgmr.msra.gmra.mxu1 %vm87_vm1, %v335_v5  ;;  %310 = vmatmul.mubr.msk.bf16.vlgmr.msra.gmra.mxu0 %vm87_vm1, %v336_v6 }
  0x13   :  { %317 = vmatprep.mubr.msk.bf16.mxu1 %vm339_vm0, %v338_v0 }
  0x1a   :  { %318 = vmatmul.mubr.msk.bf16.gmra.mxu1 %vm87_vm1, %v337_v7 }
  0xd2   :  { %v139_v9 = vpop.f32.mrf.mxu1  ;;  %v131_v12 = vpop.f32.mrf.mxu0 }
  0xd3   :  { %v182_v13 = vadd.f32 %v250_v10, %v131_v12  ;;  %v184_v17 = vadd.f32 %v250_v10, %v139_v9 }
  0xd4   :  { %v315_v15 = vpop.f32.mrf.mxu1  ;;  %v311_v16 = vpop.f32.mrf.mxu0 }
  0xd5   :  { %v200_v23 = vadd.f32 %v265_v14, %v182_v13  ;;  %v202_v28 = vadd.f32 %v269_v18, %v184_v17 }
  0xd6   :  { %v142_v21 = vpop.f32.mrf.mxu1  ;;  %v134_v22 = vpop.f32.mrf.mxu0 }
  0xd7   :  { %v185_v24 = vadd.f32 %v250_v10, %v142_v21  ;;  %v183_v25 = vadd.f32 %v250_v10, %v134_v22 }
  0xd8   :  { %v316_v26 = vpop.f32.mrf.mxu1  ;;  %v312_v27 = vpop.f32.mrf.mxu0 }
  0xd9   :  { %v203_v29 = vadd.f32 %v270_v19, %v185_v24  ;;  %v201_v30 = vadd.f32 %v266_v20, %v183_v25 }
  0xda   :  { %v147_v31 = vpop.f32.mrf.mxu1 }
  0xdb   :  { %v283_v33 = vpack.c.bf16 %v203_v29, %v202_v28  ;;  %v278_v34 = vpack.c.bf16 %v201_v30, %v200_v23  ;;  %v186_v36 = vadd.f32 %v250_v10, %v147_v31 }
  0xdc   :  { %v319_v35 = vpop.f32.mrf.mxu1 }
  0xdd   :  { %292 = vst [vmem:[%s414_s4 + $0x8] sm:$0xff] %v283_v33   ;;  %279 = vst [vmem:[%s414_s4] sm:$0xff] %v278_v34   ;;  %v204_v42 = vadd.f32 %v273_v37, %v186_v36 }
  0xde   :  { %v150_v39 = vpop.f32.mrf.mxu1 }
  0xdf   :  { %v187_v40 = vadd.f32 %v250_v10, %v150_v39 }
  0xe0   :  { %v320_v41 = vpop.f32.mrf.mxu1 }
  0xe1   :  { %v205_v43 = vadd.f32 %v274_v38, %v187_v40 }
  0xe3   :  { %v288_v44 = vpack.c.bf16 %v205_v43, %v204_v42 }
  0xe5   :  { %293 = vst [vmem:[%s414_s4 + $0x10] sm:$0xff] %v288_v44  }

// kernel: setr_pup_forward.28
= control target key start
LH: loop header
LB: loop body
LE: loop exit
PB: predicated region body
PF: predicated region fallthrough
CT: control target
= control target key end

     0   :  { %vm28_vm0 = vcmask 261120   ;;  %vm194_vm1 = vcmask 257024   ;;  %s320_s0 = inlined_call_operand.vmem [shape: bf16[32,32], index: 0, kind: input, shape index: {}]   ;;  %s321_s1 = inlined_call_operand.vmem [shape: f32[1,32], index: 1, kind: input, shape index: {}]   ;;  %s322_s2 = inlined_call_operand.vmem [shape: f32[1,32], index: 2, kind: input, shape index: {}]   ;;  %s323_s3 = inlined_call_operand.vmem [shape: f32[1,32], index: 3, kind: input, shape index: {}]   ;;  %s324_s4 = inlined_call_operand.vmem [shape: f32[1,32], index: 4, kind: input, shape index: {}]   ;;  %s325_s5 = inlined_call_operand.vmem [shape: bf16[32,32], index: 5, kind: output, shape index: {}]  }
   0x1   :  { %v216_v0 = vld [vmem:[%s320_s0] sm:$0xff]   ;;  %v223_v1 = vld [vmem:[%s320_s0 + $0x8] sm:$0xff]  }
   0x2   :  { %v217_v2 = vunpack.c.l.bf16 %v216_v0  ;;  %v221_v3 = vunpack.c.l.bf16 %v223_v1  ;;  %v218_v4 = vunpack.c.h.bf16 %v216_v0  ;;  %v222_v5 = vunpack.c.h.bf16 %v223_v1  ;;  %v203_v43 = vld [vmem:[%s321_s1] ss:$0 sm:$0xff] }
   0x3   :  { %v204_v45 = vld [vmem:[%s322_s2] ss:$0 sm:$0xff] }
   0x4   :  { %v29_v6 = vsel %vm28_vm0, %v217_v2, 0.0  ;;  %v35_v7 = vsel %vm28_vm0, %v221_v3, 0.0  ;;  %v32_v8 = vsel %vm28_vm0, %v218_v4, 0.0  ;;  %v38_v9 = vsel %vm28_vm0, %v222_v5, 0.0 }
   0x5   :  { %30 = vadd.xlane.f32.xlu0 %v29_v6  ;;  %36 = vadd.xlane.f32.xlu1 %v35_v7 }
   0x9   :  { %33 = vadd.xlane.f32.xlu0 %v32_v8  ;;  %39 = vadd.xlane.f32.xlu1 %v38_v9 }
  0x8e   :  { %v31_v10 = vpop.xlane.xlu0 %30  ;;  %v37_v11 = vpop.xlane.xlu1 %36 }
  0x8f   :  { %v42_v12 = vmul.f32 0.03125, %v31_v10  ;;  %v44_v13 = vmul.f32 0.03125, %v37_v11 }
  0x91   :  { %v46_v14 = vsub.f32 %v217_v2, %v42_v12  ;;  %v48_v15 = vsub.f32 %v221_v3, %v44_v13 }
  0x92   :  { %v34_v16 = vpop.xlane.xlu0 %33  ;;  %v40_v17 = vpop.xlane.xlu1 %39 }
  0x93   :  { %v43_v18 = vmul.f32 0.03125, %v34_v16  ;;  %v45_v19 = vmul.f32 0.03125, %v40_v17  ;;  %v50_v20 = vmul.f32 %v46_v14, %v46_v14  ;;  %v52_v21 = vmul.f32 %v48_v15, %v48_v15 }
  0x95   :  { %v47_v22 = vsub.f32 %v218_v4, %v43_v18  ;;  %v49_v23 = vsub.f32 %v222_v5, %v45_v19  ;;  %v54_v24 = vsel %vm28_vm0, %v50_v20, 0.0  ;;  %v60_v25 = vsel %vm28_vm0, %v52_v21, 0.0 }
  0x96   :  { %55 = vadd.xlane.f32.xlu0 %v54_v24 }
  0x97   :  { %v51_v26 = vmul.f32 %v47_v22, %v47_v22  ;;  %v53_v27 = vmul.f32 %v49_v23, %v49_v23 }
  0x99   :  { %v57_v28 = vsel %vm28_vm0, %v51_v26, 0.0  ;;  %v63_v29 = vsel %vm28_vm0, %v53_v27, 0.0 }
  0x9a   :  { %61 = vadd.xlane.f32.xlu0 %v60_v25  ;;  %58 = vadd.xlane.f32.xlu1 %v57_v28 }
  0x9e   :  { %64 = vadd.xlane.f32.xlu1 %v63_v29 }
 0x11f   :  { %v56_v30 = vpop.xlane.xlu0 %55 }
 0x120   :  { %v66_v31 = vmul.f32 0.03125, %v56_v30 }
 0x122   :  { %v70_v32 = vadd.f32 1e-06, %v66_v31 }
 0x123   :  { %v59_v33 = vpop.xlane.xlu1 %58  ;;  %v62_v34 = vpop.xlane.xlu0 %61 }
 0x124   :  { %224 = vrsqrt.f32 %v70_v32  ;;  %v67_v35 = vmul.f32 0.03125, %v59_v33  ;;  %v68_v36 = vmul.f32 0.03125, %v62_v34  ;;  %v205_v33 = vld [vmem:[%s323_s3] ss:$0 sm:$0xff] }
 0x126   :  { %v71_v37 = vadd.f32 1e-06, %v67_v35  ;;  %v72_v38 = vadd.f32 1e-06, %v68_v36  ;;  %v206_v35 = vld [vmem:[%s324_s4] ss:$0 sm:$0xff] }
 0x127   :  { %v65_v39 = vpop.xlane.xlu1 %64 }
 0x128   :  { %226 = vrsqrt.f32 %v71_v37  ;;  %v69_v40 = vmul.f32 0.03125, %v65_v39 }
 0x129   :  { %228 = vrsqrt.f32 %v72_v38 }
 0x12a   :  { %v73_v41 = vadd.f32 1e-06, %v69_v40 }
 0x12c   :  { %230 = vrsqrt.f32 %v73_v41 }
 0x131   :  { %v225_v42 = vpop.eup %224 }
 0x132   :  { %v78_v44 = vmul.f32 %v225_v42, %v46_v14 }
 0x134   :  { %v89_v46 = vmul.f32 %v203_v43, %v78_v44 }
 0x135   :  { %v227_v47 = vpop.eup %226 }
 0x136   :  { %v229_v48 = vpop.eup %228  ;;  %v100_v49 = vadd.f32 %v204_v45, %v89_v46  ;;  %v79_v50 = vmul.f32 %v227_v47, %v47_v22 }
 0x137   :  { %v80_v51 = vmul.f32 %v229_v48, %v48_v15 }
 0x138   :  { %v104_v52 = vsel %vm28_vm0, %v100_v49, 0.0  ;;  %v90_v53 = vmul.f32 %v203_v43, %v79_v50 }
 0x139   :  { %v231_v54 = vpop.eup %230  ;;  %105 = vadd.xlane.f32.xlu0 %v104_v52  ;;  %v91_v55 = vmul.f32 %v203_v43, %v80_v51 }
 0x13a   :  { %v101_v56 = vadd.f32 %v204_v45, %v90_v53  ;;  %v81_v57 = vmul.f32 %v231_v54, %v49_v23 }
 0x13b   :  { %v102_v58 = vadd.f32 %v204_v45, %v91_v55 }
 0x13c   :  { %v107_v59 = vsel %vm28_vm0, %v101_v56, 0.0  ;;  %v92_v60 = vmul.f32 %v203_v43, %v81_v57 }
 0x13d   :  { %108 = vadd.xlane.f32.xlu1 %v107_v59  ;;  %v110_v61 = vsel %vm28_vm0, %v102_v58, 0.0 }
 0x13e   :  { %111 = vadd.xlane.f32.xlu0 %v110_v61  ;;  %v103_v62 = vadd.f32 %v204_v45, %v92_v60 }
 0x140   :  { %v113_v63 = vsel %vm28_vm0, %v103_v62, 0.0 }
 0x141   :  { %114 = vadd.xlane.f32.xlu1 %v113_v63 }
 0x1c2   :  { %v106_v0 = vpop.xlane.xlu0 %105 }
 0x1c3   :  { %v116_v1 = vmul.f32 0.03125, %v106_v0 }
 0x1c5   :  { %v120_v2 = vsub.f32 %v100_v49, %v116_v1 }
 0x1c6   :  { %v109_v3 = vpop.xlane.xlu1 %108 }
 0x1c7   :  { %v117_v4 = vmul.f32 0.03125, %v109_v3  ;;  %v112_v5 = vpop.xlane.xlu0 %111  ;;  %v124_v6 = vmul.f32 %v120_v2, %v120_v2 }
 0x1c8   :  { %v118_v7 = vmul.f32 0.03125, %v112_v5 }
 0x1c9   :  { %v121_v8 = vsub.f32 %v101_v56, %v117_v4  ;;  %v128_v9 = vsel %vm28_vm0, %v124_v6, 0.0 }
 0x1ca   :  { %v122_v10 = vsub.f32 %v102_v58, %v118_v7  ;;  %v115_v11 = vpop.xlane.xlu1 %114  ;;  %129 = vadd.xlane.f32.xlu0 %v128_v9 }
 0x1cb   :  { %v119_v12 = vmul.f32 0.03125, %v115_v11  ;;  %v125_v13 = vmul.f32 %v121_v8, %v121_v8 }
 0x1cc   :  { %v126_v14 = vmul.f32 %v122_v10, %v122_v10 }
 0x1cd   :  { %v123_v15 = vsub.f32 %v103_v62, %v119_v12  ;;  %v131_v16 = vsel %vm28_vm0, %v125_v13, 0.0 }
 0x1ce   :  { %132 = vadd.xlane.f32.xlu1 %v131_v16  ;;  %v134_v17 = vsel %vm28_vm0, %v126_v14, 0.0 }
 0x1cf   :  { %135 = vadd.xlane.f32.xlu0 %v134_v17  ;;  %v127_v18 = vmul.f32 %v123_v15, %v123_v15 }
 0x1d1   :  { %v137_v19 = vsel %vm28_vm0, %v127_v18, 0.0 }
 0x1d2   :  { %138 = vadd.xlane.f32.xlu1 %v137_v19 }
 0x253   :  { %v130_v20 = vpop.xlane.xlu0 %129 }
 0x254   :  { %v140_v21 = vmul.f32 0.03125, %v130_v20 }
 0x256   :  { %v144_v22 = vadd.f32 1e-05, %v140_v21 }
 0x257   :  { %v133_v23 = vpop.xlane.xlu1 %132 }
 0x258   :  { %232 = vrsqrt.f32 %v144_v22  ;;  %v141_v24 = vmul.f32 0.03125, %v133_v23  ;;  %v136_v25 = vpop.xlane.xlu0 %135 }
 0x259   :  { %v142_v26 = vmul.f32 0.03125, %v136_v25 }
 0x25a   :  { %v145_v27 = vadd.f32 1e-05, %v141_v24 }
 0x25b   :  { %v146_v28 = vadd.f32 1e-05, %v142_v26  ;;  %v139_v29 = vpop.xlane.xlu1 %138 }
 0x25c   :  { %234 = vrsqrt.f32 %v145_v27  ;;  %v143_v30 = vmul.f32 0.03125, %v139_v29 }
 0x25d   :  { %236 = vrsqrt.f32 %v146_v28 }
 0x25e   :  { %v147_v31 = vadd.f32 1e-05, %v143_v30 }
 0x260   :  { %238 = vrsqrt.f32 %v147_v31 }
 0x265   :  { %v233_v32 = vpop.eup %232 }
 0x266   :  { %v152_v34 = vmul.f32 %v233_v32, %v120_v2 }
 0x268   :  { %v163_v36 = vmul.f32 %v205_v33, %v152_v34 }
 0x269   :  { %v235_v37 = vpop.eup %234 }
 0x26a   :  { %v237_v38 = vpop.eup %236  ;;  %v174_v39 = vadd.f32 %v206_v35, %v163_v36  ;;  %v153_v40 = vmul.f32 %v235_v37, %v121_v8 }
 0x26b   :  { %v154_v41 = vmul.f32 %v237_v38, %v122_v10 }
 0x26c   :  { %v211_v42 = vpack.c.bf16 %v174_v39, %v174_v39  ;;  %v164_v43 = vmul.f32 %v205_v33, %v153_v40 }
 0x26d   :  { %v239_v44 = vpop.eup %238  ;;  %v165_v45 = vmul.f32 %v205_v33, %v154_v41 }
 0x26e   :  { %195 = vst.msk [vmem:[%s325_s5] sm:$0xf] %vm194_vm1, %v211_v42  ;;  %v175_v46 = vadd.f32 %v206_v35, %v164_v43  ;;  %v155_v47 = vmul.f32 %v239_v44, %v123_v15 }
 0x26f   :  { %v176_v48 = vadd.f32 %v206_v35, %v165_v45 }
 0x270   :  { %v212_v49 = vpack.c.bf16 %v175_v46, %v175_v46  ;;  %v166_v50 = vmul.f32 %v205_v33, %v155_v47 }
 0x271   :  { %v213_v51 = vpack.c.bf16 %v176_v48, %v176_v48 }
 0x272   :  { %196 = vst.msk [vmem:[%s325_s5 + $0x4] sm:$0xf] %vm194_vm1, %v212_v49  ;;  %v177_v52 = vadd.f32 %v206_v35, %v166_v50 }
 0x273   :  { %197 = vst.msk [vmem:[%s325_s5 + $0x8] sm:$0xf] %vm194_vm1, %v213_v51 }
 0x274   :  { %v214_v53 = vpack.c.bf16 %v177_v52, %v177_v52 }
 0x276   :  { %198 = vst.msk [vmem:[%s325_s5 + $0xc] sm:$0xf] %vm194_vm1, %v214_v53 }

// kernel: setr_pup_forward.30
= control target key start
LH: loop header
LB: loop body
LE: loop exit
PB: predicated region body
PF: predicated region fallthrough
CT: control target
= control target key end

     0   :  { %s731_s15 = smov 0   ;;  %s733_s16 = smov 0   ;;  %s802_s0 = inlined_call_operand.vmem [shape: bf16[2,4,4,16], index: 0, kind: input, shape index: {}, may-alias: {0,1,2}]   ;;  %s803_s1 = inlined_call_operand.vmem [shape: bf16[2,4,4,16], index: 1, kind: input, shape index: {}, may-alias: {0,1,2}]   ;;  %s804_s2 = inlined_call_operand.vmem [shape: bf16[2,4,4,16], index: 2, kind: input, shape index: {}, may-alias: {0,1,2}]   ;;  %s805_s3 = inlined_call_operand.vmem [shape: bf16[8,4], index: 3, kind: input, shape index: {}]   ;;  %s806_s4 = inlined_call_operand.vmem [shape: bf16[2,8,8,16], index: 4, kind: output, shape index: {}]  }
   0x1   :  { %s735_s17 = smov 0   ;;  %s737_s18 = smov 0  }
   0x2   :  { %s739_s19 = smov 0  }
   0x3 LB: > { %s23_s20 = sadd.s32 1, %s694_s17  ;;  %s26_s21 = sadd.s32 1, %s698_s18  ;;  %s702_s19 = sphi %s739_s19, %s14_s19   ;;  %s698_s18 = sphi %s737_s18, %s810_s18   ;;  %s694_s17 = sphi %s735_s17, %s809_s17   ;;  %s690_s16 = sphi %s733_s16, %s808_s16   ;;  %s686_s15 = sphi %s731_s15, %s807_s15  }
   0x4   : > { %p24_p0 = scmp.ge.s32.totalorder %s23_s20, 4  ;;  %p580_p1 = scmp.ge.s32.totalorder %s702_s19, 1 }
   0x5   : > { %p235_p2 = scmp.lt.s32.totalorder %s702_s19, 9 }
   0x6   : > { %s812_s20 = smov (%p24_p0, %s23_s20), 0  ;;  %s814_s21 = smov (!%p24_p0, %s26_s21), %s698_s18 }
   0x7   : > { %p236_p3 = pnand %p580_p1, %p235_p2  ;;  %p28_p4 = scmp.ge.s32.totalorder %s814_s21, 2 }
   0x8   : > { %s581_s22 = sadd.s32 (!%p236_p3), 4294967295, %s686_s15  ;;  %p293_p5 = scmp.lt.s32.totalorder (!%p236_p3), %s690_s16, 1 }
   0x9   : > { %s816_s21 = smov (%p28_p4, %s814_s21), 0  ;;  %239 = sbr.rel (%p236_p3) target bundleno = 236 (0xec), region = 36 }
   0xa   : > { %p291_p6 = scmp.gt.s32.totalorder (!%p236_p3), %s581_s22, 0  ;;  %p582_p7 = scmp.lt.s32.totalorder (!%p236_p3), %s581_s22, 3 }
   0xb   : > { %p306_p8 = scmp.lt.s32.totalorder (!%p236_p3), %s686_s15, 3  ;;  %s312_s26 = sadd.s32 (!%p236_p3), 1, %s686_s15 }
   0xc   : > { %p313_p9 = scmp.lt.s32.totalorder (!%p236_p3), %s312_s26, 3 }
   0xe   : > { %v704_v0 = vmov 0.0   ;;  %s818_s16 = smov (!%p293_p5, %s690_s16), 1  ;;  %vm705_vm0 = vmmov 0   ;;  %s820_s22 = smov (!%p291_p6, %s581_s22), 0  ;;  %vm352_vm1 = vcmask 1041408   ;;  %vm348_vm2 = vcmask 31744  }
   0xf   : > { %610 = vmatprep.subr.bf16.mxu0 %v704_v0  ;;  %616 = vmatprep.subr.bf16.mxu1 %v704_v0  ;;  %s587_s23 = sshll.u32 %s818_s16, 2  ;;  %s822_s22 = smov (!%p582_p7, %s820_s22), 3  ;;  %v343_v12 = vld [vmem:[%s805_s3] sm:$0xf]  ;;  %vm397_vm3 = vcmask 125952  }
  0x10   : > { %612 = vmatprep.mubr.msk.bf16.mxu0 %vm705_vm0, %v704_v0  ;;  %618 = vmatprep.mubr.msk.bf16.mxu1 %vm705_vm0, %v704_v0  ;;  %s307_s24 = scalar_select %p306_p8, %s686_s15, 3 }
  0x11   : > { %s298_s25 = sadd.s32 %s822_s22, %s587_s23  ;;  %s824_s26 = smov (!%p313_p9, %s312_s26), 3 }
  0x12   : > { %s588_s27 = sshll.u32 %s298_s25, 1  ;;  %s309_s28 = sadd.s32 %s587_s23, %s307_s24 }
  0x13   : > { %s300_s5 = scalar_lea.vmem %s802_s0, %s588_s27  ;;  %s590_s6 = sshll.u32 %s309_s28, 1 }
  0x14   : > { %s311_s9 = scalar_lea.vmem %s803_s1, %s590_s6  ;;  %v337_v1 = vld [vmem:[%s300_s5] sm:$0x3]  ;;  %s826_s26 = smov (!%p313_p9, %s824_s26), 3 }
  0x15   : > { %v338_v2 = vunpack.c.l.bf16 %v337_v1  ;;  %v339_v3 = vld [vmem:[%s311_s9] sm:$0x3]  ;;  %s320_s10 = sadd.s32 %s587_s23, %s826_s26  ;;  %s596_s23 = sshll.u32 %s686_s15, 1 }
  0x16   : > { %v340_v4 = vunpack.c.l.bf16 %v339_v3  ;;  %s595_s11 = sshll.u32 %s320_s10, 1  ;;  %p329_p10 = scmp.lt.s32.totalorder %s596_s23, 7 }
  0x17   : > { %v345_v5 = vmul.f32 0.25, %v338_v2  ;;  %s322_s14 = scalar_lea.vmem %s804_s2, %s595_s11  ;;  %s597_s25 = sshll.u32 %s818_s16, 3 }
  0x18   : > { %v344_v6 = vmul.f32 0.75, %v340_v4  ;;  %v341_v9 = vld [vmem:[%s322_s14] sm:$0x3]  ;;  %s828_s23 = smov (!%p329_p10, %s596_s23), 7 }
  0x19   : > { %v342_v11 = vunpack.c.l.bf16 %v341_v9  ;;  %s332_s26 = sadd.s32 %s597_s25, %s828_s23 }
  0x1a   : > { %v346_v7 = vadd.f32 %v345_v5, %v344_v6  ;;  %s598_s27 = sshll.u32 %s332_s26, 2 }
  0x1b   : > { %v399_v13 = vmul.f32 0.25, %v342_v11  ;;  %s334_s30 = scalar_lea.vmem %s806_s4, %s598_s27 }
  0x1c   : > { %v347_v8 = vpack.c.bf16 %v346_v7, %v346_v7 }
  0x1d   : > { %v400_v14 = vadd.f32 %v399_v13, %v344_v6 }
  0x1e   : > { %v354_v10 = vsel %vm352_vm1, %v347_v8, 0 }
  0x1f   : > { %611 = vmatpush3.bf16.msra.mxu0 %v354_v10  ;;  %v401_v15 = vpack.c.bf16 %v400_v14, %v400_v14 }
  0x21   : > { %v403_v16 = vsel %vm352_vm1, %v401_v15, 0 }
  0x22   : > { %613 = vmatmul.mubr.msk.bf16.vlgmr.msra.gmra.mxu0 %vm348_vm2, %v343_v12  ;;  %617 = vmatpush3.bf16.msra.mxu1 %v403_v16 }
  0x25   : > { %619 = vmatmul.mubr.msk.bf16.vlgmr.msra.gmra.mxu1 %vm348_vm2, %v343_v12 }
  0xe2   : > { %v390_v17 = vpop.f32.mrf.mxu0 }
  0xe3   : > { %v396_v18 = vpack.c.bf16 %v390_v17, %v390_v17 }
  0xe4   : > { %v614_v19 = vpop.f32.mrf.mxu0 }
  0xe5   : > { %398 = vst.msk [vmem:[%s334_s30] sm:$0xf] %vm397_vm3, %v396_v18  ;;  %v439_v22 = vpop.f32.mrf.mxu1 }
  0xe6   : > { %v393_v20 = vpop.f32.mrf.mxu0  ;;  %v445_v23 = vpack.c.bf16 %v439_v22, %v439_v22 }
  0xe7   : > { %v620_v24 = vpop.f32.mrf.mxu1 }
  0xe8   : > { %v615_v21 = vpop.f32.mrf.mxu0  ;;  %601 = vst.msk [vmem:[%s334_s30 + $0x4] sm:$0xf] %vm397_vm3, %v445_v23 }
  0xe9   : > { %v442_v25 = vpop.f32.mrf.mxu1 }
  0xeb   : > { %v621_v26 = vpop.f32.mrf.mxu1 }
  0xec PF: > { %s14_s19 = sadd.s32 1, %s702_s19   ;;  %s807_s15 = smov %s694_s17 }
  0xed   : > { %p11_p11 = scmp.ge.s32.totalorder %s14_s19, 10   ;;  %s808_s16 = smov %s698_s18 }
  0xee   : > { %s809_s17 = smov %s812_s20  ;;  %s810_s18 = smov %s816_s21 }
  0xef   :  { %13 = sbr.rel (!%p11_p11) target bundleno = 3 (0x3), region = 73 }

// kernel: setr_pup_forward.29
= control target key start
LH: loop header
LB: loop body
LE: loop exit
PB: predicated region body
PF: predicated region fallthrough
CT: control target
= control target key end

     0   :  { %s1355_s15 = smov 0   ;;  %s1502_s0 = inlined_call_operand.vmem [shape: bf16[2,38,32], index: 0, kind: input, shape index: {}]   ;;  %s1503_s1 = inlined_call_operand.vmem [shape: bf16[3,3,32,16], index: 1, kind: input, shape index: {}]   ;;  %s1504_s2 = inlined_call_operand.vmem [shape: f32[1,16], index: 2, kind: input, shape index: {}]   ;;  %s1505_s3 = inlined_call_operand.vmem [shape: f32[1,16], index: 3, kind: input, shape index: {}]   ;;  %s1506_s4 = inlined_call_operand.vmem [shape: bf16[2,24,16], index: 4, kind: output, shape index: {}]  }
   0x1 LB: > { %s1075_s16 = sadd.s32 4294967295, %s1328_s15   ;;  %p1079_p0 = scmp.ge.s32.totalorder %s1328_s15, 1  ;;  %s1328_s15 = sphi %s1355_s15, %s14_s15  }
   0x2   : > { %p162_p1 = scmp.lt.s32.totalorder %s1328_s15, 3 }
   0x4   : > { %p163_p2 = pnand %p1079_p0, %p162_p1 }
   0x5   : > { %p188_p3 = scmp.lt.s32.totalorder (!%p163_p2), %s1075_s16, 1 }
   0x6   : > { %166 = sbr.rel (%p163_p2) target bundleno = 268 (0x10c), region = 36 }
   0xb   : > { %v1291_v0 = vld [vmem:[%s1503_s1 + $0x18] sm:$0xff]   ;;  %v1292_v1 = vld [vmem:[%s1503_s1 + $0x8] sm:$0xff]   ;;  %v1293_v2 = vld [vmem:[%s1503_s1 + $0x10] sm:$0xff]   ;;  %s1508_s16 = smov (!%p188_p3, %s1075_s16), 1  ;;  %vm250_vm0 = vcmask 261120   ;;  %vm380_vm2 = vcmask 1046528  }
   0xc   : > { %1209 = vmatprep.subr.bf16.mxu0 %v1291_v0  ;;  %1217 = vmatprep.subr.bf16.mxu1 %v1292_v1  ;;  %v1294_v3 = vld [vmem:[%s1503_s1] sm:$0xff]   ;;  %s1281_s25 = smul.u32 20, %s1508_s16  ;;  %v1297_v4 = vld [vmem:[%s1503_s1 + $0x28] sm:$0xff]   ;;  %v1299_v5 = vld [vmem:[%s1503_s1 + $0x38] sm:$0xff]   ;;  %vm222_vm1 = vsmask.f32 7424 }
   0xd   : > { %1210 = vmatpush3.bf16.msra.mxu0 %v1291_v0  ;;  %1218 = vmatpush3.bf16.msra.mxu1 %v1292_v1  ;;  %v1301_v13 = vld [vmem:[%s1503_s1 + $0x30] sm:$0xff]   ;;  %vm466_vm3 = vcmask 1044480   ;;  %v1306_v31 = vld [vmem:[%s1503_s1 + $0x58] sm:$0xff]   ;;  %v1300_v35 = vld [vmem:[%s1503_s1 + $0x20] sm:$0xff]   ;;  %vm548_vm4 = vsmask.f32 4352 }
   0xe   : > { %1211 = vmatprep.subr.bf16.mxu0 %v1293_v2  ;;  %1219 = vmatprep.subr.bf16.mxu1 %v1294_v3  ;;  %s1384_s30 = scalar_lea.vmem %s1502_s0, %s1281_s25  ;;  %v1308_v39 = vld [vmem:[%s1503_s1 + $0x50] sm:$0xff]   ;;  %v1305_v43 = vld [vmem:[%s1503_s1 + $0x48] sm:$0xff]   ;;  %v1313_v55 = vld [vmem:[%s1503_s1 + $0x78] sm:$0xff]   ;;  %vm812_vm5 = vsmask.f32 5376  ;;  %vm730_vm6 = vcmask 1045504  }
   0xf   : > { %v199_v6 = vld [vmem:[%s1384_s30] sm:$0xf]  ;;  %v1391_v7 = vld [vmem:[%s1384_s30 + $0x4] sm:$0xf]  ;;  %v1394_v8 = vld [vmem:[%s1384_s30 + $0x8] sm:$0xf] }
  0x10   : > { %v206_v9 = vld [vmem:[%s1384_s30 + $0xc] sm:$0x1]  ;;  %v1086_v10 = vcombine.low %v199_v6, %v1391_v7  ;;  %v1092_v11 = vcombine.low %v1394_v8, %v1394_v8  ;;  %v371_v14 = vld [vmem:[%s1384_s30] sm:$0xe]  ;;  %v1129_v42 = vcombine.low %v1391_v7, %v1394_v8  ;;  %v711_v51 = vld [vmem:[%s1384_s30 + $0x4] sm:$0xc] }
  0x11   : > { %1212 = vmatpush3.bf16.msra.mxu0 %v1293_v2  ;;  %1220 = vmatpush3.bf16.msra.mxu1 %v1294_v3  ;;  %v1401_v12 = vcombine.low %v1394_v8, %v206_v9  ;;  %v1101_v17 = vcombine.low %v371_v14, %v1391_v7  ;;  %v453_v18 = vld [vmem:[%s1384_s30] sm:$0x8]  ;;  %v454_v19 = vld [vmem:[%s1384_s30 + $0xc] sm:$0x7]  ;;  %v712_v52 = vld [vmem:[%s1384_s30 + $0x8] sm:$0xf] }
  0x12   : > { %1225 = vmatprep.subr.bf16.mxu0 %v1297_v4  ;;  %1233 = vmatprep.subr.bf16.mxu1 %v1299_v5  ;;  %v224_v15 = vshrl.u32 %v1086_v10, 16  ;;  %v226_v16 = vshll.u32 %v1086_v10, 16  ;;  %v1110_v23 = vcombine.low %v453_v18, %v1391_v7  ;;  %v1111_v26 = vcombine.low %v1394_v8, %v454_v19  ;;  %v1421_v33 = vld [vmem:[%s1384_s30 + $0xc] sm:$0xf]  ;;  %v714_v56 = vld [vmem:[%s1384_s30 + $0x10] sm:$0x3] }
  0x13   : > { %1221 = vmatprep.mubr.msk.bf16.mxu1 %vm250_vm0, %v1086_v10  ;;  %v231_v20 = vshll.u32 %v1401_v12, 16  ;;  %v235_v21 = vshrl.u32 %v1401_v12, 16  ;;  %v382_v22 = vrot.slane %v1401_v12, 1  ;;  %v381_v25 = vrot.slane %v1101_v17, 1  ;;  %v713_v53 = vld [vmem:[%s1384_s30 + $0xc] sm:$0xf] }
  0x14   : > { %1222 = vmatmul.mubr.msk.bf16.vlgmr.msra.gmra.mxu1 %vm250_vm0, %v1092_v11  ;;  %v228_v24 = vrot.slane %v226_v16, 1  ;;  %v467_v28 = vrot.slane %v1110_v23, 3  ;;  %v468_v30 = vrot.slane %v1111_v26, 3  ;;  %v1120_v38 = vcombine.low %v1394_v8, %v1421_v33  ;;  %v803_v58 = vld [vmem:[%s1384_s30 + $0x10] sm:$0x7]  ;;  %v1307_v61 = vld [vmem:[%s1503_s1 + $0x40] sm:$0xff]  }
  0x15   : > { %1234 = vmatpush3.bf16.msra.mxu1 %v1299_v5  ;;  %v233_v27 = vrot.slane %v231_v20, 1  ;;  %v383_v36 = vsel %vm380_vm2, %v381_v25, %v382_v22  ;;  %v550_v40 = vshrl.u32 %v1110_v23, 16  ;;  %v553_v41 = vshll.u32 %v1110_v23, 16  ;;  %v1311_v9 = vld [vmem:[%s1503_s1 + $0x68] sm:$0xff]   ;;  %v899_v14 = vld [vmem:[%s1384_s30 + $0x4] sm:$0x8] }
  0x16   : > { %1235 = vmatprep.subr.bf16.mxu1 %v1301_v13  ;;  %v229_v29 = vor.u32 %v228_v24, %v224_v15  ;;  %v469_v37 = vsel %vm466_vm3, %v467_v28, %v468_v30  ;;  %v558_v44 = vshrl.u32 %v1120_v38, 16  ;;  %v561_v45 = vshll.u32 %v1120_v38, 16  ;;  %v1314_v16 = vld [vmem:[%s1503_s1 + $0x60] sm:$0xff]   ;;  %v1319_v19 = vld [vmem:[%s1503_s1 + $0x88] sm:$0xff]   ;;  %s1282_s11 = smul.u32 12, %s1508_s16 }
  0x17   : > { %v237_v32 = vor.u32 %v235_v21, %v233_v27  ;;  %1237 = vmatprep.mubr.msk.bf16.mxu1 %vm250_vm0, %v469_v37  ;;  %v552_v46 = vrot.slane %v550_v40, 3  ;;  %v555_v47 = vrot.slane %v553_v41, 4  ;;  %v1139_v57 = vcombine.low %v711_v51, %v712_v52 }
  0x18   : > { %v234_v34 = vsel %vm222_vm1, %v229_v29, %v233_v27  ;;  %v560_v48 = vrot.slane %v558_v44, 3  ;;  %v563_v49 = vrot.slane %v561_v45, 4  ;;  %v1130_v59 = vcombine.low %v1421_v33, %v1421_v33  ;;  %s197_s14 = scalar_lea.vmem %s1506_s4, %s1282_s11 }
  0x19   : > { %1236 = vmatpush3.bf16.msra.mxu1 %v1301_v13  ;;  %1213 = vmatprep.mubr.msk.bf16.mxu0 %vm250_vm0, %v234_v34  ;;  %v556_v50 = vor.u32 %v555_v47, %v552_v46  ;;  %v1149_v60 = vcombine.low %v713_v53, %v803_v58  ;;  %v1140_v63 = vcombine.low %v713_v53, %v714_v56  ;;  %v814_v0 = vshrl.u32 %v1139_v57, 16 }
  0x1a   : > { %1214 = vmatmul.mubr.msk.bf16.vlgmr.msra.gmra.mxu0 %vm250_vm0, %v237_v32  ;;  %1249 = vmatprep.subr.bf16.mxu1 %v1306_v31  ;;  %v564_v54 = vor.u32 %v563_v49, %v560_v48  ;;  %v817_v1 = vshll.u32 %v1139_v57, 16  ;;  %v731_v10 = vrot.slane %v1139_v57, 2  ;;  %v1158_v18 = vcombine.low %v899_v14, %v712_v52  ;;  %v1164_v14 = vld [vmem:[%s1505_s3] ss:$0 sm:$0xff] }
  0x1b   : > { %1226 = vmatpush3.bf16.msra.mxu0 %v1297_v4  ;;  %1229 = vmatprep.mubr.msk.bf16.mxu0 %vm250_vm0, %v383_v36  ;;  %v822_v2 = vshrl.u32 %v1149_v60, 16  ;;  %v825_v3 = vshll.u32 %v1149_v60, 16  ;;  %v1315_v4 = vld [vmem:[%s1503_s1 + $0x70] sm:$0xff]   ;;  %v816_v5 = vrot.slane %v814_v0, 2  ;;  %v732_v11 = vrot.slane %v1140_v63, 2 }
  0x1c   : > { %1227 = vmatprep.subr.bf16.mxu0 %v1300_v35  ;;  %1238 = vmatmul.mubr.msk.bf16.vlgmr.msra.gmra.mxu1 %vm250_vm0, %v468_v30  ;;  %v565_v62 = vsel %vm548_vm4, %v556_v50, %v564_v54  ;;  %v819_v6 = vrot.slane %v817_v1, 3  ;;  %v908_v20 = vrot.slane %v1158_v18, 3  ;;  %v909_v21 = vrot.slane %v1149_v60, 3 }
  0x1d   : > { %1250 = vmatpush3.bf16.msra.mxu1 %v1306_v31  ;;  %1253 = vmatprep.mubr.msk.bf16.mxu1 %vm250_vm0, %v1129_v42  ;;  %v824_v7 = vrot.slane %v822_v2, 2  ;;  %v827_v8 = vrot.slane %v825_v3, 3  ;;  %v733_v17 = vsel %vm730_vm6, %v731_v10, %v732_v11  ;;  %v1163_v10 = vld [vmem:[%s1504_s2] ss:$0 sm:$0xff]  ;;  %vm1016_vm7 = vcmask 125952  }
  0x1e   : > { %1251 = vmatprep.subr.bf16.mxu1 %v1308_v39  ;;  %v820_v12 = vor.u32 %v819_v6, %v816_v5  ;;  %v910_v23 = vsel %vm466_vm3, %v908_v20, %v909_v21 }
  0x1f   : > { %1228 = vmatpush3.bf16.msra.mxu0 %v1300_v35  ;;  %v828_v13 = vor.u32 %v827_v8, %v824_v7 }
  0x20   : > { %1241 = vmatprep.subr.bf16.mxu0 %v1305_v43 }
  0x21   : > { %1252 = vmatpush3.bf16.msra.mxu1 %v1308_v39  ;;  %v829_v15 = vsel %vm812_vm5, %v820_v12, %v828_v13 }
  0x22   : > { %1230 = vmatmul.mubr.msk.bf16.vlgmr.msra.gmra.mxu0 %vm250_vm0, %v382_v22  ;;  %1265 = vmatprep.subr.bf16.mxu1 %v1313_v55  ;;  %v1320_v22 = vld [vmem:[%s1503_s1 + $0x80] sm:$0xff]  }
  0x23   : > { %1242 = vmatpush3.bf16.msra.mxu0 %v1305_v43  ;;  %1245 = vmatprep.mubr.msk.bf16.mxu0 %vm250_vm0, %v565_v62 }
  0x24   : > { %1243 = vmatprep.subr.bf16.mxu0 %v1307_v61  ;;  %1254 = vmatmul.mubr.msk.bf16.vlgmr.msra.gmra.mxu1 %vm250_vm0, %v1130_v59 }
  0x25   : > { %1266 = vmatpush3.bf16.msra.mxu1 %v1313_v55  ;;  %1269 = vmatprep.mubr.msk.bf16.mxu1 %vm250_vm0, %v829_v15 }
  0x26   : > { %1267 = vmatprep.subr.bf16.mxu1 %v1315_v4 }
  0x27   : > { %1244 = vmatpush3.bf16.msra.mxu0 %v1307_v61 }
  0x28   : > { %1257 = vmatprep.subr.bf16.mxu0 %v1311_v9 }
  0x29   : > { %1268 = vmatpush3.bf16.msra.mxu1 %v1315_v4 }
  0x2a   : > { %1246 = vmatmul.mubr.msk.bf16.vlgmr.msra.gmra.mxu0 %vm250_vm0, %v564_v54 }
  0x2b   : > { %1258 = vmatpush3.bf16.msra.mxu0 %v1311_v9  ;;  %1261 = vmatprep.mubr.msk.bf16.mxu0 %vm250_vm0, %v733_v17 }
  0x2c   : > { %1259 = vmatprep.subr.bf16.mxu0 %v1314_v16  ;;  %1270 = vmatmul.mubr.msk.bf16.vlgmr.msra.gmra.mxu1 %vm250_vm0, %v828_v13 }
  0x2f   : > { %1260 = vmatpush3.bf16.msra.mxu0 %v1314_v16 }
  0x30   : > { %1273 = vmatprep.subr.bf16.mxu0 %v1319_v19 }
  0x32   : > { %1262 = vmatmul.mubr.msk.bf16.vlgmr.msra.gmra.mxu0 %vm250_vm0, %v732_v11 }
  0x33   : > { %1274 = vmatpush3.bf16.msra.mxu0 %v1319_v19  ;;  %1277 = vmatprep.mubr.msk.bf16.mxu0 %vm250_vm0, %v910_v23 }
  0x34   : > { %1275 = vmatprep.subr.bf16.mxu0 %v1320_v22 }
  0x37   : > { %1276 = vmatpush3.bf16.msra.mxu0 %v1320_v22 }
  0x3a   : > { %1278 = vmatmul.mubr.msk.bf16.vlgmr.msra.gmra.mxu0 %vm250_vm0, %v909_v21 }
  0xd4   : > { %v1223_v24 = vpop.f32.mrf.mxu1 }
  0xd6   : > { %v357_v25 = vpop.f32.mrf.mxu1 }
  0xd8   : > { %v1224_v26 = vpop.f32.mrf.mxu1 }
  0xda   : > { %v360_v27 = vpop.f32.mrf.mxu1  ;;  %v1215_v28 = vpop.f32.mrf.mxu0 }
  0xdb   : > { %v366_v41 = vadd.f32 %v1223_v24, %v1215_v28 }
  0xdc   : > { %v291_v29 = vpop.f32.mrf.mxu0  ;;  %v1239_v30 = vpop.f32.mrf.mxu1 }
  0xdd   : > { %v358_v44 = vadd.f32 %v357_v25, %v291_v29 }
  0xde   : > { %v1216_v31 = vpop.f32.mrf.mxu0  ;;  %v522_v32 = vpop.f32.mrf.mxu1 }
  0xe0   : > { %v294_v33 = vpop.f32.mrf.mxu0  ;;  %v1240_v34 = vpop.f32.mrf.mxu1 }
  0xe1   : > { %v361_v51 = vadd.f32 %v360_v27, %v294_v33 }
  0xe2   : > { %v1231_v35 = vpop.f32.mrf.mxu0  ;;  %v525_v36 = vpop.f32.mrf.mxu1 }
  0xe3   : > { %v452_v45 = vadd.f32 %v1231_v35, %v366_v41 }
  0xe4   : > { %v436_v37 = vpop.f32.mrf.mxu0  ;;  %v1255_v38 = vpop.f32.mrf.mxu1 }
  0xe5   : > { %v450_v48 = vadd.f32 %v436_v37, %v358_v44  ;;  %v538_v52 = vadd.f32 %v1239_v30, %v452_v45 }
  0xe6   : > { %v1232_v39 = vpop.f32.mrf.mxu0  ;;  %v694_v40 = vpop.f32.mrf.mxu1 }
  0xe7   : > { %v536_v55 = vadd.f32 %v522_v32, %v450_v48 }
  0xe8   : > { %v439_v42 = vpop.f32.mrf.mxu0  ;;  %v1256_v43 = vpop.f32.mrf.mxu1 }
  0xe9   : > { %v451_v56 = vadd.f32 %v439_v42, %v361_v51 }
  0xea   : > { %v1247_v46 = vpop.f32.mrf.mxu0  ;;  %v697_v47 = vpop.f32.mrf.mxu1 }
  0xeb   : > { %v634_v57 = vadd.f32 %v1247_v46, %v538_v52  ;;  %v537_v62 = vadd.f32 %v525_v36, %v451_v56 }
  0xec   : > { %v618_v49 = vpop.f32.mrf.mxu0  ;;  %v1271_v50 = vpop.f32.mrf.mxu1 }
  0xed   : > { %v632_v60 = vadd.f32 %v618_v49, %v536_v55  ;;  %v710_v63 = vadd.f32 %v1255_v38, %v634_v57 }
  0xee   : > { %v1248_v53 = vpop.f32.mrf.mxu0  ;;  %v882_v54 = vpop.f32.mrf.mxu1 }
  0xef   : > { %v708_v1 = vadd.f32 %v694_v40, %v632_v60 }
  0xf0   : > { %v621_v58 = vpop.f32.mrf.mxu0  ;;  %v1272_v59 = vpop.f32.mrf.mxu1 }
  0xf1   : > { %v633_v2 = vadd.f32 %v621_v58, %v537_v62 }
  0xf2   : > { %v1263_v61 = vpop.f32.mrf.mxu0  ;;  %v885_v18 = vpop.f32.mrf.mxu1 }
  0xf3   : > { %v802_v3 = vadd.f32 %v1263_v61, %v710_v63  ;;  %v709_v7 = vadd.f32 %v697_v47, %v633_v2 }
  0xf4   : > { %v786_v0 = vpop.f32.mrf.mxu0 }
  0xf5   : > { %v800_v5 = vadd.f32 %v786_v0, %v708_v1  ;;  %v898_v8 = vadd.f32 %v1271_v50, %v802_v3 }
  0xf6   : > { %v1264_v4 = vpop.f32.mrf.mxu0 }
  0xf7   : > { %v896_v11 = vadd.f32 %v882_v54, %v800_v5 }
  0xf8   : > { %v789_v6 = vpop.f32.mrf.mxu0 }
  0xf9   : > { %v801_v12 = vadd.f32 %v789_v6, %v709_v7 }
  0xfa   : > { %v1279_v9 = vpop.f32.mrf.mxu0 }
  0xfb   : > { %v979_v13 = vadd.f32 %v1279_v9, %v898_v8  ;;  %v897_v20 = vadd.f32 %v885_v18, %v801_v12 }
  0xfc   : > { %v963_v15 = vpop.f32.mrf.mxu0 }
  0xfd   : > { %v989_v16 = vmul.f32 %v1163_v10, %v979_v13  ;;  %v977_v17 = vadd.f32 %v963_v15, %v896_v11 }
  0xfe   : > { %v1280_v19 = vpop.f32.mrf.mxu0 }
  0xff   : > { %v999_v21 = vadd.f32 %v1164_v14, %v989_v16  ;;  %v987_v22 = vmul.f32 %v1163_v10, %v977_v17 }
 0x100   : > { %v966_v23 = vpop.f32.mrf.mxu0 }
 0x101   : > { %v1002_v24 = vmax.f32 %v999_v21, 0.0  ;;  %v997_v25 = vadd.f32 %v1164_v14, %v987_v22  ;;  %v978_v26 = vadd.f32 %v966_v23, %v897_v20 }
 0x103   : > { %v1172_v27 = vpack.c.bf16 %v1002_v24, %v1002_v24  ;;  %v1000_v28 = vmax.f32 %v997_v25, 0.0  ;;  %v988_v29 = vmul.f32 %v1163_v10, %v978_v26 }
 0x105   : > { %1019 = vst.msk [vmem:[%s197_s14 + $0x8] sm:$0xf] %vm1016_vm7, %v1172_v27  ;;  %v1170_v30 = vpack.c.bf16 %v1000_v28, %v1000_v28  ;;  %v998_v31 = vadd.f32 %v1164_v14, %v988_v29 }
 0x107   : > { %1017 = vst.msk [vmem:[%s197_s14] sm:$0xf] %vm1016_vm7, %v1170_v30  ;;  %v1001_v32 = vmax.f32 %v998_v31, 0.0 }
 0x109   : > { %v1171_v33 = vpack.c.bf16 %v1001_v32, %v1001_v32 }
 0x10b   : > { %1018 = vst.msk [vmem:[%s197_s14 + $0x4] sm:$0xf] %vm1016_vm7, %v1171_v33 }
 0x10c PF: > { %s14_s15 = sadd.s32 1, %s1328_s15  }
 0x10d   : > { %p11_p4 = scmp.ge.s32.totalorder %s14_s15, 4  }
 0x10f   :  { %13 = sbr.rel (!%p11_p4) target bundleno = 1 (0x1), region = 74 }

// kernel: setr_pup_forward.32
= control target key start
LH: loop header
LB: loop body
LE: loop exit
PB: predicated region body
PF: predicated region fallthrough
CT: control target
= control target key end

     0   :  { %s775_s15 = smov 0   ;;  %s777_s16 = smov 0   ;;  %s846_s0 = inlined_call_operand.vmem [shape: bf16[2,8,8,16], index: 0, kind: input, shape index: {}, may-alias: {0,1,2}]   ;;  %s847_s1 = inlined_call_operand.vmem [shape: bf16[2,8,8,16], index: 1, kind: input, shape index: {}, may-alias: {0,1,2}]   ;;  %s848_s2 = inlined_call_operand.vmem [shape: bf16[2,8,8,16], index: 2, kind: input, shape index: {}, may-alias: {0,1,2}]   ;;  %s849_s3 = inlined_call_operand.vmem [shape: bf16[16,8], index: 3, kind: input, shape index: {}]   ;;  %s850_s4 = inlined_call_operand.vmem [shape: bf16[2,16,16,16], index: 4, kind: output, shape index: {}]  }
   0x1   :  { %s779_s17 = smov 0   ;;  %s781_s18 = smov 0  }
   0x2   :  { %s783_s19 = smov 0  }
   0x3 LB: > { %s23_s20 = sadd.s32 1, %s738_s17  ;;  %s26_s21 = sadd.s32 1, %s742_s18  ;;  %s746_s19 = sphi %s783_s19, %s14_s19   ;;  %s742_s18 = sphi %s781_s18, %s854_s18   ;;  %s738_s17 = sphi %s779_s17, %s853_s17   ;;  %s734_s16 = sphi %s777_s16, %s852_s16   ;;  %s730_s15 = sphi %s775_s15, %s851_s15  }
   0x4   : > { %p24_p0 = scmp.ge.s32.totalorder %s23_s20, 8  ;;  %p612_p1 = scmp.ge.s32.totalorder %s746_s19, 1 }
   0x5   : > { %p235_p2 = scmp.lt.s32.totalorder %s746_s19, 17 }
   0x6   : > { %s856_s20 = smov (%p24_p0, %s23_s20), 0  ;;  %s858_s21 = smov (!%p24_p0, %s26_s21), %s742_s18 }
   0x7   : > { %p236_p3 = pnand %p612_p1, %p235_p2  ;;  %p28_p4 = scmp.ge.s32.totalorder %s858_s21, 2 }
   0x8   : > { %s613_s22 = sadd.s32 (!%p236_p3), 4294967295, %s730_s15  ;;  %p294_p5 = scmp.lt.s32.totalorder (!%p236_p3), %s734_s16, 1 }
   0x9   : > { %s860_s21 = smov (%p28_p4, %s858_s21), 0  ;;  %239 = sbr.rel (%p236_p3) target bundleno = 237 (0xed), region = 36 }
   0xa   : > { %p292_p6 = scmp.gt.s32.totalorder (!%p236_p3), %s613_s22, 0  ;;  %p614_p7 = scmp.lt.s32.totalorder (!%p236_p3), %s613_s22, 7 }
   0xb   : > { %p307_p8 = scmp.lt.s32.totalorder (!%p236_p3), %s730_s15, 7  ;;  %s313_s26 = sadd.s32 (!%p236_p3), 1, %s730_s15 }
   0xc   : > { %p314_p9 = scmp.lt.s32.totalorder (!%p236_p3), %s313_s26, 7 }
   0xe   : > { %v748_v0 = vmov 0.0   ;;  %s862_s16 = smov (!%p294_p5, %s734_s16), 1  ;;  %vm749_vm0 = vmmov 0   ;;  %s864_s22 = smov (!%p292_p6, %s613_s22), 0  ;;  %vm360_vm1 = vcmask 1043456   ;;  %v707_v12 = vld [vmem:[%s849_s3] sm:$0xff]  }
   0xf   : > { %653 = vmatprep.subr.bf16.mxu0 %v748_v0  ;;  %659 = vmatprep.subr.bf16.mxu1 %v748_v0  ;;  %s619_s23 = sshll.u32 %s862_s16, 3  ;;  %s866_s22 = smov (!%p614_p7, %s864_s22), 7  ;;  %vm356_vm2 = vcmask 64512   ;;  %vm413_vm3 = vcmask 125952  }
  0x10   : > { %655 = vmatprep.mubr.msk.bf16.mxu0 %vm749_vm0, %v748_v0  ;;  %661 = vmatprep.mubr.msk.bf16.mxu1 %vm749_vm0, %v748_v0  ;;  %s308_s24 = scalar_select %p307_p8, %s730_s15, 7 }
  0x11   : > { %s299_s25 = sadd.s32 %s866_s22, %s619_s23  ;;  %s868_s26 = smov (!%p314_p9, %s313_s26), 7 }
  0x12   : > { %s620_s27 = sshll.u32 %s299_s25, 2  ;;  %s310_s28 = sadd.s32 %s619_s23, %s308_s24 }
  0x13   : > { %s301_s5 = scalar_lea.vmem %s846_s0, %s620_s27  ;;  %s622_s6 = sshll.u32 %s310_s28, 2 }
  0x14   : > { %s312_s9 = scalar_lea.vmem %s847_s1, %s622_s6  ;;  %v339_v1 = vld [vmem:[%s301_s5] sm:$0xf]  ;;  %s870_s26 = smov (!%p314_p9, %s868_s26), 7 }
  0x15   : > { %v340_v2 = vunpack.c.l.bf16 %v339_v1  ;;  %v341_v3 = vld [vmem:[%s312_s9] sm:$0xf]  ;;  %s321_s10 = sadd.s32 %s619_s23, %s870_s26  ;;  %s628_s23 = sshll.u32 %s730_s15, 1 }
  0x16   : > { %v342_v4 = vunpack.c.l.bf16 %v341_v3  ;;  %s627_s11 = sshll.u32 %s321_s10, 2  ;;  %p330_p10 = scmp.lt.s32.totalorder %s628_s23, 15 }
  0x17   : > { %v348_v5 = vmul.f32 0.25, %v340_v2  ;;  %s323_s14 = scalar_lea.vmem %s848_s2, %s627_s11  ;;  %s630_s26 = sshll.u32 %s862_s16, 5 }
  0x18   : > { %v347_v6 = vmul.f32 0.75, %v342_v4  ;;  %v343_v9 = vld [vmem:[%s323_s14] sm:$0xf]  ;;  %s872_s23 = smov (!%p330_p10, %s628_s23), 15 }
  0x19   : > { %v344_v11 = vunpack.c.l.bf16 %v343_v9  ;;  %s629_s25 = sshll.u32 %s872_s23, 1 }
  0x1a   : > { %v349_v7 = vadd.f32 %v348_v5, %v347_v6  ;;  %s334_s27 = sadd.s32 %s630_s26, %s629_s25 }
  0x1b   : > { %v416_v13 = vmul.f32 0.25, %v344_v11  ;;  %s631_s28 = sshll.u32 %s334_s27, 2 }
  0x1c   : > { %v350_v8 = vpack.c.bf16 %v349_v7, %v349_v7  ;;  %s336_s5 = scalar_lea.vmem %s850_s4, %s631_s28 }
  0x1d   : > { %v417_v14 = vadd.f32 %v416_v13, %v347_v6 }
  0x1e   : > { %v362_v10 = vsel %vm360_vm1, %v350_v8, 0 }
  0x1f   : > { %654 = vmatpush3.bf16.msra.mxu0 %v362_v10  ;;  %v418_v15 = vpack.c.bf16 %v417_v14, %v417_v14 }
  0x21   : > { %v420_v16 = vsel %vm360_vm1, %v418_v15, 0 }
  0x22   : > { %656 = vmatmul.mubr.msk.bf16.vlgmr.msra.gmra.mxu0 %vm356_vm2, %v707_v12  ;;  %660 = vmatpush3.bf16.msra.mxu1 %v420_v16 }
  0x25   : > { %662 = vmatmul.mubr.msk.bf16.vlgmr.msra.gmra.mxu1 %vm356_vm2, %v707_v12 }
  0xe2   : > { %v398_v17 = vpop.f32.mrf.mxu0 }
  0xe3   : > { %v645_v18 = vpack.c.bf16 %v398_v17, %v398_v17 }
  0xe4   : > { %v657_v19 = vpop.f32.mrf.mxu0 }
  0xe5   : > { %414 = vst.msk [vmem:[%s336_s5] sm:$0xf] %vm413_vm3, %v645_v18  ;;  %v456_v23 = vpop.f32.mrf.mxu1 }
  0xe6   : > { %v401_v20 = vpop.f32.mrf.mxu0  ;;  %v647_v24 = vpack.c.bf16 %v456_v23, %v456_v23 }
  0xe7   : > { %v646_v21 = vpack.c.bf16 %v401_v20, %v401_v20  ;;  %v663_v25 = vpop.f32.mrf.mxu1 }
  0xe8   : > { %v658_v22 = vpop.f32.mrf.mxu0  ;;  %639 = vst.msk [vmem:[%s336_s5 + $0x8] sm:$0xf] %vm413_vm3, %v647_v24 }
  0xe9   : > { %415 = vst.msk [vmem:[%s336_s5 + $0x4] sm:$0xf] %vm413_vm3, %v646_v21  ;;  %v459_v26 = vpop.f32.mrf.mxu1 }
  0xea   : > { %v648_v27 = vpack.c.bf16 %v459_v26, %v459_v26 }
  0xeb   : > { %v664_v28 = vpop.f32.mrf.mxu1 }
  0xec   : > { %640 = vst.msk [vmem:[%s336_s5 + $0xc] sm:$0xf] %vm413_vm3, %v648_v27 }
  0xed PF: > { %s14_s19 = sadd.s32 1, %s746_s19   ;;  %s851_s15 = smov %s738_s17 }
  0xee   : > { %p11_p11 = scmp.ge.s32.totalorder %s14_s19, 18   ;;  %s852_s16 = smov %s742_s18 }
  0xef   : > { %s853_s17 = smov %s856_s20  ;;  %s854_s18 = smov %s860_s21 }
  0xf0   :  { %13 = sbr.rel (!%p11_p11) target bundleno = 3 (0x3), region = 73 }

// kernel: setr_pup_forward.33
= control target key start
LH: loop header
LB: loop body
LE: loop exit
PB: predicated region body
PF: predicated region fallthrough
CT: control target
= control target key end

     0   :  { %vm379_vm0 = vcmask 130048   ;;  %s1711_s1 = inlined_call_operand.vmem [shape: bf16[16,128], index: 1, kind: input, shape index: {}]   ;;  %s1712_s0 = inlined_call_operand.vmem [shape: bf16[512,16], index: 0, kind: input, shape index: {}]   ;;  %s1713_s2 = inlined_call_operand.vmem [shape: f32[1,128], index: 2, kind: input, shape index: {}]   ;;  %s1714_s3 = inlined_call_operand.vmem [shape: f32[512,128], index: 3, kind: output, shape index: {}]  }
   0x1   :  { %v1266_v0 = vld [vmem:[%s1711_s1] sm:$0xff]   ;;  %v1269_v3 = vld [vmem:[%s1712_s0 + $0x8] sm:$0xff]   ;;  %v1271_v5 = vld [vmem:[%s1712_s0 + $0x10] sm:$0xff]  }
   0x2   :  { %v1267_v1 = vld [vmem:[%s1712_s0] sm:$0xff]   ;;  %1198 = vmatprep.subr.bf16.mxu0 %v1266_v0  ;;  %1264 = vmatprep.subr.bf16.mxu1 %v1266_v0  ;;  %v1270_v4 = vld [vmem:[%s1712_s0 + $0x88] sm:$0xff]   ;;  %v1272_v6 = vld [vmem:[%s1712_s0 + $0x90] sm:$0xff]  }
   0x3   :  { %v1268_v2 = vld [vmem:[%s1712_s0 + $0x80] sm:$0xff]   ;;  %1199 = vmatpush3.bf16.msra.mxu0 %v1266_v0  ;;  %1265 = vmatpush3.bf16.msra.mxu1 %v1266_v0  ;;  %v1273_v7 = vld [vmem:[%s1712_s0 + $0x18] sm:$0xff]   ;;  %v1277_v11 = vld [vmem:[%s1712_s0 + $0x28] sm:$0xff]  }
   0x4   :  { %1200 = vmatprep.mubr.msk.bf16.mxu0 %vm379_vm0, %v1267_v1  ;;  %1232 = vmatprep.mubr.msk.bf16.mxu1 %vm379_vm0, %v1268_v2  ;;  %v1274_v8 = vld [vmem:[%s1712_s0 + $0x98] sm:$0xff]   ;;  %v1275_v9 = vld [vmem:[%s1712_s0 + $0x20] sm:$0xff]   ;;  %v1278_v12 = vld [vmem:[%s1712_s0 + $0xa8] sm:$0xff]  }
   0x5   :  { %v1276_v10 = vld [vmem:[%s1712_s0 + $0xa0] sm:$0xff]   ;;  %v1279_v13 = vld [vmem:[%s1712_s0 + $0x30] sm:$0xff]   ;;  %v1281_v15 = vld [vmem:[%s1712_s0 + $0x38] sm:$0xff]  }
   0x6   :  { %1201 = vmatmul.mubr.msk.bf16.vlgmr.msra.gmra.mxu0 %vm379_vm0, %v1269_v3  ;;  %1233 = vmatmul.mubr.msk.bf16.vlgmr.msra.gmra.mxu1 %vm379_vm0, %v1270_v4  ;;  %v1280_v14 = vld [vmem:[%s1712_s0 + $0xb0] sm:$0xff]   ;;  %v1282_v16 = vld [vmem:[%s1712_s0 + $0xb8] sm:$0xff]   ;;  %v1283_v17 = vld [vmem:[%s1712_s0 + $0x40] sm:$0xff]  }
   0x7   :  { %1204 = vmatprep.mubr.msk.bf16.mxu0 %vm379_vm0, %v1271_v5  ;;  %1236 = vmatprep.mubr.msk.bf16.mxu1 %vm379_vm0, %v1272_v6  ;;  %v1284_v18 = vld [vmem:[%s1712_s0 + $0xc0] sm:$0xff]   ;;  %v1285_v19 = vld [vmem:[%s1712_s0 + $0x48] sm:$0xff]   ;;  %v1287_v21 = vld [vmem:[%s1712_s0 + $0x50] sm:$0xff]  }
   0x8   :  { %v1286_v20 = vld [vmem:[%s1712_s0 + $0xc8] sm:$0xff]   ;;  %v1288_v22 = vld [vmem:[%s1712_s0 + $0xd0] sm:$0xff]   ;;  %v1289_v23 = vld [vmem:[%s1712_s0 + $0x58] sm:$0xff]  }
   0x9   :  { %v1290_v24 = vld [vmem:[%s1712_s0 + $0xd8] sm:$0xff]   ;;  %v1291_v25 = vld [vmem:[%s1712_s0 + $0x60] sm:$0xff]   ;;  %v1293_v27 = vld [vmem:[%s1712_s0 + $0x68] sm:$0xff]  }
   0xa   :  { %v1292_v26 = vld [vmem:[%s1712_s0 + $0xe0] sm:$0xff]   ;;  %v1294_v28 = vld [vmem:[%s1712_s0 + $0xe8] sm:$0xff]   ;;  %v1295_v29 = vld [vmem:[%s1712_s0 + $0x70] sm:$0xff]  }
   0xb   :  { %v1296_v30 = vld [vmem:[%s1712_s0 + $0xf0] sm:$0xff]   ;;  %v1297_v31 = vld [vmem:[%s1712_s0 + $0x78] sm:$0xff]   ;;  %v1453_v33 = vld [vmem:[%s1713_s2] ss:$0 sm:$0xff] }
   0xc   :  { %v1298_v32 = vld [vmem:[%s1712_s0 + $0xf8] sm:$0xff]  }
   0xe   :  { %1205 = vmatmul.mubr.msk.bf16.gmra.mxu0 %vm379_vm0, %v1273_v7  ;;  %1237 = vmatmul.mubr.msk.bf16.gmra.mxu1 %vm379_vm0, %v1274_v8 }
   0xf   :  { %1208 = vmatprep.mubr.msk.bf16.mxu0 %vm379_vm0, %v1275_v9  ;;  %1240 = vmatprep.mubr.msk.bf16.mxu1 %vm379_vm0, %v1276_v10 }
  0x16   :  { %1209 = vmatmul.mubr.msk.bf16.gmra.mxu0 %vm379_vm0, %v1277_v11  ;;  %1241 = vmatmul.mubr.msk.bf16.gmra.mxu1 %vm379_vm0, %v1278_v12 }
  0x17   :  { %1212 = vmatprep.mubr.msk.bf16.mxu0 %vm379_vm0, %v1279_v13  ;;  %1244 = vmatprep.mubr.msk.bf16.mxu1 %vm379_vm0, %v1280_v14 }
  0x1e   :  { %1213 = vmatmul.mubr.msk.bf16.gmra.mxu0 %vm379_vm0, %v1281_v15  ;;  %1245 = vmatmul.mubr.msk.bf16.gmra.mxu1 %vm379_vm0, %v1282_v16 }
  0x1f   :  { %1216 = vmatprep.mubr.msk.bf16.mxu0 %vm379_vm0, %v1283_v17  ;;  %1248 = vmatprep.mubr.msk.bf16.mxu1 %vm379_vm0, %v1284_v18 }
  0x26   :  { %1217 = vmatmul.mubr.msk.bf16.gmra.mxu0 %vm379_vm0, %v1285_v19  ;;  %1249 = vmatmul.mubr.msk.bf16.gmra.mxu1 %vm379_vm0, %v1286_v20 }
  0x27   :  { %1220 = vmatprep.mubr.msk.bf16.mxu0 %vm379_vm0, %v1287_v21  ;;  %1252 = vmatprep.mubr.msk.bf16.mxu1 %vm379_vm0, %v1288_v22 }
  0x2e   :  { %1221 = vmatmul.mubr.msk.bf16.gmra.mxu0 %vm379_vm0, %v1289_v23  ;;  %1253 = vmatmul.mubr.msk.bf16.gmra.mxu1 %vm379_vm0, %v1290_v24 }
  0x2f   :  { %1224 = vmatprep.mubr.msk.bf16.mxu0 %vm379_vm0, %v1291_v25  ;;  %1256 = vmatprep.mubr.msk.bf16.mxu1 %vm379_vm0, %v1292_v26 }
  0x36   :  { %1225 = vmatmul.mubr.msk.bf16.gmra.mxu0 %vm379_vm0, %v1293_v27  ;;  %1257 = vmatmul.mubr.msk.bf16.gmra.mxu1 %vm379_vm0, %v1294_v28 }
  0x37   :  { %1228 = vmatprep.mubr.msk.bf16.mxu0 %vm379_vm0, %v1295_v29  ;;  %1260 = vmatprep.mubr.msk.bf16.mxu1 %vm379_vm0, %v1296_v30 }
  0x3e   :  { %1229 = vmatmul.mubr.msk.bf16.gmra.mxu0 %vm379_vm0, %v1297_v31  ;;  %1261 = vmatmul.mubr.msk.bf16.gmra.mxu1 %vm379_vm0, %v1298_v32 }
  0xc6   :  { %v1202_v34 = vpop.f32.mrf.mxu0  ;;  %v1234_v35 = vpop.f32.mrf.mxu1 }
  0xc7   :  { %v969_v36 = vadd.f32 %v1202_v34, %v1453_v33  ;;  %v1001_v37 = vadd.f32 %v1234_v35, %v1453_v33 }
  0xc8   :  { %v510_v38 = vpop.f32.mrf.mxu0  ;;  %v638_v39 = vpop.f32.mrf.mxu1 }
  0xc9   :  { %1033 = vst [vmem:[%s1714_s3 + $0x10] sm:$0xff] %v969_v36  ;;  %1065 = vst [vmem:[%s1714_s3 + $0x110] sm:$0xff] %v1001_v37  ;;  %v967_v40 = vadd.f32 %v1453_v33, %v510_v38  ;;  %v999_v41 = vadd.f32 %v1453_v33, %v638_v39 }
  0xca   :  { %v1203_v42 = vpop.f32.mrf.mxu0  ;;  %v1235_v43 = vpop.f32.mrf.mxu1 }
  0xcb   :  { %1031 = vst [vmem:[%s1714_s3] sm:$0xff] %v967_v40  ;;  %1063 = vst [vmem:[%s1714_s3 + $0x100] sm:$0xff] %v999_v41  ;;  %v970_v44 = vadd.f32 %v1203_v42, %v1453_v33  ;;  %v1002_v45 = vadd.f32 %v1235_v43, %v1453_v33 }
  0xcc   :  { %v513_v46 = vpop.f32.mrf.mxu0  ;;  %v641_v47 = vpop.f32.mrf.mxu1 }
  0xcd   :  { %1034 = vst [vmem:[%s1714_s3 + $0x18] sm:$0xff] %v970_v44  ;;  %1066 = vst [vmem:[%s1714_s3 + $0x118] sm:$0xff] %v1002_v45  ;;  %v968_v48 = vadd.f32 %v1453_v33, %v513_v46  ;;  %v1000_v49 = vadd.f32 %v1453_v33, %v641_v47 }
  0xce   :  { %v1206_v50 = vpop.f32.mrf.mxu0  ;;  %v1238_v51 = vpop.f32.mrf.mxu1 }
  0xcf   :  { %1032 = vst [vmem:[%s1714_s3 + $0x8] sm:$0xff] %v968_v48  ;;  %1064 = vst [vmem:[%s1714_s3 + $0x108] sm:$0xff] %v1000_v49  ;;  %v973_v52 = vadd.f32 %v1206_v50, %v1453_v33  ;;  %v1005_v53 = vadd.f32 %v1238_v51, %v1453_v33 }
  0xd0   :  { %v526_v54 = vpop.f32.mrf.mxu0  ;;  %v654_v55 = vpop.f32.mrf.mxu1 }
  0xd1   :  { %1037 = vst [vmem:[%s1714_s3 + $0x30] sm:$0xff] %v973_v52  ;;  %1069 = vst [vmem:[%s1714_s3 + $0x130] sm:$0xff] %v1005_v53  ;;  %v971_v56 = vadd.f32 %v1453_v33, %v526_v54  ;;  %v1003_v57 = vadd.f32 %v1453_v33, %v654_v55 }
  0xd2   :  { %v1207_v58 = vpop.f32.mrf.mxu0  ;;  %v1239_v59 = vpop.f32.mrf.mxu1 }
  0xd3   :  { %1035 = vst [vmem:[%s1714_s3 + $0x20] sm:$0xff] %v971_v56  ;;  %1067 = vst [vmem:[%s1714_s3 + $0x120] sm:$0xff] %v1003_v57  ;;  %v974_v60 = vadd.f32 %v1207_v58, %v1453_v33  ;;  %v1006_v61 = vadd.f32 %v1239_v59, %v1453_v33 }
  0xd4   :  { %v529_v62 = vpop.f32.mrf.mxu0  ;;  %v657_v63 = vpop.f32.mrf.mxu1 }
  0xd5   :  { %1038 = vst [vmem:[%s1714_s3 + $0x38] sm:$0xff] %v974_v60  ;;  %1070 = vst [vmem:[%s1714_s3 + $0x138] sm:$0xff] %v1006_v61  ;;  %v972_v0 = vadd.f32 %v1453_v33, %v529_v62  ;;  %v1004_v1 = vadd.f32 %v1453_v33, %v657_v63 }
  0xd6   :  { %v1210_v2 = vpop.f32.mrf.mxu0  ;;  %v1242_v3 = vpop.f32.mrf.mxu1 }
  0xd7   :  { %1036 = vst [vmem:[%s1714_s3 + $0x28] sm:$0xff] %v972_v0  ;;  %1068 = vst [vmem:[%s1714_s3 + $0x128] sm:$0xff] %v1004_v1  ;;  %v977_v4 = vadd.f32 %v1210_v2, %v1453_v33  ;;  %v1009_v5 = vadd.f32 %v1242_v3, %v1453_v33 }
  0xd8   :  { %v542_v6 = vpop.f32.mrf.mxu0  ;;  %v670_v7 = vpop.f32.mrf.mxu1 }
  0xd9   :  { %1041 = vst [vmem:[%s1714_s3 + $0x50] sm:$0xff] %v977_v4  ;;  %1073 = vst [vmem:[%s1714_s3 + $0x150] sm:$0xff] %v1009_v5  ;;  %v975_v8 = vadd.f32 %v1453_v33, %v542_v6  ;;  %v1007_v9 = vadd.f32 %v1453_v33, %v670_v7 }
  0xda   :  { %v1211_v10 = vpop.f32.mrf.mxu0  ;;  %v1243_v11 = vpop.f32.mrf.mxu1 }
  0xdb   :  { %1039 = vst [vmem:[%s1714_s3 + $0x40] sm:$0xff] %v975_v8  ;;  %1071 = vst [vmem:[%s1714_s3 + $0x140] sm:$0xff] %v1007_v9  ;;  %v978_v12 = vadd.f32 %v1211_v10, %v1453_v33  ;;  %v1010_v13 = vadd.f32 %v1243_v11, %v1453_v33 }
  0xdc   :  { %v545_v14 = vpop.f32.mrf.mxu0  ;;  %v673_v15 = vpop.f32.mrf.mxu1 }
  0xdd   :  { %1042 = vst [vmem:[%s1714_s3 + $0x58] sm:$0xff] %v978_v12  ;;  %1074 = vst [vmem:[%s1714_s3 + $0x158] sm:$0xff] %v1010_v13  ;;  %v976_v16 = vadd.f32 %v1453_v33, %v545_v14  ;;  %v1008_v17 = vadd.f32 %v1453_v33, %v673_v15 }
  0xde   :  { %v1214_v18 = vpop.f32.mrf.mxu0  ;;  %v1246_v19 = vpop.f32.mrf.mxu1 }
  0xdf   :  { %1040 = vst [vmem:[%s1714_s3 + $0x48] sm:$0xff] %v976_v16  ;;  %1072 = vst [vmem:[%s1714_s3 + $0x148] sm:$0xff] %v1008_v17  ;;  %v981_v20 = vadd.f32 %v1214_v18, %v1453_v33  ;;  %v1013_v21 = vadd.f32 %v1246_v19, %v1453_v33 }
  0xe0   :  { %v558_v22 = vpop.f32.mrf.mxu0  ;;  %v686_v23 = vpop.f32.mrf.mxu1 }
  0xe1   :  { %1045 = vst [vmem:[%s1714_s3 + $0x70] sm:$0xff] %v981_v20  ;;  %1077 = vst [vmem:[%s1714_s3 + $0x170] sm:$0xff] %v1013_v21  ;;  %v979_v24 = vadd.f32 %v1453_v33, %v558_v22  ;;  %v1011_v25 = vadd.f32 %v1453_v33, %v686_v23 }
  0xe2   :  { %v1215_v26 = vpop.f32.mrf.mxu0  ;;  %v1247_v27 = vpop.f32.mrf.mxu1 }
  0xe3   :  { %1043 = vst [vmem:[%s1714_s3 + $0x60] sm:$0xff] %v979_v24  ;;  %1075 = vst [vmem:[%s1714_s3 + $0x160] sm:$0xff] %v1011_v25  ;;  %v982_v28 = vadd.f32 %v1215_v26, %v1453_v33  ;;  %v1014_v29 = vadd.f32 %v1247_v27, %v1453_v33 }
  0xe4   :  { %v561_v30 = vpop.f32.mrf.mxu0  ;;  %v689_v31 = vpop.f32.mrf.mxu1 }
  0xe5   :  { %1046 = vst [vmem:[%s1714_s3 + $0x78] sm:$0xff] %v982_v28  ;;  %1078 = vst [vmem:[%s1714_s3 + $0x178] sm:$0xff] %v1014_v29  ;;  %v980_v32 = vadd.f32 %v1453_v33, %v561_v30  ;;  %v1012_v34 = vadd.f32 %v1453_v33, %v689_v31 }
  0xe6   :  { %v1218_v35 = vpop.f32.mrf.mxu0  ;;  %v1250_v36 = vpop.f32.mrf.mxu1 }
  0xe7   :  { %1044 = vst [vmem:[%s1714_s3 + $0x68] sm:$0xff] %v980_v32  ;;  %1076 = vst [vmem:[%s1714_s3 + $0x168] sm:$0xff] %v1012_v34  ;;  %v985_v37 = vadd.f32 %v1218_v35, %v1453_v33  ;;  %v1017_v38 = vadd.f32 %v1250_v36, %v1453_v33 }
  0xe8   :  { %v574_v39 = vpop.f32.mrf.mxu0  ;;  %v702_v40 = vpop.f32.mrf.mxu1 }
  0xe9   :  { %1049 = vst [vmem:[%s1714_s3 + $0x90] sm:$0xff] %v985_v37  ;;  %1081 = vst [vmem:[%s1714_s3 + $0x190] sm:$0xff] %v1017_v38  ;;  %v983_v41 = vadd.f32 %v1453_v33, %v574_v39  ;;  %v1015_v42 = vadd.f32 %v1453_v33, %v702_v40 }
  0xea   :  { %v1219_v43 = vpop.f32.mrf.mxu0  ;;  %v1251_v44 = vpop.f32.mrf.mxu1 }
  0xeb   :  { %1047 = vst [vmem:[%s1714_s3 + $0x80] sm:$0xff] %v983_v41  ;;  %1079 = vst [vmem:[%s1714_s3 + $0x180] sm:$0xff] %v1015_v42  ;;  %v986_v45 = vadd.f32 %v1219_v43, %v1453_v33  ;;  %v1018_v46 = vadd.f32 %v1251_v44, %v1453_v33 }
  0xec   :  { %v577_v47 = vpop.f32.mrf.mxu0  ;;  %v705_v48 = vpop.f32.mrf.mxu1 }
  0xed   :  { %1050 = vst [vmem:[%s1714_s3 + $0x98] sm:$0xff] %v986_v45  ;;  %1082 = vst [vmem:[%s1714_s3 + $0x198] sm:$0xff] %v1018_v46  ;;  %v984_v49 = vadd.f32 %v1453_v33, %v577_v47  ;;  %v1016_v50 = vadd.f32 %v1453_v33, %v705_v48 }
  0xee   :  { %v1222_v51 = vpop.f32.mrf.mxu0  ;;  %v1254_v52 = vpop.f32.mrf.mxu1 }
  0xef   :  { %1048 = vst [vmem:[%s1714_s3 + $0x88] sm:$0xff] %v984_v49  ;;  %1080 = vst [vmem:[%s1714_s3 + $0x188] sm:$0xff] %v1016_v50  ;;  %v989_v53 = vadd.f32 %v1222_v51, %v1453_v33  ;;  %v1021_v54 = vadd.f32 %v1254_v52, %v1453_v33 }
  0xf0   :  { %v590_v55 = vpop.f32.mrf.mxu0  ;;  %v718_v56 = vpop.f32.mrf.mxu1 }
  0xf1   :  { %1053 = vst [vmem:[%s1714_s3 + $0xb0] sm:$0xff] %v989_v53  ;;  %1085 = vst [vmem:[%s1714_s3 + $0x1b0] sm:$0xff] %v1021_v54  ;;  %v987_v57 = vadd.f32 %v1453_v33, %v590_v55  ;;  %v1019_v58 = vadd.f32 %v1453_v33, %v718_v56 }
  0xf2   :  { %v1223_v59 = vpop.f32.mrf.mxu0  ;;  %v1255_v60 = vpop.f32.mrf.mxu1 }
  0xf3   :  { %1051 = vst [vmem:[%s1714_s3 + $0xa0] sm:$0xff] %v987_v57  ;;  %1083 = vst [vmem:[%s1714_s3 + $0x1a0] sm:$0xff] %v1019_v58  ;;  %v990_v61 = vadd.f32 %v1223_v59, %v1453_v33  ;;  %v1022_v62 = vadd.f32 %v1255_v60, %v1453_v33 }
  0xf4   :  { %v593_v63 = vpop.f32.mrf.mxu0  ;;  %v721_v0 = vpop.f32.mrf.mxu1 }
  0xf5   :  { %1054 = vst [vmem:[%s1714_s3 + $0xb8] sm:$0xff] %v990_v61  ;;  %1086 = vst [vmem:[%s1714_s3 + $0x1b8] sm:$0xff] %v1022_v62  ;;  %v988_v1 = vadd.f32 %v1453_v33, %v593_v63  ;;  %v1020_v2 = vadd.f32 %v1453_v33, %v721_v0 }
  0xf6   :  { %v1226_v3 = vpop.f32.mrf.mxu0  ;;  %v1258_v4 = vpop.f32.mrf.mxu1 }
  0xf7   :  { %1052 = vst [vmem:[%s1714_s3 + $0xa8] sm:$0xff] %v988_v1  ;;  %1084 = vst [vmem:[%s1714_s3 + $0x1a8] sm:$0xff] %v1020_v2  ;;  %v993_v5 = vadd.f32 %v1226_v3, %v1453_v33  ;;  %v1025_v6 = vadd.f32 %v1258_v4, %v1453_v33 }
  0xf8   :  { %v606_v7 = vpop.f32.mrf.mxu0  ;;  %v734_v8 = vpop.f32.mrf.mxu1 }
  0xf9   :  { %1057 = vst [vmem:[%s1714_s3 + $0xd0] sm:$0xff] %v993_v5  ;;  %1089 = vst [vmem:[%s1714_s3 + $0x1d0] sm:$0xff] %v1025_v6  ;;  %v991_v9 = vadd.f32 %v1453_v33, %v606_v7  ;;  %v1023_v10 = vadd.f32 %v1453_v33, %v734_v8 }
  0xfa   :  { %v1227_v11 = vpop.f32.mrf.mxu0  ;;  %v1259_v12 = vpop.f32.mrf.mxu1 }
  0xfb   :  { %1055 = vst [vmem:[%s1714_s3 + $0xc0] sm:$0xff] %v991_v9  ;;  %1087 = vst [vmem:[%s1714_s3 + $0x1c0] sm:$0xff] %v1023_v10  ;;  %v994_v13 = vadd.f32 %v1227_v11, %v1453_v33  ;;  %v1026_v14 = vadd.f32 %v1259_v12, %v1453_v33 }
  0xfc   :  { %v609_v15 = vpop.f32.mrf.mxu0  ;;  %v737_v16 = vpop.f32.mrf.mxu1 }
  0xfd   :  { %1058 = vst [vmem:[%s1714_s3 + $0xd8] sm:$0xff] %v994_v13  ;;  %1090 = vst [vmem:[%s1714_s3 + $0x1d8] sm:$0xff] %v1026_v14  ;;  %v992_v17 = vadd.f32 %v1453_v33, %v609_v15  ;;  %v1024_v18 = vadd.f32 %v1453_v33, %v737_v16 }
  0xfe   :  { %v1230_v19 = vpop.f32.mrf.mxu0  ;;  %v1262_v20 = vpop.f32.mrf.mxu1 }
  0xff   :  { %1056 = vst [vmem:[%s1714_s3 + $0xc8] sm:$0xff] %v992_v17  ;;  %1088 = vst [vmem:[%s1714_s3 + $0x1c8] sm:$0xff] %v1024_v18  ;;  %v997_v21 = vadd.f32 %v1230_v19, %v1453_v33  ;;  %v1029_v22 = vadd.f32 %v1262_v20, %v1453_v33 }
 0x100   :  { %v622_v23 = vpop.f32.mrf.mxu0  ;;  %v750_v24 = vpop.f32.mrf.mxu1 }
 0x101   :  { %1061 = vst [vmem:[%s1714_s3 + $0xf0] sm:$0xff] %v997_v21  ;;  %1093 = vst [vmem:[%s1714_s3 + $0x1f0] sm:$0xff] %v1029_v22  ;;  %v995_v25 = vadd.f32 %v1453_v33, %v622_v23  ;;  %v1027_v26 = vadd.f32 %v1453_v33, %v750_v24 }
 0x102   :  { %v1231_v27 = vpop.f32.mrf.mxu0  ;;  %v1263_v28 = vpop.f32.mrf.mxu1 }
 0x103   :  { %1059 = vst [vmem:[%s1714_s3 + $0xe0] sm:$0xff] %v995_v25  ;;  %1091 = vst [vmem:[%s1714_s3 + $0x1e0] sm:$0xff] %v1027_v26  ;;  %v998_v29 = vadd.f32 %v1231_v27, %v1453_v33  ;;  %v1030_v30 = vadd.f32 %v1263_v28, %v1453_v33 }
 0x104   :  { %v625_v31 = vpop.f32.mrf.mxu0  ;;  %v753_v32 = vpop.f32.mrf.mxu1 }
 0x105   :  { %1062 = vst [vmem:[%s1714_s3 + $0xf8] sm:$0xff] %v998_v29  ;;  %1094 = vst [vmem:[%s1714_s3 + $0x1f8] sm:$0xff] %v1030_v30  ;;  %v996_v34 = vadd.f32 %v1453_v33, %v625_v31  ;;  %v1028_v35 = vadd.f32 %v1453_v33, %v753_v32 }
 0x107   :  { %1060 = vst [vmem:[%s1714_s3 + $0xe8] sm:$0xff] %v996_v34  ;;  %1092 = vst [vmem:[%s1714_s3 + $0x1e8] sm:$0xff] %v1028_v35 }

// kernel: setr_pup_forward.31
= control target key start
LH: loop header
LB: loop body
LE: loop exit
PB: predicated region body
PF: predicated region fallthrough
CT: control target
= control target key end

     0   :  { %s2092_s15 = smov 0   ;;  %s2567_s0 = inlined_call_operand.vmem [shape: bf16[2,102,16], index: 0, kind: input, shape index: {}]   ;;  %s2568_s1 = inlined_call_operand.vmem [shape: bf16[3,3,16,16], index: 1, kind: input, shape index: {}]   ;;  %s2569_s2 = inlined_call_operand.vmem [shape: f32[1,16], index: 2, kind: input, shape index: {}]   ;;  %s2570_s3 = inlined_call_operand.vmem [shape: f32[1,16], index: 3, kind: input, shape index: {}]   ;;  %s2571_s4 = inlined_call_operand.vmem [shape: bf16[2,80,16], index: 4, kind: output, shape index: {}]  }
   0x1 LB: > { %s1635_s16 = sadd.s32 4294967295, %s2063_s15   ;;  %p1639_p0 = scmp.ge.s32.totalorder %s2063_s15, 1  ;;  %s2063_s15 = sphi %s2092_s15, %s14_s15  }
   0x2   : > { %p162_p1 = scmp.lt.s32.totalorder %s2063_s15, 3 }
   0x4   : > { %p163_p2 = pnand %p1639_p0, %p162_p1 }
   0x5   : > { %p188_p3 = scmp.lt.s32.totalorder (!%p163_p2), %s1635_s16, 1 }
   0x6   : > { %166 = sbr.rel (%p163_p2) target bundleno = 409 (0x199), region = 36 }
   0xb   : > { %v2025_v0 = vld [vmem:[%s2568_s1 + $0x8] sm:$0xff]   ;;  %v2065_v1 = vmov 0.0   ;;  %vm2066_vm0 = vmmov 0   ;;  %s2573_s16 = smov (!%p188_p3, %s1635_s16), 1  ;;  %vm243_vm1 = vsmask.f32 7424 }
   0xc   : > { %1813 = vmatprep.subr.bf16.mxu0 %v2065_v1  ;;  %2011 = vmatprep.subr.bf16.mxu1 %v2065_v1  ;;  %s2013_s19 = smul.u32 52, %s2573_s16  ;;  %vm294_vm2 = vcmask 130048   ;;  %v2030_v20 = vld [vmem:[%s2568_s1 + $0x10] sm:$0xff]   ;;  %v2031_v24 = vld [vmem:[%s2568_s1] sm:$0xff]   ;;  %vm479_vm3 = vcmask 1046528   ;;  %v2034_v46 = vld [vmem:[%s2568_s1 + $0x18] sm:$0xff]  }
   0xd   : > { %1814 = vmatpush3.bf16.msra.mxu0 %v2025_v0  ;;  %2012 = vmatpush3.bf16.msra.mxu1 %v2025_v0  ;;  %v2036_v50 = vld [vmem:[%s2568_s1 + $0x20] sm:$0xff]   ;;  %vm759_vm4 = vsmask.f32 6400  ;;  %vm924_vm5 = vcmask 1045504   ;;  %vm1204_vm6 = vsmask.f32 5376 }
   0xe   : > { %1815 = vmatprep.mubr.msk.bf16.mxu0 %vm2066_vm0, %v2065_v1  ;;  %1827 = vmatprep.mubr.msk.bf16.mxu1 %vm2066_vm0, %v2065_v1  ;;  %s2117_s22 = scalar_lea.vmem %s2567_s0, %s2013_s19  ;;  %vm1369_vm7 = vcmask 1044480   ;;  %s2014_s19 = smul.u32 40, %s2573_s16  ;;  %vm1569_vm8 = vcmask 125952  }
   0xf   : > { %1857 = vmatprep.subr.bf16.mxu0 %v2065_v1  ;;  %1835 = vmatprep.subr.bf16.mxu1 %v2065_v1  ;;  %v199_v2 = vld [vmem:[%s2117_s22] sm:$0xf]  ;;  %v200_v3 = vld [vmem:[%s2117_s22 + $0x4] sm:$0xf]  ;;  %v2122_v5 = vld [vmem:[%s2117_s22 + $0x8] sm:$0xff]  }
  0x10   : > { %v1644_v4 = vcombine.low %v199_v2, %v200_v3  ;;  %v252_v8 = vshll.u32 %v2122_v5, 16  ;;  %v2126_v9 = vld [vmem:[%s2117_s22 + $0x18] sm:$0xff]   ;;  %v2129_v10 = vld [vmem:[%s2117_s22 + $0x20] sm:$0xff]   ;;  %v2132_v11 = vld [vmem:[%s2117_s22 + $0x10] sm:$0xff]   ;;  %v256_v21 = vshrl.u32 %v2122_v5, 16  ;;  %v481_v48 = vrot.slane %v2122_v5, 1 }
  0x11   : > { %v268_v14 = vshll.u32 %v2126_v9, 16  ;;  %v272_v15 = vshrl.u32 %v2126_v9, 16  ;;  %v276_v16 = vshll.u32 %v2129_v10, 16  ;;  %v2138_v17 = vld [vmem:[%s2117_s22 + $0x28] ss:$0 sps:$4 sm:$0x11]  }
  0x12   : > { %v245_v6 = vshrl.u32 %v1644_v4, 16  ;;  %v247_v7 = vshll.u32 %v1644_v4, 16  ;;  %v254_v13 = vrot.slane %v252_v8, 1  ;;  %v260_v22 = vshll.u32 %v2132_v11, 16  ;;  %v2163_v36 = vld [vmem:[%s2117_s22 + $0x24] sm:$0xff]   ;;  %v2230_v60 = vld [vmem:[%s2117_s22 + $0xc] sm:$0xff]  }
  0x13   : > { %v270_v19 = vrot.slane %v268_v14, 1  ;;  %v278_v23 = vrot.slane %v276_v16, 1  ;;  %v280_v27 = vshrl.u32 %v2129_v10, 16  ;;  %v284_v28 = vshll.u32 %v2138_v17, 16  ;;  %v472_v40 = vld [vmem:[%s2117_s22] sm:$0xe] }
  0x14   : > { %v249_v12 = vrot.slane %v247_v7, 1  ;;  %v258_v30 = vor.u32 %v256_v21, %v254_v13  ;;  %v262_v31 = vrot.slane %v260_v22, 1  ;;  %v264_v35 = vshrl.u32 %v2132_v11, 16  ;;  %v2044_v37 = vld [vmem:[%s2117_s22 + $0x2c] ss:$0 sps:$4 sm:$0x11]  }
  0x15   : > { %v274_v26 = vor.u32 %v272_v15, %v270_v19  ;;  %v282_v32 = vor.u32 %v280_v27, %v278_v23  ;;  %v286_v33 = vrot.slane %v284_v28, 1  ;;  %v644_v41 = vrot.slane %v2163_v36, 1  ;;  %v595_v56 = vld [vmem:[%s2117_s22 + $0x4] sm:$0xe]  ;;  %v2225_v57 = vld [vmem:[%s2117_s22 + $0x8] sm:$0xf] }
  0x16   : > { %v250_v18 = vor.u32 %v249_v12, %v245_v6  ;;  %v263_v34 = vsel %vm243_vm1, %v258_v30, %v262_v31  ;;  %v266_v39 = vor.u32 %v264_v35, %v262_v31  ;;  %v646_v42 = vrot.slane %v2044_v37, 1  ;;  %v2039_v12 = vld [vmem:[%s2568_s1 + $0x28] sm:$0xff]  }
  0x17   : > { %v279_v29 = vsel %vm243_vm1, %v274_v26, %v278_v23  ;;  %v287_v38 = vsel %vm243_vm1, %v282_v32, %v286_v33  ;;  %v1664_v45 = vcombine.low %v472_v40, %v200_v3  ;;  %v483_v51 = vrot.slane %v2132_v11, 1  ;;  %v2267_v23 = vld [vmem:[%s2117_s22 + $0x1c] sm:$0xff]  }
  0x18   : > { %v255_v25 = vsel %vm243_vm1, %v250_v18, %v254_v13  ;;  %1828 = vmatmul.mubr.msk.bf16.vlgmr.msra.gmra.mxu1 %vm294_vm2, %v279_v29  ;;  %v2178_v43 = vsel %vm479_vm3, %v644_v41, %v646_v42  ;;  %v271_v44 = vsel %vm243_vm1, %v266_v39, %v270_v19  ;;  %v485_v53 = vrot.slane %v2126_v9, 1  ;;  %v2249_v13 = vld [vmem:[%s2117_s22 + $0x14] sm:$0xff]   ;;  %v2291_v39 = vld [vmem:[%s2117_s22 + $0x2c] ss:$0 sps:$4 sm:$0x33]  }
  0x19   : > { %1816 = vmatmul.mubr.msk.bf16.vlgmr.msra.gmra.mxu0 %vm294_vm2, %v255_v25  ;;  %1836 = vmatpush3.bf16.msra.mxu1 %v2031_v24  ;;  %v480_v47 = vrot.slane %v1664_v45, 1  ;;  %v484_v52 = vsel %vm479_vm3, %v481_v48, %v483_v51  ;;  %v487_v55 = vrot.slane %v2129_v10, 1  ;;  %v1673_v59 = vcombine.low %v595_v56, %v2225_v57  ;;  %v2041_v19 = vld [vmem:[%s2568_s1 + $0x30] sm:$0xff]  }
  0x1a   : > { %1858 = vmatpush3.bf16.msra.mxu0 %v2030_v20  ;;  %1819 = vmatprep.mubr.msk.bf16.mxu0 %vm2066_vm0, %v2065_v1  ;;  %v486_v54 = vsel %vm479_vm3, %v483_v51, %v485_v53  ;;  %v489_v61 = vrot.slane %v2138_v17, 1  ;;  %v769_v0 = vshrl.u32 %v2230_v60, 16  ;;  %v772_v2 = vshll.u32 %v2230_v60, 16  ;;  %v1040_v51 = vld [vmem:[%s2117_s22 + $0x8] sm:$0xc] }
  0x1b   : > { %1901 = vmatprep.subr.bf16.mxu0 %v2065_v1  ;;  %1831 = vmatprep.mubr.msk.bf16.mxu1 %vm2066_vm0, %v2065_v1  ;;  %v482_v49 = vsel %vm479_vm3, %v480_v47, %v481_v48  ;;  %v488_v58 = vsel %vm479_vm3, %v485_v53, %v487_v55  ;;  %v761_v62 = vshrl.u32 %v1673_v59, 16  ;;  %v764_v63 = vshll.u32 %v1673_v59, 16 }
  0x1c   : > { %1879 = vmatprep.subr.bf16.mxu1 %v2065_v1  ;;  %v637_v3 = vrot.slane %v1673_v59, 1  ;;  %v771_v8 = vrot.slane %v769_v0, 1  ;;  %v778_v15 = vshrl.u32 %v2249_v13, 16  ;;  %v781_v16 = vshll.u32 %v2249_v13, 16  ;;  %v2341_v0 = vld [vmem:[%s2117_s22 + $0x18] sm:$0xff]  }
  0x1d   : > { %v763_v6 = vrot.slane %v761_v62, 1  ;;  %v766_v7 = vrot.slane %v764_v63, 2  ;;  %v640_v17 = vrot.slane %v2249_v13, 1  ;;  %v787_v25 = vshrl.u32 %v2267_v23, 16  ;;  %v2050_v63 = vld [vmem:[%s2568_s1 + $0x40] sm:$0xff]  }
  0x1e   : > { %v780_v20 = vrot.slane %v778_v15, 1  ;;  %v783_v21 = vrot.slane %v781_v16, 2  ;;  %v790_v26 = vshll.u32 %v2267_v23, 16  ;;  %v642_v27 = vrot.slane %v2267_v23, 1 }
  0x1f   : > { %v789_v29 = vrot.slane %v787_v25, 1  ;;  %v796_v33 = vshrl.u32 %v2163_v36, 16  ;;  %v808_v45 = vshll.u32 %v2291_v39, 16 }
  0x20   : > { %1832 = vmatmul.mubr.msk.bf16.gmra.mxu1 %vm294_vm2, %v287_v38  ;;  %v784_v24 = vor.u32 %v783_v21, %v780_v20  ;;  %v792_v30 = vrot.slane %v790_v26, 2  ;;  %v643_v31 = vsel %vm479_vm3, %v640_v17, %v642_v27  ;;  %v645_v40 = vsel %vm479_vm3, %v642_v27, %v644_v41  ;;  %v1362_v26 = vld [vmem:[%s2117_s22 + $0x8] sm:$0x8] }
  0x21   : > { %1820 = vmatmul.mubr.msk.bf16.gmra.mxu0 %vm294_vm2, %v263_v34  ;;  %1837 = vmatprep.mubr.msk.bf16.mxu1 %vm2066_vm0, %v2065_v1  ;;  %v799_v34 = vshll.u32 %v2163_v36, 16  ;;  %v798_v37 = vrot.slane %v796_v33, 1  ;;  %v810_v48 = vrot.slane %v808_v45, 2 }
  0x22   : > { %1823 = vmatprep.mubr.msk.bf16.mxu0 %vm2066_vm0, %v2065_v1  ;;  %v793_v32 = vor.u32 %v792_v30, %v789_v29  ;;  %v1223_v29 = vshrl.u32 %v2341_v0, 16  ;;  %v1226_v30 = vshll.u32 %v2341_v0, 16 }
  0x23   : > { %v801_v38 = vrot.slane %v799_v34, 2 }
  0x24   : > { %v794_v35 = vsel %vm759_vm4, %v784_v24, %v793_v32  ;;  %v1225_v34 = vrot.slane %v1223_v29, 2 }
  0x25   : > { %v802_v42 = vor.u32 %v801_v38, %v798_v37 }
  0x27   : > { %v803_v41 = vsel %vm759_vm4, %v793_v32, %v802_v42 }
  0x28   : > { %1838 = vmatmul.mubr.msk.bf16.vlgmr.msra.gmra.mxu1 %vm294_vm2, %v1644_v4  ;;  %v638_v4 = vrot.slane %v2230_v60, 1 }
  0x29   : > { %1824 = vmatmul.mubr.msk.bf16.gmra.mxu0 %vm294_vm2, %v271_v44  ;;  %1880 = vmatpush3.bf16.msra.mxu1 %v2034_v46  ;;  %v805_v44 = vshrl.u32 %v2291_v39, 16  ;;  %v917_v46 = vld [vmem:[%s2117_s22 + $0x4] sm:$0xc] }
  0x2a   : > { %1859 = vmatprep.mubr.msk.bf16.mxu0 %vm2066_vm0, %v2065_v1  ;;  %1841 = vmatprep.mubr.msk.bf16.mxu1 %vm2066_vm0, %v2065_v1  ;;  %v641_v22 = vsel %vm479_vm3, %v638_v4, %v640_v17 }
  0x2b   : > { %1923 = vmatprep.subr.bf16.mxu1 %v2065_v1  ;;  %v807_v47 = vrot.slane %v805_v44, 1 }
  0x30   : > { %1842 = vmatmul.mubr.msk.bf16.gmra.mxu1 %vm294_vm2, %v2122_v5  ;;  %v490_v5 = vsel %vm479_vm3, %v487_v55, %v489_v61  ;;  %v928_v61 = vrot.slane %v2249_v13, 2 }
  0x31   : > { %1860 = vmatmul.mubr.msk.bf16.vlgmr.msra.gmra.mxu0 %vm294_vm2, %v482_v49  ;;  %1845 = vmatprep.mubr.msk.bf16.mxu1 %vm2066_vm0, %v2065_v1  ;;  %v1696_v49 = vcombine.low %v917_v46, %v2225_v57  ;;  %v2322_v57 = vld [vmem:[%s2117_s22 + $0x10] sm:$0xff]  }
  0x32   : > { %1902 = vmatpush3.bf16.msra.mxu0 %v2036_v50  ;;  %1863 = vmatprep.mubr.msk.bf16.mxu0 %vm2066_vm0, %v2065_v1  ;;  %v811_v50 = vor.u32 %v810_v48, %v807_v47  ;;  %v1214_v16 = vshrl.u32 %v2322_v57, 16  ;;  %v1217_v17 = vshll.u32 %v2322_v57, 16  ;;  %v1371_v38 = vrot.slane %v2322_v57, 3 }
  0x33   : > { %1945 = vmatprep.subr.bf16.mxu0 %v2065_v1  ;;  %v925_v53 = vrot.slane %v1696_v49, 2  ;;  %v1373_v47 = vrot.slane %v2341_v0, 3 }
  0x34   : > { %v812_v55 = vsel %vm759_vm4, %v802_v42, %v811_v50 }
  0x38   : > { %1846 = vmatmul.mubr.msk.bf16.gmra.mxu1 %vm294_vm2, %v2132_v11  ;;  %v639_v11 = vsel %vm479_vm3, %v637_v3, %v638_v4  ;;  %v1085_v3 = vrot.slane %v2341_v0, 2  ;;  %v930_v4 = vrot.slane %v2267_v23, 2  ;;  %v1216_v23 = vrot.slane %v1214_v16, 2 }
  0x39   : > { %1864 = vmatmul.mubr.msk.bf16.gmra.mxu0 %vm294_vm2, %v484_v52  ;;  %1849 = vmatprep.mubr.msk.bf16.mxu1 %vm2066_vm0, %v2065_v1  ;;  %v2314_v52 = vld [vmem:[%s2117_s22 + $0xc] sm:$0xf] }
  0x3a   : > { %1867 = vmatprep.mubr.msk.bf16.mxu0 %vm2066_vm0, %v2065_v1  ;;  %v1705_v56 = vcombine.low %v1040_v51, %v2314_v52  ;;  %v1728_v32 = vcombine.low %v1362_v26, %v2314_v52  ;;  %v1374_v51 = vsel %vm1369_vm7, %v1371_v38, %v1373_v47 }
  0x3c   : > { %v1082_v59 = vrot.slane %v1705_v56, 2  ;;  %v1209_v15 = vshll.u32 %v1705_v56, 16  ;;  %v1370_v37 = vrot.slane %v1728_v32, 3 }
  0x3e   : > { %v1372_v44 = vsel %vm1369_vm7, %v1370_v37, %v1371_v38 }
  0x40   : > { %1850 = vmatmul.mubr.msk.bf16.gmra.mxu1 %vm294_vm2, %v2126_v9  ;;  %v774_v9 = vrot.slane %v772_v2, 2 }
  0x41   : > { %1868 = vmatmul.mubr.msk.bf16.gmra.mxu0 %vm294_vm2, %v486_v54  ;;  %1853 = vmatprep.mubr.msk.bf16.mxu1 %vm2066_vm0, %v2065_v1  ;;  %v926_v54 = vrot.slane %v2230_v60, 2  ;;  %v1083_v60 = vrot.slane %v2322_v57, 2 }
  0x42   : > { %1871 = vmatprep.mubr.msk.bf16.mxu0 %vm2066_vm0, %v2065_v1  ;;  %v775_v14 = vor.u32 %v774_v9, %v771_v8  ;;  %v932_v9 = vrot.slane %v2163_v36, 2  ;;  %v1206_v36 = vshrl.u32 %v1705_v56, 16 }
  0x43   : > { %v1084_v62 = vsel %vm924_vm5, %v1082_v59, %v1083_v60  ;;  %v929_v2 = vsel %vm924_vm5, %v926_v54, %v928_v61 }
  0x44   : > { %v785_v28 = vsel %vm759_vm4, %v775_v14, %v784_v24  ;;  %v933_v13 = vsel %vm924_vm5, %v930_v4, %v932_v9  ;;  %v1208_v21 = vrot.slane %v1206_v36, 2  ;;  %v1219_v24 = vrot.slane %v1217_v17, 3 }
  0x48   : > { %1854 = vmatmul.mubr.msk.bf16.gmra.mxu1 %vm294_vm2, %v2129_v10  ;;  %v767_v10 = vor.u32 %v766_v7, %v763_v6  ;;  %v2354_v6 = vld [vmem:[%s2117_s22 + $0x20] sm:$0xff]   ;;  %v931_v7 = vsel %vm924_vm5, %v928_v61, %v930_v4 }
  0x49   : > { %1872 = vmatmul.mubr.msk.bf16.gmra.mxu0 %vm294_vm2, %v488_v58  ;;  %1881 = vmatprep.mubr.msk.bf16.mxu1 %vm2066_vm0, %v2065_v1  ;;  %v927_v58 = vsel %vm924_vm5, %v925_v53, %v926_v54  ;;  %v1087_v8 = vrot.slane %v2354_v6, 2  ;;  %v1235_v42 = vshll.u32 %v2354_v6, 16  ;;  %v1375_v56 = vrot.slane %v2354_v6, 3 }
  0x4a   : > { %1875 = vmatprep.mubr.msk.bf16.mxu0 %vm2066_vm0, %v2065_v1  ;;  %v776_v18 = vsel %vm759_vm4, %v767_v10, %v775_v14  ;;  %v934_v14 = vrot.slane %v2291_v39, 2 }
  0x4b   : > { %v1376_v59 = vsel %vm1369_vm7, %v1373_v47, %v1375_v56 }
  0x4c   : > { %v935_v20 = vsel %vm924_vm5, %v932_v9, %v934_v14 }
  0x50   : > { %1882 = vmatmul.mubr.msk.bf16.vlgmr.msra.gmra.mxu1 %vm294_vm2, %v639_v11  ;;  %v1088_v11 = vsel %vm924_vm5, %v1085_v3, %v1087_v8 }
  0x51   : > { %1876 = vmatmul.mubr.msk.bf16.gmra.mxu0 %vm294_vm2, %v490_v5  ;;  %1924 = vmatpush3.bf16.msra.mxu1 %v2039_v12  ;;  %v1086_v5 = vsel %vm924_vm5, %v1083_v60, %v1085_v3  ;;  %v2367_v12 = vld [vmem:[%s2117_s22 + $0x28] sm:$0xff]  }
  0x52   : > { %1903 = vmatprep.mubr.msk.bf16.mxu0 %vm2066_vm0, %v2065_v1  ;;  %1885 = vmatprep.mubr.msk.bf16.mxu1 %vm2066_vm0, %v2065_v1  ;;  %v1089_v10 = vrot.slane %v2367_v12, 2  ;;  %v1241_v49 = vshrl.u32 %v2367_v12, 16  ;;  %v1244_v50 = vshll.u32 %v2367_v12, 16 }
  0x53   : > { %1967 = vmatprep.subr.bf16.mxu1 %v2065_v1 }
  0x54   : > { %v1243_v53 = vrot.slane %v1241_v49, 2  ;;  %v1246_v54 = vrot.slane %v1244_v50, 3 }
  0x56   : > { %v1247_v57 = vor.u32 %v1246_v54, %v1243_v53 }
  0x58   : > { %1886 = vmatmul.mubr.msk.bf16.gmra.mxu1 %vm294_vm2, %v641_v22  ;;  %v1211_v22 = vrot.slane %v1209_v15, 3 }
  0x59   : > { %1904 = vmatmul.mubr.msk.bf16.vlgmr.msra.gmra.mxu0 %vm294_vm2, %v776_v18  ;;  %1889 = vmatprep.mubr.msk.bf16.mxu1 %vm2066_vm0, %v2065_v1  ;;  %v1090_v18 = vsel %vm924_vm5, %v1087_v8, %v1089_v10 }
  0x5a   : > { %1946 = vmatpush3.bf16.msra.mxu0 %v2041_v19  ;;  %1907 = vmatprep.mubr.msk.bf16.mxu0 %vm2066_vm0, %v2065_v1  ;;  %v2054_v19 = vld [vmem:[%s2117_s22 + $0x30] ss:$0 sps:$4 sm:$0x33]   ;;  %v1212_v27 = vor.u32 %v1211_v22, %v1208_v21 }
  0x5b   : > { %1989 = vmatprep.subr.bf16.mxu0 %v2065_v1  ;;  %v1091_v25 = vrot.slane %v2054_v19, 2 }
  0x60   : > { %1890 = vmatmul.mubr.msk.bf16.gmra.mxu1 %vm294_vm2, %v643_v31  ;;  %v1092_v31 = vsel %vm924_vm5, %v1089_v10, %v1091_v25 }
  0x61   : > { %1908 = vmatmul.mubr.msk.bf16.gmra.mxu0 %vm294_vm2, %v785_v28  ;;  %1893 = vmatprep.mubr.msk.bf16.mxu1 %vm2066_vm0, %v2065_v1  ;;  %v1220_v28 = vor.u32 %v1219_v24, %v1216_v23 }
  0x62   : > { %1911 = vmatprep.mubr.msk.bf16.mxu0 %vm2066_vm0, %v2065_v1 }
  0x63   : > { %v1221_v33 = vsel %vm1204_vm6, %v1212_v27, %v1220_v28 }
  0x68   : > { %1894 = vmatmul.mubr.msk.bf16.gmra.mxu1 %vm294_vm2, %v645_v40  ;;  %v1232_v40 = vshrl.u32 %v2354_v6, 16 }
  0x69   : > { %1912 = vmatmul.mubr.msk.bf16.gmra.mxu0 %vm294_vm2, %v794_v35  ;;  %1897 = vmatprep.mubr.msk.bf16.mxu1 %vm2066_vm0, %v2065_v1  ;;  %v1228_v35 = vrot.slane %v1226_v30, 3 }
  0x6a   : > { %1915 = vmatprep.mubr.msk.bf16.mxu0 %vm2066_vm0, %v2065_v1  ;;  %v1234_v46 = vrot.slane %v1232_v40, 2 }
  0x6b   : > { %v1229_v39 = vor.u32 %v1228_v35, %v1225_v34 }
  0x6d   : > { %v1230_v45 = vsel %vm1204_vm6, %v1220_v28, %v1229_v39 }
  0x70   : > { %1898 = vmatmul.mubr.msk.bf16.gmra.mxu1 %vm294_vm2, %v2178_v43  ;;  %v2047_v43 = vld [vmem:[%s2568_s1 + $0x38] sm:$0xff]  }
  0x71   : > { %1916 = vmatmul.mubr.msk.bf16.gmra.mxu0 %vm294_vm2, %v803_v41  ;;  %1925 = vmatprep.mubr.msk.bf16.mxu1 %vm2066_vm0, %v2065_v1  ;;  %v1237_v41 = vrot.slane %v1235_v42, 3 }
  0x72   : > { %1919 = vmatprep.mubr.msk.bf16.mxu0 %vm2066_vm0, %v2065_v1 }
  0x73   : > { %v1238_v48 = vor.u32 %v1237_v41, %v1234_v46 }
  0x75   : > { %v1239_v52 = vsel %vm1204_vm6, %v1229_v39, %v1238_v48  ;;  %v1248_v60 = vsel %vm1204_vm6, %v1238_v48, %v1247_v57 }
  0x78   : > { %1926 = vmatmul.mubr.msk.bf16.vlgmr.msra.gmra.mxu1 %vm294_vm2, %v927_v58 }
  0x79   : > { %1920 = vmatmul.mubr.msk.bf16.gmra.mxu0 %vm294_vm2, %v812_v55  ;;  %1968 = vmatpush3.bf16.msra.mxu1 %v2047_v43  ;;  %v2056_v55 = vld [vmem:[%s2117_s22 + $0x30] ss:$0 sps:$4 sm:$0x77]   ;;  %s2507_s22 = scalar_lea.vmem %s2571_s4, %s2014_s19 }
  0x7a   : > { %1947 = vmatprep.mubr.msk.bf16.mxu0 %vm2066_vm0, %v2065_v1  ;;  %1929 = vmatprep.mubr.msk.bf16.mxu1 %vm2066_vm0, %v2065_v1  ;;  %v1250_v58 = vshrl.u32 %v2056_v55, 16  ;;  %v1253_v43 = vshll.u32 %v2056_v55, 16  ;;  %v1379_v4 = vrot.slane %v2056_v55, 3 }
  0x7c   : > { %v1252_v61 = vrot.slane %v1250_v58, 2 }
  0x80   : > { %1930 = vmatmul.mubr.msk.bf16.gmra.mxu1 %vm294_vm2, %v929_v2 }
  0x81   : > { %1948 = vmatmul.mubr.msk.bf16.vlgmr.msra.gmra.mxu0 %vm294_vm2, %v1084_v62  ;;  %1933 = vmatprep.mubr.msk.bf16.mxu1 %vm2066_vm0, %v2065_v1  ;;  %v1255_v62 = vrot.slane %v1253_v43, 3 }
  0x82   : > { %1990 = vmatpush3.bf16.msra.mxu0 %v2050_v63  ;;  %1951 = vmatprep.mubr.msk.bf16.mxu0 %vm2066_vm0, %v2065_v1  ;;  %v1377_v63 = vrot.slane %v2367_v12, 3 }
  0x83   : > { %v1256_v0 = vor.u32 %v1255_v62, %v1252_v61 }
  0x84   : > { %v1378_v2 = vsel %vm1369_vm7, %v1375_v56, %v1377_v63 }
  0x85   : > { %v1257_v3 = vsel %vm1204_vm6, %v1247_v57, %v1256_v0 }
  0x88   : > { %1934 = vmatmul.mubr.msk.bf16.gmra.mxu1 %vm294_vm2, %v931_v7 }
  0x89   : > { %1952 = vmatmul.mubr.msk.bf16.gmra.mxu0 %vm294_vm2, %v1086_v5  ;;  %1937 = vmatprep.mubr.msk.bf16.mxu1 %vm2066_vm0, %v2065_v1  ;;  %v1380_v5 = vsel %vm1369_vm7, %v1377_v63, %v1379_v4 }
  0x8a   : > { %1955 = vmatprep.mubr.msk.bf16.mxu0 %vm2066_vm0, %v2065_v1 }
  0x90   : > { %1938 = vmatmul.mubr.msk.bf16.gmra.mxu1 %vm294_vm2, %v933_v13 }
  0x91   : > { %1956 = vmatmul.mubr.msk.bf16.gmra.mxu0 %vm294_vm2, %v1088_v11  ;;  %1941 = vmatprep.mubr.msk.bf16.mxu1 %vm2066_vm0, %v2065_v1 }
  0x92   : > { %1959 = vmatprep.mubr.msk.bf16.mxu0 %vm2066_vm0, %v2065_v1 }
  0x98   : > { %1942 = vmatmul.mubr.msk.bf16.gmra.mxu1 %vm294_vm2, %v935_v20 }
  0x99   : > { %1960 = vmatmul.mubr.msk.bf16.gmra.mxu0 %vm294_vm2, %v1090_v18  ;;  %1969 = vmatprep.mubr.msk.bf16.mxu1 %vm2066_vm0, %v2065_v1 }
  0x9a   : > { %1963 = vmatprep.mubr.msk.bf16.mxu0 %vm2066_vm0, %v2065_v1 }
  0xa0   : > { %1970 = vmatmul.mubr.msk.bf16.vlgmr.msra.gmra.mxu1 %vm294_vm2, %v1221_v33 }
  0xa1   : > { %1964 = vmatmul.mubr.msk.bf16.gmra.mxu0 %vm294_vm2, %v1092_v31  ;;  %1973 = vmatprep.mubr.msk.bf16.mxu1 %vm2066_vm0, %v2065_v1 }
  0xa2   : > { %1991 = vmatprep.mubr.msk.bf16.mxu0 %vm2066_vm0, %v2065_v1 }
  0xa8   : > { %1974 = vmatmul.mubr.msk.bf16.gmra.mxu1 %vm294_vm2, %v1230_v45 }
  0xa9   : > { %1992 = vmatmul.mubr.msk.bf16.vlgmr.msra.gmra.mxu0 %vm294_vm2, %v1372_v44  ;;  %1977 = vmatprep.mubr.msk.bf16.mxu1 %vm2066_vm0, %v2065_v1 }
  0xaa   : > { %1995 = vmatprep.mubr.msk.bf16.mxu0 %vm2066_vm0, %v2065_v1 }
  0xb0   : > { %1978 = vmatmul.mubr.msk.bf16.gmra.mxu1 %vm294_vm2, %v1239_v52 }
  0xb1   : > { %1996 = vmatmul.mubr.msk.bf16.gmra.mxu0 %vm294_vm2, %v1374_v51  ;;  %1981 = vmatprep.mubr.msk.bf16.mxu1 %vm2066_vm0, %v2065_v1 }
  0xb2   : > { %1999 = vmatprep.mubr.msk.bf16.mxu0 %vm2066_vm0, %v2065_v1 }
  0xb8   : > { %1982 = vmatmul.mubr.msk.bf16.gmra.mxu1 %vm294_vm2, %v1248_v60 }
  0xb9   : > { %2000 = vmatmul.mubr.msk.bf16.gmra.mxu0 %vm294_vm2, %v1376_v59  ;;  %1985 = vmatprep.mubr.msk.bf16.mxu1 %vm2066_vm0, %v2065_v1 }
  0xba   : > { %2003 = vmatprep.mubr.msk.bf16.mxu0 %vm2066_vm0, %v2065_v1 }
  0xc0   : > { %1986 = vmatmul.mubr.msk.bf16.gmra.mxu1 %vm294_vm2, %v1257_v3 }
  0xc1   : > { %2004 = vmatmul.mubr.msk.bf16.gmra.mxu0 %vm294_vm2, %v1378_v2 }
  0xc2   : > { %2007 = vmatprep.mubr.msk.bf16.mxu0 %vm2066_vm0, %v2065_v1 }
  0xc9   : > { %2008 = vmatmul.mubr.msk.bf16.gmra.mxu0 %vm294_vm2, %v1380_v5 }
  0xd8   : > { %v368_v7 = vpop.f32.mrf.mxu1 }
  0xd9   : > { %v344_v6 = vpop.f32.mrf.mxu0 }
  0xda   : > { %v1829_v9 = vpop.f32.mrf.mxu1 }
  0xdb   : > { %v1817_v8 = vpop.f32.mrf.mxu0 }
  0xdc   : > { %v371_v12 = vpop.f32.mrf.mxu1 }
  0xdd   : > { %v347_v11 = vpop.f32.mrf.mxu0 }
  0xde   : > { %v1830_v10 = vpop.f32.mrf.mxu1 }
  0xdf   : > { %v1818_v13 = vpop.f32.mrf.mxu0 }
  0xe0   : > { %v376_v36 = vpop.f32.mrf.mxu1 }
  0xe1   : > { %v352_v14 = vpop.f32.mrf.mxu0 }
  0xe2   : > { %v1833_v16 = vpop.f32.mrf.mxu1 }
  0xe3   : > { %v1821_v15 = vpop.f32.mrf.mxu0 }
  0xe4   : > { %v379_v17 = vpop.f32.mrf.mxu1 }
  0xe5   : > { %v355_v1 = vpop.f32.mrf.mxu0 }
  0xe6   : > { %v1834_v19 = vpop.f32.mrf.mxu1 }
  0xe7   : > { %v1822_v18 = vpop.f32.mrf.mxu0 }
  0xe8   : > { %v433_v21 = vpop.f32.mrf.mxu1 }
  0xe9   : > { %v360_v20 = vpop.f32.mrf.mxu0  ;;  %v434_v23 = vadd.f32 %v433_v21, %v344_v6 }
  0xea   : > { %v1839_v24 = vpop.f32.mrf.mxu1 }
  0xeb   : > { %v1825_v22 = vpop.f32.mrf.mxu0 }
  0xec   : > { %v436_v26 = vpop.f32.mrf.mxu1 }
  0xed   : > { %v363_v25 = vpop.f32.mrf.mxu0  ;;  %v437_v28 = vadd.f32 %v436_v26, %v347_v11 }
  0xee   : > { %v1840_v29 = vpop.f32.mrf.mxu1 }
  0xef   : > { %v1826_v27 = vpop.f32.mrf.mxu0 }
  0xf0   : > { %v441_v32 = vpop.f32.mrf.mxu1 }
  0xf1   : > { %v546_v30 = vpop.f32.mrf.mxu0  ;;  %v442_v34 = vadd.f32 %v441_v32, %v352_v14 }
  0xf2   : > { %v585_v31 = vadd.f32 %v546_v30, %v434_v23  ;;  %v1843_v35 = vpop.f32.mrf.mxu1 }
  0xf3   : > { %v1861_v33 = vpop.f32.mrf.mxu0 }
  0xf4   : > { %v444_v39 = vpop.f32.mrf.mxu1 }
  0xf5   : > { %v549_v37 = vpop.f32.mrf.mxu0  ;;  %v445_v42 = vadd.f32 %v444_v39, %v355_v1 }
  0xf6   : > { %v586_v38 = vadd.f32 %v549_v37, %v437_v28  ;;  %v1844_v44 = vpop.f32.mrf.mxu1 }
  0xf7   : > { %v1862_v40 = vpop.f32.mrf.mxu0 }
  0xf8   : > { %v449_v41 = vpop.f32.mrf.mxu1 }
  0xf9   : > { %v554_v45 = vpop.f32.mrf.mxu0  ;;  %v450_v48 = vadd.f32 %v449_v41, %v360_v20 }
  0xfa   : > { %v587_v46 = vadd.f32 %v554_v45, %v442_v34  ;;  %v1847_v49 = vpop.f32.mrf.mxu1 }
  0xfb   : > { %v1865_v47 = vpop.f32.mrf.mxu0 }
  0xfc   : > { %v452_v52 = vpop.f32.mrf.mxu1 }
  0xfd   : > { %v557_v50 = vpop.f32.mrf.mxu0  ;;  %v453_v54 = vadd.f32 %v452_v52, %v363_v25 }
  0xfe   : > { %v588_v51 = vadd.f32 %v557_v50, %v445_v42  ;;  %v1848_v55 = vpop.f32.mrf.mxu1 }
  0xff   : > { %v1866_v53 = vpop.f32.mrf.mxu0 }
 0x100   : > { %v457_v58 = vpop.f32.mrf.mxu1 }
 0x101   : > { %v562_v56 = vpop.f32.mrf.mxu0  ;;  %v458_v59 = vadd.f32 %v457_v58, %v368_v7 }
 0x102   : > { %v589_v57 = vadd.f32 %v562_v56, %v450_v48  ;;  %v1851_v60 = vpop.f32.mrf.mxu1 }
 0x103   : > { %v1869_v43 = vpop.f32.mrf.mxu0 }
 0x104   : > { %v460_v63 = vpop.f32.mrf.mxu1 }
 0x105   : > { %v565_v61 = vpop.f32.mrf.mxu0  ;;  %v461_v2 = vadd.f32 %v460_v63, %v371_v12 }
 0x106   : > { %v590_v62 = vadd.f32 %v565_v61, %v453_v54  ;;  %v1852_v3 = vpop.f32.mrf.mxu1 }
 0x107   : > { %v1870_v0 = vpop.f32.mrf.mxu0 }
 0x108   : > { %v465_v6 = vpop.f32.mrf.mxu1 }
 0x109   : > { %v570_v4 = vpop.f32.mrf.mxu0  ;;  %v466_v9 = vadd.f32 %v465_v6, %v376_v36 }
 0x10a   : > { %v591_v5 = vadd.f32 %v570_v4, %v458_v59  ;;  %v1855_v11 = vpop.f32.mrf.mxu1 }
 0x10b   : > { %v1873_v8 = vpop.f32.mrf.mxu0 }
 0x10c   : > { %v468_v14 = vpop.f32.mrf.mxu1 }
 0x10d   : > { %v573_v13 = vpop.f32.mrf.mxu0  ;;  %v469_v16 = vadd.f32 %v468_v14, %v379_v17 }
 0x10e   : > { %v592_v10 = vadd.f32 %v573_v13, %v461_v2  ;;  %v1856_v1 = vpop.f32.mrf.mxu1 }
 0x10f   : > { %v1874_v15 = vpop.f32.mrf.mxu0 }
 0x110   : > { %v703_v19 = vpop.f32.mrf.mxu1 }
 0x111   : > { %v578_v7 = vpop.f32.mrf.mxu0  ;;  %v742_v21 = vadd.f32 %v703_v19, %v585_v31 }
 0x112   : > { %v593_v18 = vadd.f32 %v578_v7, %v466_v9  ;;  %v1883_v22 = vpop.f32.mrf.mxu1 }
 0x113   : > { %v1877_v20 = vpop.f32.mrf.mxu0 }
 0x114   : > { %v706_v24 = vpop.f32.mrf.mxu1 }
 0x115   : > { %v581_v12 = vpop.f32.mrf.mxu0  ;;  %v743_v26 = vadd.f32 %v706_v24, %v586_v38 }
 0x116   : > { %v594_v23 = vadd.f32 %v581_v12, %v469_v16  ;;  %v1884_v27 = vpop.f32.mrf.mxu1 }
 0x117   : > { %v1878_v25 = vpop.f32.mrf.mxu0 }
 0x118   : > { %v711_v29 = vpop.f32.mrf.mxu1 }
 0x119   : > { %v868_v36 = vpop.f32.mrf.mxu0  ;;  %v744_v32 = vadd.f32 %v711_v29, %v587_v46 }
 0x11a   : > { %v2442_v28 = vadd.f32 %v868_v36, %v742_v21  ;;  %v1887_v17 = vpop.f32.mrf.mxu1 }
 0x11b   : > { %v1905_v30 = vpop.f32.mrf.mxu0 }
 0x11c   : > { %v714_v35 = vpop.f32.mrf.mxu1 }
 0x11d   : > { %v871_v33 = vpop.f32.mrf.mxu0  ;;  %v745_v31 = vadd.f32 %v714_v35, %v588_v51 }
 0x11e   : > { %v2444_v34 = vadd.f32 %v871_v33, %v743_v26  ;;  %v1888_v39 = vpop.f32.mrf.mxu1 }
 0x11f   : > { %v1906_v37 = vpop.f32.mrf.mxu0 }
 0x120   : > { %v719_v44 = vpop.f32.mrf.mxu1 }
 0x121   : > { %v876_v40 = vpop.f32.mrf.mxu0  ;;  %v746_v45 = vadd.f32 %v719_v44, %v589_v57 }
 0x122   : > { %v2446_v42 = vadd.f32 %v876_v40, %v744_v32  ;;  %v1891_v41 = vpop.f32.mrf.mxu1 }
 0x123   : > { %v1909_v38 = vpop.f32.mrf.mxu0 }
 0x124   : > { %v722_v49 = vpop.f32.mrf.mxu1 }
 0x125   : > { %v879_v47 = vpop.f32.mrf.mxu0  ;;  %v747_v50 = vadd.f32 %v722_v49, %v590_v62 }
 0x126   : > { %v2448_v48 = vadd.f32 %v879_v47, %v745_v31  ;;  %v1892_v52 = vpop.f32.mrf.mxu1 }
 0x127   : > { %v1910_v46 = vpop.f32.mrf.mxu0 }
 0x128   : > { %v727_v55 = vpop.f32.mrf.mxu1 }
 0x129   : > { %v884_v53 = vpop.f32.mrf.mxu0  ;;  %v748_v56 = vadd.f32 %v727_v55, %v591_v5 }
 0x12a   : > { %v2450_v54 = vadd.f32 %v884_v53, %v746_v45  ;;  %v1895_v58 = vpop.f32.mrf.mxu1 }
 0x12b   : > { %v1913_v51 = vpop.f32.mrf.mxu0 }
 0x12c   : > { %v730_v60 = vpop.f32.mrf.mxu1 }
 0x12d   : > { %v887_v43 = vpop.f32.mrf.mxu0  ;;  %v749_v61 = vadd.f32 %v730_v60, %v592_v10 }
 0x12e   : > { %v2452_v59 = vadd.f32 %v887_v43, %v747_v50  ;;  %v1896_v63 = vpop.f32.mrf.mxu1 }
 0x12f   : > { %v1914_v57 = vpop.f32.mrf.mxu0 }
 0x130   : > { %v735_v3 = vpop.f32.mrf.mxu1 }
 0x131   : > { %v892_v0 = vpop.f32.mrf.mxu0  ;;  %v750_v4 = vadd.f32 %v735_v3, %v593_v18 }
 0x132   : > { %v2454_v2 = vadd.f32 %v892_v0, %v748_v56  ;;  %v1899_v6 = vpop.f32.mrf.mxu1 }
 0x133   : > { %v1917_v62 = vpop.f32.mrf.mxu0 }
 0x134   : > { %v738_v11 = vpop.f32.mrf.mxu1 }
 0x135   : > { %v895_v8 = vpop.f32.mrf.mxu0  ;;  %v751_v13 = vadd.f32 %v738_v11, %v594_v23 }
 0x136   : > { %v2456_v9 = vadd.f32 %v895_v8, %v749_v61  ;;  %v1900_v14 = vpop.f32.mrf.mxu1 }
 0x137   : > { %v1918_v5 = vpop.f32.mrf.mxu0  ;;  %v2491_v14 = vld [vmem:[%s2569_s2] ss:$0 sm:$0xff] }
 0x138   : > { %v991_v1 = vpop.f32.mrf.mxu1 }
 0x139   : > { %v900_v15 = vpop.f32.mrf.mxu0  ;;  %v1030_v63 = vadd.f32 %v991_v1, %v2442_v28  ;;  %v2496_v1 = vld [vmem:[%s2570_s3] ss:$0 sm:$0xff] }
 0x13a   : > { %v2458_v16 = vadd.f32 %v900_v15, %v750_v4  ;;  %v1927_v7 = vpop.f32.mrf.mxu1 }
 0x13b   : > { %v1921_v10 = vpop.f32.mrf.mxu0 }
 0x13c   : > { %v994_v21 = vpop.f32.mrf.mxu1 }
 0x13d   : > { %v903_v19 = vpop.f32.mrf.mxu0  ;;  %v1031_v8 = vadd.f32 %v994_v21, %v2444_v34 }
 0x13e   : > { %v2460_v20 = vadd.f32 %v903_v19, %v751_v13  ;;  %v1928_v18 = vpop.f32.mrf.mxu1 }
 0x13f   : > { %v1922_v22 = vpop.f32.mrf.mxu0 }
 0x140   : > { %v999_v24 = vpop.f32.mrf.mxu1 }
 0x141   : > { %v1148_v12 = vpop.f32.mrf.mxu0  ;;  %v1032_v19 = vadd.f32 %v999_v24, %v2446_v42 }
 0x142   : > { %v1931_v26 = vpop.f32.mrf.mxu1  ;;  %v1187_v62 = vadd.f32 %v1148_v12, %v1030_v63 }
 0x143   : > { %v1949_v25 = vpop.f32.mrf.mxu0 }
 0x144   : > { %v1002_v36 = vpop.f32.mrf.mxu1 }
 0x145   : > { %v1151_v27 = vpop.f32.mrf.mxu0 }
 0x146   : > { %v1932_v29 = vpop.f32.mrf.mxu1  ;;  %v1188_v15 = vadd.f32 %v1151_v27, %v1031_v8 }
 0x147   : > { %v1950_v23 = vpop.f32.mrf.mxu0  ;;  %v1033_v29 = vadd.f32 %v1002_v36, %v2448_v48 }
 0x148   : > { %v2462_v32 = vpop.f32.mrf.mxu1 }
 0x149   : > { %v1156_v30 = vpop.f32.mrf.mxu0  ;;  %v1034_v36 = vadd.f32 %v2462_v32, %v2450_v54 }
 0x14a   : > { %v1935_v33 = vpop.f32.mrf.mxu1  ;;  %v1189_v12 = vadd.f32 %v1156_v30, %v1032_v19 }
 0x14b   : > { %v1953_v17 = vpop.f32.mrf.mxu0 }
 0x14c   : > { %v2464_v37 = vpop.f32.mrf.mxu1 }
 0x14d   : > { %v1159_v35 = vpop.f32.mrf.mxu0  ;;  %v1035_v54 = vadd.f32 %v2464_v37, %v2452_v59 }
 0x14e   : > { %v1936_v39 = vpop.f32.mrf.mxu1  ;;  %v1190_v30 = vadd.f32 %v1159_v35, %v1033_v29 }
 0x14f   : > { %v1954_v31 = vpop.f32.mrf.mxu0 }
 0x150   : > { %v2468_v44 = vpop.f32.mrf.mxu1 }
 0x151   : > { %v2466_v40 = vpop.f32.mrf.mxu0  ;;  %v1036_v59 = vadd.f32 %v2468_v44, %v2454_v2 }
 0x152   : > { %v1939_v45 = vpop.f32.mrf.mxu1  ;;  %v1191_v35 = vadd.f32 %v2466_v40, %v1034_v36 }
 0x153   : > { %v1957_v38 = vpop.f32.mrf.mxu0 }
 0x154   : > { %v2472_v47 = vpop.f32.mrf.mxu1 }
 0x155   : > { %v2470_v41 = vpop.f32.mrf.mxu0  ;;  %v1037_v2 = vadd.f32 %v2472_v47, %v2456_v9 }
 0x156   : > { %v1940_v46 = vpop.f32.mrf.mxu1  ;;  %v1192_v40 = vadd.f32 %v2470_v41, %v1035_v54 }
 0x157   : > { %v1958_v49 = vpop.f32.mrf.mxu0 }
 0x158   : > { %v2476_v52 = vpop.f32.mrf.mxu1 }
 0x159   : > { %v2474_v50 = vpop.f32.mrf.mxu0  ;;  %v1038_v9 = vadd.f32 %v2476_v52, %v2458_v16 }
 0x15a   : > { %v1943_v55 = vpop.f32.mrf.mxu1  ;;  %v1193_v41 = vadd.f32 %v2474_v50, %v1036_v59 }
 0x15b   : > { %v1961_v53 = vpop.f32.mrf.mxu0 }
 0x15c   : > { %v2480_v56 = vpop.f32.mrf.mxu1 }
 0x15d   : > { %v2478_v51 = vpop.f32.mrf.mxu0  ;;  %v1039_v16 = vadd.f32 %v2480_v56, %v2460_v20 }
 0x15e   : > { %v1944_v43 = vpop.f32.mrf.mxu1  ;;  %v1194_v50 = vadd.f32 %v2478_v51, %v1037_v2 }
 0x15f   : > { %v1962_v58 = vpop.f32.mrf.mxu0 }
 0x160   : > { %v1313_v57 = vpop.f32.mrf.mxu1 }
 0x161   : > { %v2482_v60 = vpop.f32.mrf.mxu0  ;;  %v1352_v11 = vadd.f32 %v1313_v57, %v1187_v62 }
 0x162   : > { %v1971_v0 = vpop.f32.mrf.mxu1  ;;  %v1195_v51 = vadd.f32 %v2482_v60, %v1038_v9 }
 0x163   : > { %v1965_v61 = vpop.f32.mrf.mxu0 }
 0x164   : > { %v1316_v4 = vpop.f32.mrf.mxu1 }
 0x165   : > { %v2485_v3 = vpop.f32.mrf.mxu0  ;;  %v1353_v34 = vadd.f32 %v1316_v4, %v1188_v15 }
 0x166   : > { %v1972_v5 = vpop.f32.mrf.mxu1  ;;  %v1196_v60 = vadd.f32 %v2485_v3, %v1039_v16 }
 0x167   : > { %v1966_v6 = vpop.f32.mrf.mxu0 }
 0x168   : > { %v1321_v28 = vpop.f32.mrf.mxu1 }
 0x169   : > { %v1436_v13 = vpop.f32.mrf.mxu0  ;;  %v1354_v17 = vadd.f32 %v1321_v28, %v1189_v12 }
 0x16a   : > { %v1475_v10 = vadd.f32 %v1436_v13, %v1352_v11  ;;  %v1975_v22 = vpop.f32.mrf.mxu1 }
 0x16b   : > { %v1993_v7 = vpop.f32.mrf.mxu0 }
 0x16c   : > { %v1492_v21 = vmul.f32 %v2491_v14, %v1475_v10  ;;  %v1324_v27 = vpop.f32.mrf.mxu1 }
 0x16d   : > { %v1439_v18 = vpop.f32.mrf.mxu0  ;;  %v1355_v46 = vadd.f32 %v1324_v27, %v1190_v30 }
 0x16e   : > { %v1509_v25 = vadd.f32 %v2496_v1, %v1492_v21  ;;  %v1476_v26 = vadd.f32 %v1439_v18, %v1353_v34  ;;  %v1976_v42 = vpop.f32.mrf.mxu1 }
 0x16f   : > { %v1994_v23 = vpop.f32.mrf.mxu0 }
 0x170   : > { %v1519_v33 = vmax.f32 %v1509_v25, 0.0  ;;  %v1493_v31 = vmul.f32 %v2491_v14, %v1476_v26  ;;  %v1329_v49 = vpop.f32.mrf.mxu1 }
 0x171   : > { %v1444_v24 = vpop.f32.mrf.mxu0  ;;  %v1356_v32 = vadd.f32 %v1329_v49, %v1191_v35 }
 0x172   : > { %v1749_v39 = vpack.c.bf16 %v1519_v33, %v1519_v33  ;;  %v1510_v38 = vadd.f32 %v2496_v1, %v1493_v31  ;;  %v1477_v45 = vadd.f32 %v1444_v24, %v1354_v17  ;;  %v1979_v58 = vpop.f32.mrf.mxu1 }
 0x173   : > { %v1997_v48 = vpop.f32.mrf.mxu0 }
 0x174   : > { %1570 = vst.msk [vmem:[%s2507_s22] sm:$0xf] %vm1569_vm8, %v1749_v39  ;;  %v1520_v53 = vmax.f32 %v1510_v38, 0.0  ;;  %v1494_v55 = vmul.f32 %v2491_v14, %v1477_v45  ;;  %v1332_v0 = vpop.f32.mrf.mxu1 }
 0x175   : > { %v1447_v43 = vpop.f32.mrf.mxu0  ;;  %v1357_v37 = vadd.f32 %v1332_v0, %v1192_v40 }
 0x176   : > { %v1750_v57 = vpack.c.bf16 %v1520_v53, %v1520_v53  ;;  %v1511_v61 = vadd.f32 %v2496_v1, %v1494_v55  ;;  %v1478_v63 = vadd.f32 %v1447_v43, %v1355_v46  ;;  %v1980_v8 = vpop.f32.mrf.mxu1 }
 0x177   : > { %v1998_v62 = vpop.f32.mrf.mxu0 }
 0x178   : > { %1571 = vst.msk [vmem:[%s2507_s22 + $0x4] sm:$0xf] %vm1569_vm8, %v1750_v57  ;;  %v1521_v4 = vmax.f32 %v1511_v61, 0.0  ;;  %v1495_v6 = vmul.f32 %v2491_v14, %v1478_v63  ;;  %v1337_v10 = vpop.f32.mrf.mxu1 }
 0x179   : > { %v1452_v11 = vpop.f32.mrf.mxu0  ;;  %v1358_v44 = vadd.f32 %v1337_v10, %v1193_v41 }
 0x17a   : > { %v1751_v5 = vpack.c.bf16 %v1521_v4, %v1521_v4  ;;  %v1512_v13 = vadd.f32 %v2496_v1, %v1495_v6  ;;  %v1479_v15 = vadd.f32 %v1452_v11, %v1356_v32  ;;  %v1983_v34 = vpop.f32.mrf.mxu1 }
 0x17b   : > { %v2001_v28 = vpop.f32.mrf.mxu0 }
 0x17c   : > { %1572 = vst.msk [vmem:[%s2507_s22 + $0x8] sm:$0xf] %vm1569_vm8, %v1751_v5  ;;  %v1522_v7 = vmax.f32 %v1512_v13, 0.0  ;;  %v1496_v19 = vmul.f32 %v2491_v14, %v1479_v15  ;;  %v1340_v25 = vpop.f32.mrf.mxu1 }
 0x17d   : > { %v1455_v21 = vpop.f32.mrf.mxu0  ;;  %v1359_v47 = vadd.f32 %v1340_v25, %v1194_v50 }
 0x17e   : > { %v1752_v22 = vpack.c.bf16 %v1522_v7, %v1522_v7  ;;  %v1513_v18 = vadd.f32 %v2496_v1, %v1496_v19  ;;  %v1480_v12 = vadd.f32 %v1455_v21, %v1357_v37  ;;  %v1984_v29 = vpop.f32.mrf.mxu1 }
 0x17f   : > { %v2002_v26 = vpop.f32.mrf.mxu0 }
 0x180   : > { %1573 = vst.msk [vmem:[%s2507_s22 + $0xc] sm:$0xf] %vm1569_vm8, %v1752_v22  ;;  %v1523_v27 = vmax.f32 %v1513_v18, 0.0  ;;  %v1497_v23 = vmul.f32 %v2491_v14, %v1480_v12  ;;  %v1345_v24 = vpop.f32.mrf.mxu1 }
 0x181   : > { %v1460_v17 = vpop.f32.mrf.mxu0  ;;  %v1360_v52 = vadd.f32 %v1345_v24, %v1195_v51 }
 0x182   : > { %v1753_v33 = vpack.c.bf16 %v1523_v27, %v1523_v27  ;;  %v1514_v31 = vadd.f32 %v2496_v1, %v1497_v23  ;;  %v1481_v42 = vadd.f32 %v1460_v17, %v1358_v44  ;;  %v1987_v45 = vpop.f32.mrf.mxu1 }
 0x183   : > { %v2005_v30 = vpop.f32.mrf.mxu0 }
 0x184   : > { %1574 = vst.msk [vmem:[%s2507_s22 + $0x10] sm:$0xf] %vm1569_vm8, %v1753_v33  ;;  %v1524_v39 = vmax.f32 %v1514_v31, 0.0  ;;  %v1498_v38 = vmul.f32 %v2491_v14, %v1481_v42  ;;  %v1348_v53 = vpop.f32.mrf.mxu1 }
 0x185   : > { %v1463_v49 = vpop.f32.mrf.mxu0  ;;  %v1361_v20 = vadd.f32 %v1348_v53, %v1196_v60 }
 0x186   : > { %v1754_v48 = vpack.c.bf16 %v1524_v39, %v1524_v39  ;;  %v1515_v36 = vadd.f32 %v2496_v1, %v1498_v38  ;;  %v1482_v46 = vadd.f32 %v1463_v49, %v1359_v47  ;;  %v1988_v35 = vpop.f32.mrf.mxu1 }
 0x187   : > { %v2006_v55 = vpop.f32.mrf.mxu0 }
 0x188   : > { %1575 = vst.msk [vmem:[%s2507_s22 + $0x14] sm:$0xf] %vm1569_vm8, %v1754_v48  ;;  %v1525_v58 = vmax.f32 %v1515_v36, 0.0  ;;  %v1499_v43 = vmul.f32 %v2491_v14, %v1482_v46 }
 0x189   : > { %v1468_v57 = vpop.f32.mrf.mxu0 }
 0x18a   : > { %v1755_v61 = vpack.c.bf16 %v1525_v58, %v1525_v58  ;;  %v1516_v63 = vadd.f32 %v2496_v1, %v1499_v43  ;;  %v1483_v0 = vadd.f32 %v1468_v57, %v1360_v52 }
 0x18b   : > { %v2009_v62 = vpop.f32.mrf.mxu0 }
 0x18c   : > { %1576 = vst.msk [vmem:[%s2507_s22 + $0x18] sm:$0xf] %vm1569_vm8, %v1755_v61  ;;  %v1526_v56 = vmax.f32 %v1516_v63, 0.0  ;;  %v1500_v54 = vmul.f32 %v2491_v14, %v1483_v0 }
 0x18d   : > { %v1471_v32 = vpop.f32.mrf.mxu0 }
 0x18e   : > { %v1756_v4 = vpack.c.bf16 %v1526_v56, %v1526_v56  ;;  %v1517_v6 = vadd.f32 %v2496_v1, %v1500_v54  ;;  %v1484_v8 = vadd.f32 %v1471_v32, %v1361_v20 }
 0x18f   : > { %v2010_v11 = vpop.f32.mrf.mxu0 }
 0x190   : > { %1577 = vst.msk [vmem:[%s2507_s22 + $0x1c] sm:$0xf] %vm1569_vm8, %v1756_v4  ;;  %v1527_v3 = vmax.f32 %v1517_v6, 0.0  ;;  %v1501_v40 = vmul.f32 %v2491_v14, %v1484_v8 }
 0x192   : > { %v1757_v5 = vpack.c.bf16 %v1527_v3, %v1527_v3  ;;  %v1518_v13 = vadd.f32 %v2496_v1, %v1501_v40 }
 0x194   : > { %1578 = vst.msk [vmem:[%s2507_s22 + $0x20] sm:$0xf] %vm1569_vm8, %v1757_v5  ;;  %v1528_v15 = vmax.f32 %v1518_v13, 0.0 }
 0x196   : > { %v1758_v10 = vpack.c.bf16 %v1528_v15, %v1528_v15 }
 0x198   : > { %1579 = vst.msk [vmem:[%s2507_s22 + $0x24] sm:$0xf] %vm1569_vm8, %v1758_v10 }
 0x199 PF: > { %s14_s15 = sadd.s32 1, %s2063_s15  }
 0x19a   : > { %p11_p4 = scmp.ge.s32.totalorder %s14_s15, 4  }
 0x19c   :  { %13 = sbr.rel (!%p11_p4) target bundleno = 1 (0x1), region = 74 }

</bundles_post_ra>
